<compile_context>
chip_gen: v6e
topology: v6e:2x2x1
jax: 0.10.0
libtpu: 0.0.40
codegen_flags: <defaults>
</compile_context>

<pallas_src>
import functools

import jax
import jax.numpy as jnp
from jax.experimental import pallas as pl
from jax.experimental.pallas import tpu as pltpu


_VMEM_LIMIT_BYTES = 48 * 1024 * 1024  # > scoped defaults, < physical VMEM on all gens


def _round_up(x, m):
    return ((x + m - 1) // m) * m


def _pick_tile(n, prefs):
    for t in prefs:
        if n % t == 0:
            return t
    return n


# ---------------------------------------------------------------------------
# Tiled matmul kernel:  bf16 x bf16 -> f32 accumulator, fused bias (+ReLU)
# epilogue and fused per-channel sum / sum-of-squares (for BatchNorm stats).
# ---------------------------------------------------------------------------
def _matmul_kernel(x_ref, w_ref, b_ref, o_ref, sum_ref, sq_ref, acc_ref, *, relu):
    k = pl.program_id(2)

    @pl.when(k == 0)
    def _():
        acc_ref[...] = jnp.zeros_like(acc_ref)

    acc_ref[...] += jnp.dot(x_ref[...], w_ref[...],
                            preferred_element_type=jnp.float32)

    @pl.when(k == pl.num_programs(2) - 1)
    def _():
        acc = acc_ref[...]
        # Per-channel partial sums of the *pre-bias* result (zero-padded rows
        # contribute nothing).  Broadcast to 8 rows to keep the output block
        # sublane-aligned; the wrapper divides by 8.
        srow = jnp.sum(acc, axis=0, keepdims=True)
        qrow = jnp.sum(acc * acc, axis=0, keepdims=True)
        sum_ref[...] = jnp.broadcast_to(srow, sum_ref.shape)
        sq_ref[...] = jnp.broadcast_to(qrow, sq_ref.shape)

        y = acc + b_ref[...]
        if relu:
            y = jnp.maximum(y, 0.0)
        o_ref[...] = y.astype(o_ref.dtype)


def matmul_bias(x, w, b, *, relu=False, return_stats=False):
    """x: (M, K) @ w: (K, D) + b: (D,) on the MXU.

    Returns the (M, D) f32 result; with return_stats=True also returns the
    per-channel sum and sum-of-squares of the *pre-bias* product (for fused
    BatchNorm statistics).
    """
    M, K = x.shape
    K2, D = w.shape
    assert K == K2

    # --- tile selection (re-derived per call; padded dims keep a uniform grid)
    Mp = _round_up(M, 8)
    tm = _pick_tile(Mp, (256, 128, 64, 32, 16, 8))
    Dp = _round_up(D, 128)
    tn = 256 if Dp % 256 == 0 else 128
    if K <= 1024:
        Kp, tk = K, K                      # single reduction step, full-K block
    else:
        Kp, tk = K, 128
        for cand in (512, 256, 128):
            if K % cand == 0:
                Kp, tk = K, cand
                break
        else:
            Kp = _round_up(K, 128)
            tk = 128

    # --- bf16 operands for MXU-native throughput; f32 accumulation in-kernel.
    xb = x.astype(jnp.bfloat16)
    wb = w.astype(jnp.bfloat16)
    if Mp != M or Kp != K:
        xb = jnp.pad(xb, ((0, Mp - M), (0, Kp - K)))
    if Kp != K or Dp != D:
        wb = jnp.pad(wb, ((0, Kp - K), (0, Dp - D)))
    bp = b.astype(jnp.float32)
    if Dp != D:
        bp = jnp.pad(bp, (0, Dp - D))
    bp = bp.reshape(1, Dp)

    grid = (Mp // tm, Dp // tn, Kp // tk)
    kernel = functools.partial(_matmul_kernel, relu=relu)
    cost = pl.CostEstimate(
        flops=int(2 * Mp * Dp * Kp),
        transcendentals=0,
        bytes_accessed=int((Mp * Kp + Kp * Dp) * 2 + Mp * Dp * 4),
    )

    out, sums_raw, sq_raw = pl.pallas_call(
        kernel,
        out_shape=(
            jax.ShapeDtypeStruct((Mp, Dp), jnp.float32),
            jax.ShapeDtypeStruct((8 * grid[0], Dp), jnp.float32),
            jax.ShapeDtypeStruct((8 * grid[0], Dp), jnp.float32),
        ),
        grid=grid,
        in_specs=[
            pl.BlockSpec((tm, tk), lambda i, j, k: (i, k)),
            pl.BlockSpec((tk, tn), lambda i, j, k: (k, j)),
            pl.BlockSpec((1, tn), lambda i, j, k: (0, j)),
        ],
        out_specs=[
            pl.BlockSpec((tm, tn), lambda i, j, k: (i, j)),
            pl.BlockSpec((8, tn), lambda i, j, k: (i, j)),
            pl.BlockSpec((8, tn), lambda i, j, k: (i, j)),
        ],
        scratch_shapes=[pltpu.VMEM((tm, tn), jnp.float32)],
        compiler_params=pltpu.CompilerParams(
            dimension_semantics=("parallel", "parallel", "arbitrary"),
            vmem_limit_bytes=_VMEM_LIMIT_BYTES,
        ),
        cost_estimate=cost,
    )(xb, wb, bp)

    out = out[:M, :D]
    if not return_stats:
        return out
    col_sum = (jnp.sum(sums_raw, axis=0) / 8.0)[:D]
    col_sq = (jnp.sum(sq_raw, axis=0) / 8.0)[:D]
    return out, col_sum, col_sq


# ---------------------------------------------------------------------------
# Fused BatchNorm-affine (+ residual) (+ ReLU) elementwise kernel.
# ---------------------------------------------------------------------------
def _affine_kernel(x_ref, scale_ref, shift_ref, o_ref, *, relu):
    y = x_ref[...] * scale_ref[...] + shift_ref[...]
    if relu:
        y = jnp.maximum(y, 0.0)
    o_ref[...] = y.astype(o_ref.dtype)


def _affine_res_kernel(x_ref, res_ref, scale_ref, shift_ref, o_ref, *, relu):
    y = x_ref[...] * scale_ref[...] + shift_ref[...] + res_ref[...]
    if relu:
        y = jnp.maximum(y, 0.0)
    o_ref[...] = y.astype(o_ref.dtype)


def bn_act(x2d, gamma, beta, *, stats, bias, relu, residual=None, eps=1e-5):
    """BatchNorm (training-mode batch statistics, as in the torch module's
    default state) + optional residual add + ReLU.

    `stats` = (sum, sum_sq) of the *pre-bias* conv/matmul output per channel,
    produced inside the matmul kernel, so the activation is not re-read in HBM
    just to compute mean/var.  `bias` is the conv bias already added to x2d.
    """
    M, C = x2d.shape
    col_sum, col_sq = stats
    mean_nb = col_sum / M
    var = jnp.maximum(col_sq / M - mean_nb * mean_nb, 0.0)  # bias cancels in var
    mean = mean_nb + bias
    scale = gamma * jax.lax.rsqrt(var + eps)
    shift = beta - mean * scale

    Mp = _round_up(M, 8)
    tm = _pick_tile(Mp, (512, 256, 128, 64, 32, 16, 8))  # large, BW-bound tiles
    Cp = _round_up(C, 128)                               # lane-dense stores

    def pad_act(a):
        if Mp == M and Cp == C:
            return a
        return jnp.pad(a, ((0, Mp - M), (0, Cp - C)))

    def pad_vec(v):
        v = v.astype(jnp.float32)
        if Cp != C:
            v = jnp.pad(v, (0, Cp - C))
        return v.reshape(1, Cp)

    xp = pad_act(x2d)
    scale_p = pad_vec(scale)
    shift_p = pad_vec(shift)

    grid = (Mp // tm,)
    if residual is None:
        kernel = functools.partial(_affine_kernel, relu=relu)
        ins = (xp, scale_p, shift_p)
        in_specs = [
            pl.BlockSpec((tm, Cp), lambda i: (i, 0)),
            pl.BlockSpec((1, Cp), lambda i: (0, 0)),
            pl.BlockSpec((1, Cp), lambda i: (0, 0)),
        ]
    else:
        kernel = functools.partial(_affine_res_kernel, relu=relu)
        ins = (xp, pad_act(residual), scale_p, shift_p)
        in_specs = [
            pl.BlockSpec((tm, Cp), lambda i: (i, 0)),
            pl.BlockSpec((tm, Cp), lambda i: (i, 0)),
            pl.BlockSpec((1, Cp), lambda i: (0, 0)),
            pl.BlockSpec((1, Cp), lambda i: (0, 0)),
        ]

    out = pl.pallas_call(
        kernel,
        out_shape=jax.ShapeDtypeStruct((Mp, Cp), jnp.float32),
        grid=grid,
        in_specs=in_specs,
        out_specs=pl.BlockSpec((tm, Cp), lambda i: (i, 0)),
        compiler_params=pltpu.CompilerParams(
            dimension_semantics=("parallel",),
            vmem_limit_bytes=_VMEM_LIMIT_BYTES,
        ),
    )(*ins)
    return out[:M, :C]


# ---------------------------------------------------------------------------
# Conv2d = im2col (bf16 JAX glue) + Pallas matmul kernel
# ---------------------------------------------------------------------------
def conv2d(x, w_hwio, b, *, stride, pad, return_stats=False):
    """x: (N, H, W, Cin) NHWC.  w_hwio: (kh, kw, Cin, Cout).  b: (Cout,)."""
    N, H, W, Cin = x.shape
    kh, kw, _, Cout = w_hwio.shape
    xb = x.astype(jnp.bfloat16)  # build patches directly in bf16 (halves HBM cost)
    xp = jnp.pad(xb, ((0, 0), (pad, pad), (pad, pad), (0, 0)))
    Ho = (H + 2 * pad - kh) // stride + 1
    Wo = (W + 2 * pad - kw) // stride + 1
    cols = []
    for i in range(kh):
        for j in range(kw):
            cols.append(
                xp[:, i: i + stride * (Ho - 1) + 1: stride,
                      j: j + stride * (Wo - 1) + 1: stride, :]
            )
    patches = jnp.concatenate(cols, axis=-1).reshape(N * Ho * Wo, kh * kw * Cin)
    wmat = w_hwio.reshape(kh * kw * Cin, Cout)
    res = matmul_bias(patches, wmat, b, relu=False, return_stats=return_stats)
    if return_stats:
        out, s, q = res
        return out.reshape(N, Ho, Wo, Cout), s, q
    return res.reshape(N, Ho, Wo, Cout)


# ---------------------------------------------------------------------------
# Parameter construction (deterministic, mirrors the torch __init__ structure)
# ---------------------------------------------------------------------------
class KeyGen:
    def __init__(self, key):
        self.key = key

    def __call__(self):
        self.key, sub = jax.random.split(self.key)
        return sub


def _conv_params(kg, kh, kw, cin, cout, bias=True):
    fan_in = kh * kw * cin
    w = jax.random.normal(kg(), (kh, kw, cin, cout), jnp.float32) / jnp.sqrt(fan_in)
    b = (jax.random.normal(kg(), (cout,), jnp.float32) * 0.01
         if bias else jnp.zeros((cout,), jnp.float32))
    return w, b


def _linear_params(kg, din, dout):
    w = jax.random.normal(kg(), (din, dout), jnp.float32) / jnp.sqrt(din)
    b = jax.random.normal(kg(), (dout,), jnp.float32) * 0.01
    return w, b


def _block_params(kg, in_chans, out_chans):
    sc_w, sc_b = _conv_params(kg, 1, 1, in_chans, out_chans)
    c0_w, c0_b = _conv_params(kg, 3, 3, in_chans, out_chans)
    c1_w, c1_b = _conv_params(kg, 3, 3, out_chans, out_chans)
    return dict(
        sc_w=sc_w, sc_b=sc_b,
        c0_w=c0_w, c0_b=c0_b,
        bn0_g=jnp.ones((out_chans,), jnp.float32),
        bn0_b=jnp.zeros((out_chans,), jnp.float32),
        c1_w=c1_w, c1_b=c1_b,
        bn1_g=jnp.ones((out_chans,), jnp.float32),
        bn1_b=jnp.zeros((out_chans,), jnp.float32),
    )


def build_resnet50_params(key, *, xsize=32, ysize=32, nfliters=64, nhid=512,
                          ncls=10, nblocks=5):
    kg = KeyGen(key)
    p = {}
    conv1_w, _ = _conv_params(kg, 3, 3, 3, nfliters, bias=False)
    p["conv1_w"] = conv1_w
    p["conv1_b"] = jnp.zeros((nfliters,), jnp.float32)  # bias=False in torch
    p["bn1_g"] = jnp.ones((nfliters,), jnp.float32)
    p["bn1_b"] = jnp.zeros((nfliters,), jnp.float32)

    min_sz = 4
    layers = []
    out_chans = nfliters
    nf = nfliters
    sx, sy = xsize, ysize
    while sx > min_sz and sy > min_sz:
        in_chans = out_chans
        nf *= 2
        out_chans = nf
        blocks = [_block_params(kg, in_chans, out_chans)]
        for _ in range(1, nblocks):
            blocks.append(_block_params(kg, out_chans, out_chans))
        layers.append(blocks)
        sx /= 2
        sy /= 2
    p["layers"] = layers

    nfeatures = int(out_chans * sx * sy)
    p["lin1_w"], p["lin1_b"] = _linear_params(kg, nfeatures, nhid)
    p["lin2_w"], p["lin2_b"] = _linear_params(kg, nhid, ncls)
    return p


# ---------------------------------------------------------------------------
# Forward pass
# ---------------------------------------------------------------------------
def basic_block(x, bp, stride):
    # xs = shortcut(X): 1x1 conv with stride (no BN, bias used directly)
    xs = conv2d(x, bp["sc_w"], bp["sc_b"], stride=stride, pad=0)
    # cnv0 -> bn0 -> relu   (BN batch stats come fused from the conv matmul)
    y, s0, q0 = conv2d(x, bp["c0_w"], bp["c0_b"], stride=stride, pad=1,
                       return_stats=True)
    N, Ho, Wo, Cout = y.shape
    y = bn_act(y.reshape(-1, Cout), bp["bn0_g"], bp["bn0_b"],
               stats=(s0, q0), bias=bp["c0_b"], relu=True)
    y = y.reshape(N, Ho, Wo, Cout)
    # cnv1 -> bn1 -> (+shortcut) -> relu
    y, s1, q1 = conv2d(y, bp["c1_w"], bp["c1_b"], stride=1, pad=1,
                       return_stats=True)
    y = bn_act(y.reshape(-1, Cout), bp["bn1_g"], bp["bn1_b"],
               stats=(s1, q1), bias=bp["c1_b"], relu=True,
               residual=xs.reshape(-1, Cout))
    return y.reshape(N, Ho, Wo, Cout)


def resnet50_forward(params, x_nchw, *, softmask_flg=False):
    # NCHW (PyTorch) -> NHWC (kernel layout)
    x = jnp.transpose(x_nchw, (0, 2, 3, 1)).astype(jnp.float32)

    # conv1 -> bn1 (no relu in the reference forward)
    x, s, q = conv2d(x, params["conv1_w"], params["conv1_b"], stride=1, pad=1,
                     return_stats=True)
    N, H, W, C = x.shape
    x = bn_act(x.reshape(-1, C), params["bn1_g"], params["bn1_b"],
               stats=(s, q), bias=params["conv1_b"], relu=False)
    x = x.reshape(N, H, W, C)

    # residual stages (first block of each Layer has stride 2)
    for blocks in params["layers"]:
        for b_idx, bpar in enumerate(blocks):
            x = basic_block(x, bpar, stride=2 if b_idx == 0 else 1)

    # Flatten in PyTorch NCHW order, then lin1 -> relu -> lin2
    x = jnp.transpose(x, (0, 3, 1, 2)).reshape(x.shape[0], -1)
    x = matmul_bias(x, params["lin1_w"], params["lin1_b"], relu=True)
    x = matmul_bias(x, params["lin2_w"], params["lin2_b"], relu=False)

    if softmask_flg:
        x = jax.nn.softmax(x, axis=1)
    return x


# ---------------------------------------------------------------------------
if __name__ == "__main__":
    # Small config consistent with the module's constructor logic:
    # xsize=ysize=16, nfliters=8 -> 2 Layers (8->16->32 channels, 16->8->4 spatial),
    # nfeatures = 32*4*4 = 512, nhid=32, ncls=10, nblocks=2.
    key = jax.random.PRNGKey(0)
    pkey, xkey = jax.random.split(key)

    params = build_resnet50_params(
        pkey, xsize=16, ysize=16, nfliters=8, nhid=32, ncls=10, nblocks=2
    )

    x = jax.random.normal(xkey, (2, 3, 16, 16), jnp.float32)  # NCHW like PyTorch

    fwd = jax.jit(functools.partial(resnet50_forward, softmask_flg=False))
    out = fwd(params, x)
    out = jax.block_until_ready(out)
    assert out.shape == (2, 10), out.shape
    print("KERNEL_OK")
</pallas_src>

<mosaic_0001>
module attributes {stable_mosaic.version = 11 : i64} {
  func.func @_matmul_kernel(%arg0: i32, %arg1: i32, %arg2: i32, %arg3: memref<256x27xbf16, #tpu.memory_space<vmem>>, %arg4: memref<27x128xbf16, #tpu.memory_space<vmem>>, %arg5: memref<1x128xf32, #tpu.memory_space<vmem>>, %arg6: memref<256x128xf32, #tpu.memory_space<vmem>>, %arg7: memref<8x128xf32, #tpu.memory_space<vmem>>, %arg8: memref<8x128xf32, #tpu.memory_space<vmem>>, %arg9: memref<256x128xf32, #tpu.memory_space<vmem>>) attributes {dimension_semantics = [#tpu.dimension_semantics<parallel>, #tpu.dimension_semantics<parallel>, #tpu.dimension_semantics<arbitrary>], iteration_bounds = array<i64: 2, 1, 1>, scalar_prefetch = 0 : i64, scratch_operands = 1 : i64, tpu.core_type = #tpu.core_type<tc>, window_params = [{transform_indices = @transform_0, window_bounds = array<i64: 256, 27>}, {transform_indices = @transform_1, window_bounds = array<i64: 27, 128>}, {transform_indices = @transform_2, window_bounds = array<i64: 1, 128>}, {transform_indices = @transform_3, window_bounds = array<i64: 256, 128>}, {transform_indices = @transform_4, window_bounds = array<i64: 8, 128>}, {transform_indices = @transform_5, window_bounds = array<i64: 8, 128>}]} {
    %c0_i32 = arith.constant 0 : i32
    %0 = arith.cmpi eq, %arg2, %c0_i32 : i32
    %1 = arith.extui %0 : i1 to i32
    %c0_i32_0 = arith.constant 0 : i32
    %2 = arith.cmpi ne, %1, %c0_i32_0 : i32
    scf.if %2 {
      %cst_10 = arith.constant 0.000000e+00 : f32
      %12 = vector.broadcast %cst_10 : f32 to vector<256x128xf32>
      %c0_11 = arith.constant 0 : index
      %c0_12 = arith.constant 0 : index
      %13 = vector.load %arg9[%c0_11, %c0_12] : memref<256x128xf32, #tpu.memory_space<vmem>>, vector<256x128xf32>
      tpu.vector_store %arg9[%c0_11, %c0_12], %12 {strides = array<i32>} : memref<256x128xf32, #tpu.memory_space<vmem>>, vector<256x128xf32>,
    } else {
    }
    %c0 = arith.constant 0 : index
    %c0_1 = arith.constant 0 : index
    %3 = vector.load %arg9[%c0, %c0_1] : memref<256x128xf32, #tpu.memory_space<vmem>>, vector<256x128xf32>
    %c0_2 = arith.constant 0 : index
    %c0_3 = arith.constant 0 : index
    %4 = vector.load %arg3[%c0_2, %c0_3] : memref<256x27xbf16, #tpu.memory_space<vmem>>, vector<256x27xbf16>
    %c0_4 = arith.constant 0 : index
    %c0_5 = arith.constant 0 : index
    %5 = vector.load %arg4[%c0_4, %c0_5] : memref<27x128xbf16, #tpu.memory_space<vmem>>, vector<27x128xbf16>
    %cst = arith.constant dense<0.000000e+00> : vector<256x128xf32>
    %6 = tpu.matmul %4, %5, %cst {dimension_numbers = #tpu.dot_dimension_numbers<[1], [0], [0], [1], [0, 0, 1, 1], [], []>} : vector<256x27xbf16>, vector<27x128xbf16>, vector<256x128xf32> -> vector<256x128xf32>
    %7 = arith.addf %3, %6 : vector<256x128xf32>
    %c0_6 = arith.constant 0 : index
    %c0_7 = arith.constant 0 : index
    %8 = vector.load %arg9[%c0_6, %c0_7] : memref<256x128xf32, #tpu.memory_space<vmem>>, vector<256x128xf32>
    tpu.vector_store %arg9[%c0_6, %c0_7], %7 {strides = array<i32>} : memref<256x128xf32, #tpu.memory_space<vmem>>, vector<256x128xf32>,
    %c0_i32_8 = arith.constant 0 : i32
    %9 = arith.cmpi eq, %arg2, %c0_i32_8 : i32
    %10 = arith.extui %9 : i1 to i32
    %c0_i32_9 = arith.constant 0 : i32
    %11 = arith.cmpi ne, %10, %c0_i32_9 : i32
    scf.if %11 {
      %c0_10 = arith.constant 0 : index
      %c0_11 = arith.constant 0 : index
      %12 = vector.load %arg9[%c0_10, %c0_11] : memref<256x128xf32, #tpu.memory_space<vmem>>, vector<256x128xf32>
      %cst_12 = arith.constant dense<0.000000e+00> : vector<128xf32>
      %13 = vector.multi_reduction <add>, %12, %cst_12 [0] : vector<256x128xf32> to vector<128xf32>
      %14 = vector.shape_cast %13 : vector<128xf32> to vector<1x128xf32>
      %15 = arith.mulf %12, %12 : vector<256x128xf32>
      %cst_13 = arith.constant dense<0.000000e+00> : vector<128xf32>
      %16 = vector.multi_reduction <add>, %15, %cst_13 [0] : vector<256x128xf32> to vector<128xf32>
      %17 = vector.shape_cast %16 : vector<128xf32> to vector<1x128xf32>
      %18 = vector.shape_cast %14 : vector<1x128xf32> to vector<1x128xf32>
      %19 = vector.broadcast %18 : vector<1x128xf32> to vector<8x128xf32>
      %c0_14 = arith.constant 0 : index
      %c0_15 = arith.constant 0 : index
      %20 = vector.load %arg7[%c0_14, %c0_15] : memref<8x128xf32, #tpu.memory_space<vmem>>, vector<8x128xf32>
      tpu.vector_store %arg7[%c0_14, %c0_15], %19 {strides = array<i32>} : memref<8x128xf32, #tpu.memory_space<vmem>>, vector<8x128xf32>,
      %21 = vector.shape_cast %17 : vector<1x128xf32> to vector<1x128xf32>
      %22 = vector.broadcast %21 : vector<1x128xf32> to vector<8x128xf32>
      %c0_16 = arith.constant 0 : index
      %c0_17 = arith.constant 0 : index
      %23 = vector.load %arg8[%c0_16, %c0_17] : memref<8x128xf32, #tpu.memory_space<vmem>>, vector<8x128xf32>
      tpu.vector_store %arg8[%c0_16, %c0_17], %22 {strides = array<i32>} : memref<8x128xf32, #tpu.memory_space<vmem>>, vector<8x128xf32>,
      %c0_18 = arith.constant 0 : index
      %c0_19 = arith.constant 0 : index
      %24 = vector.load %arg5[%c0_18, %c0_19] : memref<1x128xf32, #tpu.memory_space<vmem>>, vector<1x128xf32>
      %25 = vector.broadcast %24 : vector<1x128xf32> to vector<256x128xf32>
      %26 = arith.addf %12, %25 : vector<256x128xf32>
      %c0_20 = arith.constant 0 : index
      %c0_21 = arith.constant 0 : index
      %27 = vector.load %arg6[%c0_20, %c0_21] : memref<256x128xf32, #tpu.memory_space<vmem>>, vector<256x128xf32>
      tpu.vector_store %arg6[%c0_20, %c0_21], %26 {strides = array<i32>} : memref<256x128xf32, #tpu.memory_space<vmem>>, vector<256x128xf32>,
    } else {
    }
    return
  }
  func.func @transform_0(%arg0: i32, %arg1: i32, %arg2: i32) -> (i32, i32) {
    %c0_i32 = arith.constant 0 : i32
    return %arg0, %arg2 : i32, i32
  }
  func.func @transform_1(%arg0: i32, %arg1: i32, %arg2: i32) -> (i32, i32) {
    %c0_i32 = arith.constant 0 : i32
    return %arg2, %arg1 : i32, i32
  }
  func.func @transform_2(%arg0: i32, %arg1: i32, %arg2: i32) -> (i32, i32) {
    %c0_i32 = arith.constant 0 : i32
    %c0_i32_0 = arith.constant 0 : i32
    return %c0_i32, %arg1 : i32, i32
  }
  func.func @transform_3(%arg0: i32, %arg1: i32, %arg2: i32) -> (i32, i32) {
    %c0_i32 = arith.constant 0 : i32
    return %arg0, %arg1 : i32, i32
  }
  func.func @transform_4(%arg0: i32, %arg1: i32, %arg2: i32) -> (i32, i32) {
    %c0_i32 = arith.constant 0 : i32
    return %arg0, %arg1 : i32, i32
  }
  func.func @transform_5(%arg0: i32, %arg1: i32, %arg2: i32) -> (i32, i32) {
    %c0_i32 = arith.constant 0 : i32
    return %arg0, %arg1 : i32, i32
  }
}

module attributes {stable_mosaic.version = 11 : i64} {
  func.func @_affine_kernel(%arg0: i32, %arg1: memref<512x128xf32, #tpu.memory_space<vmem>>, %arg2: memref<1x128xf32, #tpu.memory_space<vmem>>, %arg3: memref<1x128xf32, #tpu.memory_space<vmem>>, %arg4: memref<512x128xf32, #tpu.memory_space<vmem>>) attributes {dimension_semantics = [#tpu.dimension_semantics<parallel>], iteration_bounds = array<i64: 1>, scalar_prefetch = 0 : i64, scratch_operands = 0 : i64, tpu.core_type = #tpu.core_type<tc>, window_params = [{transform_indices = @transform_0, window_bounds = array<i64: 512, 128>}, {pipeline_mode = #tpu.pipeline_mode<synchronous>, transform_indices = @transform_1, window_bounds = array<i64: 1, 128>}, {pipeline_mode = #tpu.pipeline_mode<synchronous>, transform_indices = @transform_2, window_bounds = array<i64: 1, 128>}, {transform_indices = @transform_3, window_bounds = array<i64: 512, 128>}]} {
    %c0 = arith.constant 0 : index
    %c0_0 = arith.constant 0 : index
    %0 = vector.load %arg1[%c0, %c0_0] : memref<512x128xf32, #tpu.memory_space<vmem>>, vector<512x128xf32>
    %c0_1 = arith.constant 0 : index
    %c0_2 = arith.constant 0 : index
    %1 = vector.load %arg2[%c0_1, %c0_2] : memref<1x128xf32, #tpu.memory_space<vmem>>, vector<1x128xf32>
    %2 = vector.broadcast %1 : vector<1x128xf32> to vector<512x128xf32>
    %3 = arith.mulf %0, %2 : vector<512x128xf32>
    %c0_3 = arith.constant 0 : index
    %c0_4 = arith.constant 0 : index
    %4 = vector.load %arg3[%c0_3, %c0_4] : memref<1x128xf32, #tpu.memory_space<vmem>>, vector<1x128xf32>
    %5 = vector.broadcast %4 : vector<1x128xf32> to vector<512x128xf32>
    %6 = arith.addf %3, %5 : vector<512x128xf32>
    %c0_5 = arith.constant 0 : index
    %c0_6 = arith.constant 0 : index
    %7 = vector.load %arg4[%c0_5, %c0_6] : memref<512x128xf32, #tpu.memory_space<vmem>>, vector<512x128xf32>
    tpu.vector_store %arg4[%c0_5, %c0_6], %6 {strides = array<i32>} : memref<512x128xf32, #tpu.memory_space<vmem>>, vector<512x128xf32>,
    return
  }
  func.func @transform_0(%arg0: i32) -> (i32, i32) {
    %c0_i32 = arith.constant 0 : i32
    %c0_i32_0 = arith.constant 0 : i32
    return %arg0, %c0_i32 : i32, i32
  }
  func.func @transform_1(%arg0: i32) -> (i32, i32) {
    %c0_i32 = arith.constant 0 : i32
    %c0_i32_0 = arith.constant 0 : i32
    %c0_i32_1 = arith.constant 0 : i32
    return %c0_i32, %c0_i32_0 : i32, i32
  }
  func.func @transform_2(%arg0: i32) -> (i32, i32) {
    %c0_i32 = arith.constant 0 : i32
    %c0_i32_0 = arith.constant 0 : i32
    %c0_i32_1 = arith.constant 0 : i32
    return %c0_i32, %c0_i32_0 : i32, i32
  }
  func.func @transform_3(%arg0: i32) -> (i32, i32) {
    %c0_i32 = arith.constant 0 : i32
    %c0_i32_0 = arith.constant 0 : i32
    return %arg0, %c0_i32 : i32, i32
  }
}

module attributes {stable_mosaic.version = 11 : i64} {
  func.func @_matmul_kernel(%arg0: i32, %arg1: i32, %arg2: i32, %arg3: memref<128x8xbf16, #tpu.memory_space<vmem>>, %arg4: memref<8x128xbf16, #tpu.memory_space<vmem>>, %arg5: memref<1x128xf32, #tpu.memory_space<vmem>>, %arg6: memref<128x128xf32, #tpu.memory_space<vmem>>, %arg7: memref<8x128xf32, #tpu.memory_space<vmem>>, %arg8: memref<8x128xf32, #tpu.memory_space<vmem>>, %arg9: memref<128x128xf32, #tpu.memory_space<vmem>>) attributes {dimension_semantics = [#tpu.dimension_semantics<parallel>, #tpu.dimension_semantics<parallel>, #tpu.dimension_semantics<arbitrary>], iteration_bounds = array<i64: 1, 1, 1>, scalar_prefetch = 0 : i64, scratch_operands = 1 : i64, tpu.core_type = #tpu.core_type<tc>, window_params = [{transform_indices = @transform_0, window_bounds = array<i64: 128, 8>}, {transform_indices = @transform_1, window_bounds = array<i64: 8, 128>}, {transform_indices = @transform_2, window_bounds = array<i64: 1, 128>}, {transform_indices = @transform_3, window_bounds = array<i64: 128, 128>}, {transform_indices = @transform_4, window_bounds = array<i64: 8, 128>}, {transform_indices = @transform_5, window_bounds = array<i64: 8, 128>}]} {
    %c0_i32 = arith.constant 0 : i32
    %0 = arith.cmpi eq, %arg2, %c0_i32 : i32
    %1 = arith.extui %0 : i1 to i32
    %c0_i32_0 = arith.constant 0 : i32
    %2 = arith.cmpi ne, %1, %c0_i32_0 : i32
    scf.if %2 {
      %cst_10 = arith.constant 0.000000e+00 : f32
      %12 = vector.broadcast %cst_10 : f32 to vector<128x128xf32>
      %c0_11 = arith.constant 0 : index
      %c0_12 = arith.constant 0 : index
      %13 = vector.load %arg9[%c0_11, %c0_12] : memref<128x128xf32, #tpu.memory_space<vmem>>, vector<128x128xf32>
      tpu.vector_store %arg9[%c0_11, %c0_12], %12 {strides = array<i32>} : memref<128x128xf32, #tpu.memory_space<vmem>>, vector<128x128xf32>,
    } else {
    }
    %c0 = arith.constant 0 : index
    %c0_1 = arith.constant 0 : index
    %3 = vector.load %arg9[%c0, %c0_1] : memref<128x128xf32, #tpu.memory_space<vmem>>, vector<128x128xf32>
    %c0_2 = arith.constant 0 : index
    %c0_3 = arith.constant 0 : index
    %4 = vector.load %arg3[%c0_2, %c0_3] : memref<128x8xbf16, #tpu.memory_space<vmem>>, vector<128x8xbf16>
    %c0_4 = arith.constant 0 : index
    %c0_5 = arith.constant 0 : index
    %5 = vector.load %arg4[%c0_4, %c0_5] : memref<8x128xbf16, #tpu.memory_space<vmem>>, vector<8x128xbf16>
    %cst = arith.constant dense<0.000000e+00> : vector<128x128xf32>
    %6 = tpu.matmul %4, %5, %cst {dimension_numbers = #tpu.dot_dimension_numbers<[1], [0], [0], [1], [0, 0, 1, 1], [], []>} : vector<128x8xbf16>, vector<8x128xbf16>, vector<128x128xf32> -> vector<128x128xf32>
    %7 = arith.addf %3, %6 : vector<128x128xf32>
    %c0_6 = arith.constant 0 : index
    %c0_7 = arith.constant 0 : index
    %8 = vector.load %arg9[%c0_6, %c0_7] : memref<128x128xf32, #tpu.memory_space<vmem>>, vector<128x128xf32>
    tpu.vector_store %arg9[%c0_6, %c0_7], %7 {strides = array<i32>} : memref<128x128xf32, #tpu.memory_space<vmem>>, vector<128x128xf32>,
    %c0_i32_8 = arith.constant 0 : i32
    %9 = arith.cmpi eq, %arg2, %c0_i32_8 : i32
    %10 = arith.extui %9 : i1 to i32
    %c0_i32_9 = arith.constant 0 : i32
    %11 = arith.cmpi ne, %10, %c0_i32_9 : i32
    scf.if %11 {
      %c0_10 = arith.constant 0 : index
      %c0_11 = arith.constant 0 : index
      %12 = vector.load %arg9[%c0_10, %c0_11] : memref<128x128xf32, #tpu.memory_space<vmem>>, vector<128x128xf32>
      %cst_12 = arith.constant dense<0.000000e+00> : vector<128xf32>
      %13 = vector.multi_reduction <add>, %12, %cst_12 [0] : vector<128x128xf32> to vector<128xf32>
      %14 = vector.shape_cast %13 : vector<128xf32> to vector<1x128xf32>
      %15 = arith.mulf %12, %12 : vector<128x128xf32>
      %cst_13 = arith.constant dense<0.000000e+00> : vector<128xf32>
      %16 = vector.multi_reduction <add>, %15, %cst_13 [0] : vector<128x128xf32> to vector<128xf32>
      %17 = vector.shape_cast %16 : vector<128xf32> to vector<1x128xf32>
      %18 = vector.shape_cast %14 : vector<1x128xf32> to vector<1x128xf32>
      %19 = vector.broadcast %18 : vector<1x128xf32> to vector<8x128xf32>
      %c0_14 = arith.constant 0 : index
      %c0_15 = arith.constant 0 : index
      %20 = vector.load %arg7[%c0_14, %c0_15] : memref<8x128xf32, #tpu.memory_space<vmem>>, vector<8x128xf32>
      tpu.vector_store %arg7[%c0_14, %c0_15], %19 {strides = array<i32>} : memref<8x128xf32, #tpu.memory_space<vmem>>, vector<8x128xf32>,
      %21 = vector.shape_cast %17 : vector<1x128xf32> to vector<1x128xf32>
      %22 = vector.broadcast %21 : vector<1x128xf32> to vector<8x128xf32>
      %c0_16 = arith.constant 0 : index
      %c0_17 = arith.constant 0 : index
      %23 = vector.load %arg8[%c0_16, %c0_17] : memref<8x128xf32, #tpu.memory_space<vmem>>, vector<8x128xf32>
      tpu.vector_store %arg8[%c0_16, %c0_17], %22 {strides = array<i32>} : memref<8x128xf32, #tpu.memory_space<vmem>>, vector<8x128xf32>,
      %c0_18 = arith.constant 0 : index
      %c0_19 = arith.constant 0 : index
      %24 = vector.load %arg5[%c0_18, %c0_19] : memref<1x128xf32, #tpu.memory_space<vmem>>, vector<1x128xf32>
      %25 = vector.broadcast %24 : vector<1x128xf32> to vector<128x128xf32>
      %26 = arith.addf %12, %25 : vector<128x128xf32>
      %c0_20 = arith.constant 0 : index
      %c0_21 = arith.constant 0 : index
      %27 = vector.load %arg6[%c0_20, %c0_21] : memref<128x128xf32, #tpu.memory_space<vmem>>, vector<128x128xf32>
      tpu.vector_store %arg6[%c0_20, %c0_21], %26 {strides = array<i32>} : memref<128x128xf32, #tpu.memory_space<vmem>>, vector<128x128xf32>,
    } else {
    }
    return
  }
  func.func @transform_0(%arg0: i32, %arg1: i32, %arg2: i32) -> (i32, i32) {
    %c0_i32 = arith.constant 0 : i32
    return %arg0, %arg2 : i32, i32
  }
  func.func @transform_1(%arg0: i32, %arg1: i32, %arg2: i32) -> (i32, i32) {
    %c0_i32 = arith.constant 0 : i32
    return %arg2, %arg1 : i32, i32
  }
  func.func @transform_2(%arg0: i32, %arg1: i32, %arg2: i32) -> (i32, i32) {
    %c0_i32 = arith.constant 0 : i32
    %c0_i32_0 = arith.constant 0 : i32
    return %c0_i32, %arg1 : i32, i32
  }
  func.func @transform_3(%arg0: i32, %arg1: i32, %arg2: i32) -> (i32, i32) {
    %c0_i32 = arith.constant 0 : i32
    return %arg0, %arg1 : i32, i32
  }
  func.func @transform_4(%arg0: i32, %arg1: i32, %arg2: i32) -> (i32, i32) {
    %c0_i32 = arith.constant 0 : i32
    return %arg0, %arg1 : i32, i32
  }
  func.func @transform_5(%arg0: i32, %arg1: i32, %arg2: i32) -> (i32, i32) {
    %c0_i32 = arith.constant 0 : i32
    return %arg0, %arg1 : i32, i32
  }
}

module attributes {stable_mosaic.version = 11 : i64} {
  func.func @_matmul_kernel(%arg0: i32, %arg1: i32, %arg2: i32, %arg3: memref<128x72xbf16, #tpu.memory_space<vmem>>, %arg4: memref<72x128xbf16, #tpu.memory_space<vmem>>, %arg5: memref<1x128xf32, #tpu.memory_space<vmem>>, %arg6: memref<128x128xf32, #tpu.memory_space<vmem>>, %arg7: memref<8x128xf32, #tpu.memory_space<vmem>>, %arg8: memref<8x128xf32, #tpu.memory_space<vmem>>, %arg9: memref<128x128xf32, #tpu.memory_space<vmem>>) attributes {dimension_semantics = [#tpu.dimension_semantics<parallel>, #tpu.dimension_semantics<parallel>, #tpu.dimension_semantics<arbitrary>], iteration_bounds = array<i64: 1, 1, 1>, scalar_prefetch = 0 : i64, scratch_operands = 1 : i64, tpu.core_type = #tpu.core_type<tc>, window_params = [{transform_indices = @transform_0, window_bounds = array<i64: 128, 72>}, {transform_indices = @transform_1, window_bounds = array<i64: 72, 128>}, {transform_indices = @transform_2, window_bounds = array<i64: 1, 128>}, {transform_indices = @transform_3, window_bounds = array<i64: 128, 128>}, {transform_indices = @transform_4, window_bounds = array<i64: 8, 128>}, {transform_indices = @transform_5, window_bounds = array<i64: 8, 128>}]} {
    %c0_i32 = arith.constant 0 : i32
    %0 = arith.cmpi eq, %arg2, %c0_i32 : i32
    %1 = arith.extui %0 : i1 to i32
    %c0_i32_0 = arith.constant 0 : i32
    %2 = arith.cmpi ne, %1, %c0_i32_0 : i32
    scf.if %2 {
      %cst_10 = arith.constant 0.000000e+00 : f32
      %12 = vector.broadcast %cst_10 : f32 to vector<128x128xf32>
      %c0_11 = arith.constant 0 : index
      %c0_12 = arith.constant 0 : index
      %13 = vector.load %arg9[%c0_11, %c0_12] : memref<128x128xf32, #tpu.memory_space<vmem>>, vector<128x128xf32>
      tpu.vector_store %arg9[%c0_11, %c0_12], %12 {strides = array<i32>} : memref<128x128xf32, #tpu.memory_space<vmem>>, vector<128x128xf32>,
    } else {
    }
    %c0 = arith.constant 0 : index
    %c0_1 = arith.constant 0 : index
    %3 = vector.load %arg9[%c0, %c0_1] : memref<128x128xf32, #tpu.memory_space<vmem>>, vector<128x128xf32>
    %c0_2 = arith.constant 0 : index
    %c0_3 = arith.constant 0 : index
    %4 = vector.load %arg3[%c0_2, %c0_3] : memref<128x72xbf16, #tpu.memory_space<vmem>>, vector<128x72xbf16>
    %c0_4 = arith.constant 0 : index
    %c0_5 = arith.constant 0 : index
    %5 = vector.load %arg4[%c0_4, %c0_5] : memref<72x128xbf16, #tpu.memory_space<vmem>>, vector<72x128xbf16>
    %cst = arith.constant dense<0.000000e+00> : vector<128x128xf32>
    %6 = tpu.matmul %4, %5, %cst {dimension_numbers = #tpu.dot_dimension_numbers<[1], [0], [0], [1], [0, 0, 1, 1], [], []>} : vector<128x72xbf16>, vector<72x128xbf16>, vector<128x128xf32> -> vector<128x128xf32>
    %7 = arith.addf %3, %6 : vector<128x128xf32>
    %c0_6 = arith.constant 0 : index
    %c0_7 = arith.constant 0 : index
    %8 = vector.load %arg9[%c0_6, %c0_7] : memref<128x128xf32, #tpu.memory_space<vmem>>, vector<128x128xf32>
    tpu.vector_store %arg9[%c0_6, %c0_7], %7 {strides = array<i32>} : memref<128x128xf32, #tpu.memory_space<vmem>>, vector<128x128xf32>,
    %c0_i32_8 = arith.constant 0 : i32
    %9 = arith.cmpi eq, %arg2, %c0_i32_8 : i32
    %10 = arith.extui %9 : i1 to i32
    %c0_i32_9 = arith.constant 0 : i32
    %11 = arith.cmpi ne, %10, %c0_i32_9 : i32
    scf.if %11 {
      %c0_10 = arith.constant 0 : index
      %c0_11 = arith.constant 0 : index
      %12 = vector.load %arg9[%c0_10, %c0_11] : memref<128x128xf32, #tpu.memory_space<vmem>>, vector<128x128xf32>
      %cst_12 = arith.constant dense<0.000000e+00> : vector<128xf32>
      %13 = vector.multi_reduction <add>, %12, %cst_12 [0] : vector<128x128xf32> to vector<128xf32>
      %14 = vector.shape_cast %13 : vector<128xf32> to vector<1x128xf32>
      %15 = arith.mulf %12, %12 : vector<128x128xf32>
      %cst_13 = arith.constant dense<0.000000e+00> : vector<128xf32>
      %16 = vector.multi_reduction <add>, %15, %cst_13 [0] : vector<128x128xf32> to vector<128xf32>
      %17 = vector.shape_cast %16 : vector<128xf32> to vector<1x128xf32>
      %18 = vector.shape_cast %14 : vector<1x128xf32> to vector<1x128xf32>
      %19 = vector.broadcast %18 : vector<1x128xf32> to vector<8x128xf32>
      %c0_14 = arith.constant 0 : index
      %c0_15 = arith.constant 0 : index
      %20 = vector.load %arg7[%c0_14, %c0_15] : memref<8x128xf32, #tpu.memory_space<vmem>>, vector<8x128xf32>
      tpu.vector_store %arg7[%c0_14, %c0_15], %19 {strides = array<i32>} : memref<8x128xf32, #tpu.memory_space<vmem>>, vector<8x128xf32>,
      %21 = vector.shape_cast %17 : vector<1x128xf32> to vector<1x128xf32>
      %22 = vector.broadcast %21 : vector<1x128xf32> to vector<8x128xf32>
      %c0_16 = arith.constant 0 : index
      %c0_17 = arith.constant 0 : index
      %23 = vector.load %arg8[%c0_16, %c0_17] : memref<8x128xf32, #tpu.memory_space<vmem>>, vector<8x128xf32>
      tpu.vector_store %arg8[%c0_16, %c0_17], %22 {strides = array<i32>} : memref<8x128xf32, #tpu.memory_space<vmem>>, vector<8x128xf32>,
      %c0_18 = arith.constant 0 : index
      %c0_19 = arith.constant 0 : index
      %24 = vector.load %arg5[%c0_18, %c0_19] : memref<1x128xf32, #tpu.memory_space<vmem>>, vector<1x128xf32>
      %25 = vector.broadcast %24 : vector<1x128xf32> to vector<128x128xf32>
      %26 = arith.addf %12, %25 : vector<128x128xf32>
      %c0_20 = arith.constant 0 : index
      %c0_21 = arith.constant 0 : index
      %27 = vector.load %arg6[%c0_20, %c0_21] : memref<128x128xf32, #tpu.memory_space<vmem>>, vector<128x128xf32>
      tpu.vector_store %arg6[%c0_20, %c0_21], %26 {strides = array<i32>} : memref<128x128xf32, #tpu.memory_space<vmem>>, vector<128x128xf32>,
    } else {
    }
    return
  }
  func.func @transform_0(%arg0: i32, %arg1: i32, %arg2: i32) -> (i32, i32) {
    %c0_i32 = arith.constant 0 : i32
    return %arg0, %arg2 : i32, i32
  }
  func.func @transform_1(%arg0: i32, %arg1: i32, %arg2: i32) -> (i32, i32) {
    %c0_i32 = arith.constant 0 : i32
    return %arg2, %arg1 : i32, i32
  }
  func.func @transform_2(%arg0: i32, %arg1: i32, %arg2: i32) -> (i32, i32) {
    %c0_i32 = arith.constant 0 : i32
    %c0_i32_0 = arith.constant 0 : i32
    return %c0_i32, %arg1 : i32, i32
  }
  func.func @transform_3(%arg0: i32, %arg1: i32, %arg2: i32) -> (i32, i32) {
    %c0_i32 = arith.constant 0 : i32
    return %arg0, %arg1 : i32, i32
  }
  func.func @transform_4(%arg0: i32, %arg1: i32, %arg2: i32) -> (i32, i32) {
    %c0_i32 = arith.constant 0 : i32
    return %arg0, %arg1 : i32, i32
  }
  func.func @transform_5(%arg0: i32, %arg1: i32, %arg2: i32) -> (i32, i32) {
    %c0_i32 = arith.constant 0 : i32
    return %arg0, %arg1 : i32, i32
  }
}

module attributes {stable_mosaic.version = 11 : i64} {
  func.func @_affine_kernel(%arg0: i32, %arg1: memref<128x128xf32, #tpu.memory_space<vmem>>, %arg2: memref<1x128xf32, #tpu.memory_space<vmem>>, %arg3: memref<1x128xf32, #tpu.memory_space<vmem>>, %arg4: memref<128x128xf32, #tpu.memory_space<vmem>>) attributes {dimension_semantics = [#tpu.dimension_semantics<parallel>], iteration_bounds = array<i64: 1>, scalar_prefetch = 0 : i64, scratch_operands = 0 : i64, tpu.core_type = #tpu.core_type<tc>, window_params = [{transform_indices = @transform_0, window_bounds = array<i64: 128, 128>}, {pipeline_mode = #tpu.pipeline_mode<synchronous>, transform_indices = @transform_1, window_bounds = array<i64: 1, 128>}, {pipeline_mode = #tpu.pipeline_mode<synchronous>, transform_indices = @transform_2, window_bounds = array<i64: 1, 128>}, {transform_indices = @transform_3, window_bounds = array<i64: 128, 128>}]} {
    %c0 = arith.constant 0 : index
    %c0_0 = arith.constant 0 : index
    %0 = vector.load %arg1[%c0, %c0_0] : memref<128x128xf32, #tpu.memory_space<vmem>>, vector<128x128xf32>
    %c0_1 = arith.constant 0 : index
    %c0_2 = arith.constant 0 : index
    %1 = vector.load %arg2[%c0_1, %c0_2] : memref<1x128xf32, #tpu.memory_space<vmem>>, vector<1x128xf32>
    %2 = vector.broadcast %1 : vector<1x128xf32> to vector<128x128xf32>
    %3 = arith.mulf %0, %2 : vector<128x128xf32>
    %c0_3 = arith.constant 0 : index
    %c0_4 = arith.constant 0 : index
    %4 = vector.load %arg3[%c0_3, %c0_4] : memref<1x128xf32, #tpu.memory_space<vmem>>, vector<1x128xf32>
    %5 = vector.broadcast %4 : vector<1x128xf32> to vector<128x128xf32>
    %6 = arith.addf %3, %5 : vector<128x128xf32>
    %cst = arith.constant 0.000000e+00 : f32
    %7 = vector.broadcast %cst : f32 to vector<128x128xf32>
    %8 = arith.maximumf %6, %7 : vector<128x128xf32>
    %c0_5 = arith.constant 0 : index
    %c0_6 = arith.constant 0 : index
    %9 = vector.load %arg4[%c0_5, %c0_6] : memref<128x128xf32, #tpu.memory_space<vmem>>, vector<128x128xf32>
    tpu.vector_store %arg4[%c0_5, %c0_6], %8 {strides = array<i32>} : memref<128x128xf32, #tpu.memory_space<vmem>>, vector<128x128xf32>,
    return
  }
  func.func @transform_0(%arg0: i32) -> (i32, i32) {
    %c0_i32 = arith.constant 0 : i32
    %c0_i32_0 = arith.constant 0 : i32
    return %arg0, %c0_i32 : i32, i32
  }
  func.func @transform_1(%arg0: i32) -> (i32, i32) {
    %c0_i32 = arith.constant 0 : i32
    %c0_i32_0 = arith.constant 0 : i32
    %c0_i32_1 = arith.constant 0 : i32
    return %c0_i32, %c0_i32_0 : i32, i32
  }
  func.func @transform_2(%arg0: i32) -> (i32, i32) {
    %c0_i32 = arith.constant 0 : i32
    %c0_i32_0 = arith.constant 0 : i32
    %c0_i32_1 = arith.constant 0 : i32
    return %c0_i32, %c0_i32_0 : i32, i32
  }
  func.func @transform_3(%arg0: i32) -> (i32, i32) {
    %c0_i32 = arith.constant 0 : i32
    %c0_i32_0 = arith.constant 0 : i32
    return %arg0, %c0_i32 : i32, i32
  }
}

module attributes {stable_mosaic.version = 11 : i64} {
  func.func @_affine_res_kernel(%arg0: i32, %arg1: memref<128x128xf32, #tpu.memory_space<vmem>>, %arg2: memref<128x128xf32, #tpu.memory_space<vmem>>, %arg3: memref<1x128xf32, #tpu.memory_space<vmem>>, %arg4: memref<1x128xf32, #tpu.memory_space<vmem>>, %arg5: memref<128x128xf32, #tpu.memory_space<vmem>>) attributes {dimension_semantics = [#tpu.dimension_semantics<parallel>], iteration_bounds = array<i64: 1>, scalar_prefetch = 0 : i64, scratch_operands = 0 : i64, tpu.core_type = #tpu.core_type<tc>, window_params = [{transform_indices = @transform_0, window_bounds = array<i64: 128, 128>}, {transform_indices = @transform_1, window_bounds = array<i64: 128, 128>}, {pipeline_mode = #tpu.pipeline_mode<synchronous>, transform_indices = @transform_2, window_bounds = array<i64: 1, 128>}, {pipeline_mode = #tpu.pipeline_mode<synchronous>, transform_indices = @transform_3, window_bounds = array<i64: 1, 128>}, {transform_indices = @transform_4, window_bounds = array<i64: 128, 128>}]} {
    %c0 = arith.constant 0 : index
    %c0_0 = arith.constant 0 : index
    %0 = vector.load %arg1[%c0, %c0_0] : memref<128x128xf32, #tpu.memory_space<vmem>>, vector<128x128xf32>
    %c0_1 = arith.constant 0 : index
    %c0_2 = arith.constant 0 : index
    %1 = vector.load %arg3[%c0_1, %c0_2] : memref<1x128xf32, #tpu.memory_space<vmem>>, vector<1x128xf32>
    %2 = vector.broadcast %1 : vector<1x128xf32> to vector<128x128xf32>
    %3 = arith.mulf %0, %2 : vector<128x128xf32>
    %c0_3 = arith.constant 0 : index
    %c0_4 = arith.constant 0 : index
    %4 = vector.load %arg4[%c0_3, %c0_4] : memref<1x128xf32, #tpu.memory_space<vmem>>, vector<1x128xf32>
    %5 = vector.broadcast %4 : vector<1x128xf32> to vector<128x128xf32>
    %6 = arith.addf %3, %5 : vector<128x128xf32>
    %c0_5 = arith.constant 0 : index
    %c0_6 = arith.constant 0 : index
    %7 = vector.load %arg2[%c0_5, %c0_6] : memref<128x128xf32, #tpu.memory_space<vmem>>, vector<128x128xf32>
    %8 = arith.addf %6, %7 : vector<128x128xf32>
    %cst = arith.constant 0.000000e+00 : f32
    %9 = vector.broadcast %cst : f32 to vector<128x128xf32>
    %10 = arith.maximumf %8, %9 : vector<128x128xf32>
    %c0_7 = arith.constant 0 : index
    %c0_8 = arith.constant 0 : index
    %11 = vector.load %arg5[%c0_7, %c0_8] : memref<128x128xf32, #tpu.memory_space<vmem>>, vector<128x128xf32>
    tpu.vector_store %arg5[%c0_7, %c0_8], %10 {strides = array<i32>} : memref<128x128xf32, #tpu.memory_space<vmem>>, vector<128x128xf32>,
    return
  }
  func.func @transform_0(%arg0: i32) -> (i32, i32) {
    %c0_i32 = arith.constant 0 : i32
    %c0_i32_0 = arith.constant 0 : i32
    return %arg0, %c0_i32 : i32, i32
  }
  func.func @transform_1(%arg0: i32) -> (i32, i32) {
    %c0_i32 = arith.constant 0 : i32
    %c0_i32_0 = arith.constant 0 : i32
    return %arg0, %c0_i32 : i32, i32
  }
  func.func @transform_2(%arg0: i32) -> (i32, i32) {
    %c0_i32 = arith.constant 0 : i32
    %c0_i32_0 = arith.constant 0 : i32
    %c0_i32_1 = arith.constant 0 : i32
    return %c0_i32, %c0_i32_0 : i32, i32
  }
  func.func @transform_3(%arg0: i32) -> (i32, i32) {
    %c0_i32 = arith.constant 0 : i32
    %c0_i32_0 = arith.constant 0 : i32
    %c0_i32_1 = arith.constant 0 : i32
    return %c0_i32, %c0_i32_0 : i32, i32
  }
  func.func @transform_4(%arg0: i32) -> (i32, i32) {
    %c0_i32 = arith.constant 0 : i32
    %c0_i32_0 = arith.constant 0 : i32
    return %arg0, %c0_i32 : i32, i32
  }
}

module attributes {stable_mosaic.version = 11 : i64} {
  func.func @_matmul_kernel(%arg0: i32, %arg1: i32, %arg2: i32, %arg3: memref<128x144xbf16, #tpu.memory_space<vmem>>, %arg4: memref<144x128xbf16, #tpu.memory_space<vmem>>, %arg5: memref<1x128xf32, #tpu.memory_space<vmem>>, %arg6: memref<128x128xf32, #tpu.memory_space<vmem>>, %arg7: memref<8x128xf32, #tpu.memory_space<vmem>>, %arg8: memref<8x128xf32, #tpu.memory_space<vmem>>, %arg9: memref<128x128xf32, #tpu.memory_space<vmem>>) attributes {dimension_semantics = [#tpu.dimension_semantics<parallel>, #tpu.dimension_semantics<parallel>, #tpu.dimension_semantics<arbitrary>], iteration_bounds = array<i64: 1, 1, 1>, scalar_prefetch = 0 : i64, scratch_operands = 1 : i64, tpu.core_type = #tpu.core_type<tc>, window_params = [{transform_indices = @transform_0, window_bounds = array<i64: 128, 144>}, {transform_indices = @transform_1, window_bounds = array<i64: 144, 128>}, {transform_indices = @transform_2, window_bounds = array<i64: 1, 128>}, {transform_indices = @transform_3, window_bounds = array<i64: 128, 128>}, {transform_indices = @transform_4, window_bounds = array<i64: 8, 128>}, {transform_indices = @transform_5, window_bounds = array<i64: 8, 128>}]} {
    %c0_i32 = arith.constant 0 : i32
    %0 = arith.cmpi eq, %arg2, %c0_i32 : i32
    %1 = arith.extui %0 : i1 to i32
    %c0_i32_0 = arith.constant 0 : i32
    %2 = arith.cmpi ne, %1, %c0_i32_0 : i32
    scf.if %2 {
      %cst_10 = arith.constant 0.000000e+00 : f32
      %12 = vector.broadcast %cst_10 : f32 to vector<128x128xf32>
      %c0_11 = arith.constant 0 : index
      %c0_12 = arith.constant 0 : index
      %13 = vector.load %arg9[%c0_11, %c0_12] : memref<128x128xf32, #tpu.memory_space<vmem>>, vector<128x128xf32>
      tpu.vector_store %arg9[%c0_11, %c0_12], %12 {strides = array<i32>} : memref<128x128xf32, #tpu.memory_space<vmem>>, vector<128x128xf32>,
    } else {
    }
    %c0 = arith.constant 0 : index
    %c0_1 = arith.constant 0 : index
    %3 = vector.load %arg9[%c0, %c0_1] : memref<128x128xf32, #tpu.memory_space<vmem>>, vector<128x128xf32>
    %c0_2 = arith.constant 0 : index
    %c0_3 = arith.constant 0 : index
    %4 = vector.load %arg3[%c0_2, %c0_3] : memref<128x144xbf16, #tpu.memory_space<vmem>>, vector<128x144xbf16>
    %c0_4 = arith.constant 0 : index
    %c0_5 = arith.constant 0 : index
    %5 = vector.load %arg4[%c0_4, %c0_5] : memref<144x128xbf16, #tpu.memory_space<vmem>>, vector<144x128xbf16>
    %cst = arith.constant dense<0.000000e+00> : vector<128x128xf32>
    %6 = tpu.matmul %4, %5, %cst {dimension_numbers = #tpu.dot_dimension_numbers<[1], [0], [0], [1], [0, 0, 1, 1], [], []>} : vector<128x144xbf16>, vector<144x128xbf16>, vector<128x128xf32> -> vector<128x128xf32>
    %7 = arith.addf %3, %6 : vector<128x128xf32>
    %c0_6 = arith.constant 0 : index
    %c0_7 = arith.constant 0 : index
    %8 = vector.load %arg9[%c0_6, %c0_7] : memref<128x128xf32, #tpu.memory_space<vmem>>, vector<128x128xf32>
    tpu.vector_store %arg9[%c0_6, %c0_7], %7 {strides = array<i32>} : memref<128x128xf32, #tpu.memory_space<vmem>>, vector<128x128xf32>,
    %c0_i32_8 = arith.constant 0 : i32
    %9 = arith.cmpi eq, %arg2, %c0_i32_8 : i32
    %10 = arith.extui %9 : i1 to i32
    %c0_i32_9 = arith.constant 0 : i32
    %11 = arith.cmpi ne, %10, %c0_i32_9 : i32
    scf.if %11 {
      %c0_10 = arith.constant 0 : index
      %c0_11 = arith.constant 0 : index
      %12 = vector.load %arg9[%c0_10, %c0_11] : memref<128x128xf32, #tpu.memory_space<vmem>>, vector<128x128xf32>
      %cst_12 = arith.constant dense<0.000000e+00> : vector<128xf32>
      %13 = vector.multi_reduction <add>, %12, %cst_12 [0] : vector<128x128xf32> to vector<128xf32>
      %14 = vector.shape_cast %13 : vector<128xf32> to vector<1x128xf32>
      %15 = arith.mulf %12, %12 : vector<128x128xf32>
      %cst_13 = arith.constant dense<0.000000e+00> : vector<128xf32>
      %16 = vector.multi_reduction <add>, %15, %cst_13 [0] : vector<128x128xf32> to vector<128xf32>
      %17 = vector.shape_cast %16 : vector<128xf32> to vector<1x128xf32>
      %18 = vector.shape_cast %14 : vector<1x128xf32> to vector<1x128xf32>
      %19 = vector.broadcast %18 : vector<1x128xf32> to vector<8x128xf32>
      %c0_14 = arith.constant 0 : index
      %c0_15 = arith.constant 0 : index
      %20 = vector.load %arg7[%c0_14, %c0_15] : memref<8x128xf32, #tpu.memory_space<vmem>>, vector<8x128xf32>
      tpu.vector_store %arg7[%c0_14, %c0_15], %19 {strides = array<i32>} : memref<8x128xf32, #tpu.memory_space<vmem>>, vector<8x128xf32>,
      %21 = vector.shape_cast %17 : vector<1x128xf32> to vector<1x128xf32>
      %22 = vector.broadcast %21 : vector<1x128xf32> to vector<8x128xf32>
      %c0_16 = arith.constant 0 : index
      %c0_17 = arith.constant 0 : index
      %23 = vector.load %arg8[%c0_16, %c0_17] : memref<8x128xf32, #tpu.memory_space<vmem>>, vector<8x128xf32>
      tpu.vector_store %arg8[%c0_16, %c0_17], %22 {strides = array<i32>} : memref<8x128xf32, #tpu.memory_space<vmem>>, vector<8x128xf32>,
      %c0_18 = arith.constant 0 : index
      %c0_19 = arith.constant 0 : index
      %24 = vector.load %arg5[%c0_18, %c0_19] : memref<1x128xf32, #tpu.memory_space<vmem>>, vector<1x128xf32>
      %25 = vector.broadcast %24 : vector<1x128xf32> to vector<128x128xf32>
      %26 = arith.addf %12, %25 : vector<128x128xf32>
      %c0_20 = arith.constant 0 : index
      %c0_21 = arith.constant 0 : index
      %27 = vector.load %arg6[%c0_20, %c0_21] : memref<128x128xf32, #tpu.memory_space<vmem>>, vector<128x128xf32>
      tpu.vector_store %arg6[%c0_20, %c0_21], %26 {strides = array<i32>} : memref<128x128xf32, #tpu.memory_space<vmem>>, vector<128x128xf32>,
    } else {
    }
    return
  }
  func.func @transform_0(%arg0: i32, %arg1: i32, %arg2: i32) -> (i32, i32) {
    %c0_i32 = arith.constant 0 : i32
    return %arg0, %arg2 : i32, i32
  }
  func.func @transform_1(%arg0: i32, %arg1: i32, %arg2: i32) -> (i32, i32) {
    %c0_i32 = arith.constant 0 : i32
    return %arg2, %arg1 : i32, i32
  }
  func.func @transform_2(%arg0: i32, %arg1: i32, %arg2: i32) -> (i32, i32) {
    %c0_i32 = arith.constant 0 : i32
    %c0_i32_0 = arith.constant 0 : i32
    return %c0_i32, %arg1 : i32, i32
  }
  func.func @transform_3(%arg0: i32, %arg1: i32, %arg2: i32) -> (i32, i32) {
    %c0_i32 = arith.constant 0 : i32
    return %arg0, %arg1 : i32, i32
  }
  func.func @transform_4(%arg0: i32, %arg1: i32, %arg2: i32) -> (i32, i32) {
    %c0_i32 = arith.constant 0 : i32
    return %arg0, %arg1 : i32, i32
  }
  func.func @transform_5(%arg0: i32, %arg1: i32, %arg2: i32) -> (i32, i32) {
    %c0_i32 = arith.constant 0 : i32
    return %arg0, %arg1 : i32, i32
  }
}

module attributes {stable_mosaic.version = 11 : i64} {
  func.func @_matmul_kernel(%arg0: i32, %arg1: i32, %arg2: i32, %arg3: memref<128x16xbf16, #tpu.memory_space<vmem>>, %arg4: memref<16x128xbf16, #tpu.memory_space<vmem>>, %arg5: memref<1x128xf32, #tpu.memory_space<vmem>>, %arg6: memref<128x128xf32, #tpu.memory_space<vmem>>, %arg7: memref<8x128xf32, #tpu.memory_space<vmem>>, %arg8: memref<8x128xf32, #tpu.memory_space<vmem>>, %arg9: memref<128x128xf32, #tpu.memory_space<vmem>>) attributes {dimension_semantics = [#tpu.dimension_semantics<parallel>, #tpu.dimension_semantics<parallel>, #tpu.dimension_semantics<arbitrary>], iteration_bounds = array<i64: 1, 1, 1>, scalar_prefetch = 0 : i64, scratch_operands = 1 : i64, tpu.core_type = #tpu.core_type<tc>, window_params = [{transform_indices = @transform_0, window_bounds = array<i64: 128, 16>}, {transform_indices = @transform_1, window_bounds = array<i64: 16, 128>}, {transform_indices = @transform_2, window_bounds = array<i64: 1, 128>}, {transform_indices = @transform_3, window_bounds = array<i64: 128, 128>}, {transform_indices = @transform_4, window_bounds = array<i64: 8, 128>}, {transform_indices = @transform_5, window_bounds = array<i64: 8, 128>}]} {
    %c0_i32 = arith.constant 0 : i32
    %0 = arith.cmpi eq, %arg2, %c0_i32 : i32
    %1 = arith.extui %0 : i1 to i32
    %c0_i32_0 = arith.constant 0 : i32
    %2 = arith.cmpi ne, %1, %c0_i32_0 : i32
    scf.if %2 {
      %cst_10 = arith.constant 0.000000e+00 : f32
      %12 = vector.broadcast %cst_10 : f32 to vector<128x128xf32>
      %c0_11 = arith.constant 0 : index
      %c0_12 = arith.constant 0 : index
      %13 = vector.load %arg9[%c0_11, %c0_12] : memref<128x128xf32, #tpu.memory_space<vmem>>, vector<128x128xf32>
      tpu.vector_store %arg9[%c0_11, %c0_12], %12 {strides = array<i32>} : memref<128x128xf32, #tpu.memory_space<vmem>>, vector<128x128xf32>,
    } else {
    }
    %c0 = arith.constant 0 : index
    %c0_1 = arith.constant 0 : index
    %3 = vector.load %arg9[%c0, %c0_1] : memref<128x128xf32, #tpu.memory_space<vmem>>, vector<128x128xf32>
    %c0_2 = arith.constant 0 : index
    %c0_3 = arith.constant 0 : index
    %4 = vector.load %arg3[%c0_2, %c0_3] : memref<128x16xbf16, #tpu.memory_space<vmem>>, vector<128x16xbf16>
    %c0_4 = arith.constant 0 : index
    %c0_5 = arith.constant 0 : index
    %5 = vector.load %arg4[%c0_4, %c0_5] : memref<16x128xbf16, #tpu.memory_space<vmem>>, vector<16x128xbf16>
    %cst = arith.constant dense<0.000000e+00> : vector<128x128xf32>
    %6 = tpu.matmul %4, %5, %cst {dimension_numbers = #tpu.dot_dimension_numbers<[1], [0], [0], [1], [0, 0, 1, 1], [], []>} : vector<128x16xbf16>, vector<16x128xbf16>, vector<128x128xf32> -> vector<128x128xf32>
    %7 = arith.addf %3, %6 : vector<128x128xf32>
    %c0_6 = arith.constant 0 : index
    %c0_7 = arith.constant 0 : index
    %8 = vector.load %arg9[%c0_6, %c0_7] : memref<128x128xf32, #tpu.memory_space<vmem>>, vector<128x128xf32>
    tpu.vector_store %arg9[%c0_6, %c0_7], %7 {strides = array<i32>} : memref<128x128xf32, #tpu.memory_space<vmem>>, vector<128x128xf32>,
    %c0_i32_8 = arith.constant 0 : i32
    %9 = arith.cmpi eq, %arg2, %c0_i32_8 : i32
    %10 = arith.extui %9 : i1 to i32
    %c0_i32_9 = arith.constant 0 : i32
    %11 = arith.cmpi ne, %10, %c0_i32_9 : i32
    scf.if %11 {
      %c0_10 = arith.constant 0 : index
      %c0_11 = arith.constant 0 : index
      %12 = vector.load %arg9[%c0_10, %c0_11] : memref<128x128xf32, #tpu.memory_space<vmem>>, vector<128x128xf32>
      %cst_12 = arith.constant dense<0.000000e+00> : vector<128xf32>
      %13 = vector.multi_reduction <add>, %12, %cst_12 [0] : vector<128x128xf32> to vector<128xf32>
      %14 = vector.shape_cast %13 : vector<128xf32> to vector<1x128xf32>
      %15 = arith.mulf %12, %12 : vector<128x128xf32>
      %cst_13 = arith.constant dense<0.000000e+00> : vector<128xf32>
      %16 = vector.multi_reduction <add>, %15, %cst_13 [0] : vector<128x128xf32> to vector<128xf32>
      %17 = vector.shape_cast %16 : vector<128xf32> to vector<1x128xf32>
      %18 = vector.shape_cast %14 : vector<1x128xf32> to vector<1x128xf32>
      %19 = vector.broadcast %18 : vector<1x128xf32> to vector<8x128xf32>
      %c0_14 = arith.constant 0 : index
      %c0_15 = arith.constant 0 : index
      %20 = vector.load %arg7[%c0_14, %c0_15] : memref<8x128xf32, #tpu.memory_space<vmem>>, vector<8x128xf32>
      tpu.vector_store %arg7[%c0_14, %c0_15], %19 {strides = array<i32>} : memref<8x128xf32, #tpu.memory_space<vmem>>, vector<8x128xf32>,
      %21 = vector.shape_cast %17 : vector<1x128xf32> to vector<1x128xf32>
      %22 = vector.broadcast %21 : vector<1x128xf32> to vector<8x128xf32>
      %c0_16 = arith.constant 0 : index
      %c0_17 = arith.constant 0 : index
      %23 = vector.load %arg8[%c0_16, %c0_17] : memref<8x128xf32, #tpu.memory_space<vmem>>, vector<8x128xf32>
      tpu.vector_store %arg8[%c0_16, %c0_17], %22 {strides = array<i32>} : memref<8x128xf32, #tpu.memory_space<vmem>>, vector<8x128xf32>,
      %c0_18 = arith.constant 0 : index
      %c0_19 = arith.constant 0 : index
      %24 = vector.load %arg5[%c0_18, %c0_19] : memref<1x128xf32, #tpu.memory_space<vmem>>, vector<1x128xf32>
      %25 = vector.broadcast %24 : vector<1x128xf32> to vector<128x128xf32>
      %26 = arith.addf %12, %25 : vector<128x128xf32>
      %c0_20 = arith.constant 0 : index
      %c0_21 = arith.constant 0 : index
      %27 = vector.load %arg6[%c0_20, %c0_21] : memref<128x128xf32, #tpu.memory_space<vmem>>, vector<128x128xf32>
      tpu.vector_store %arg6[%c0_20, %c0_21], %26 {strides = array<i32>} : memref<128x128xf32, #tpu.memory_space<vmem>>, vector<128x128xf32>,
    } else {
    }
    return
  }
  func.func @transform_0(%arg0: i32, %arg1: i32, %arg2: i32) -> (i32, i32) {
    %c0_i32 = arith.constant 0 : i32
    return %arg0, %arg2 : i32, i32
  }
  func.func @transform_1(%arg0: i32, %arg1: i32, %arg2: i32) -> (i32, i32) {
    %c0_i32 = arith.constant 0 : i32
    return %arg2, %arg1 : i32, i32
  }
  func.func @transform_2(%arg0: i32, %arg1: i32, %arg2: i32) -> (i32, i32) {
    %c0_i32 = arith.constant 0 : i32
    %c0_i32_0 = arith.constant 0 : i32
    return %c0_i32, %arg1 : i32, i32
  }
  func.func @transform_3(%arg0: i32, %arg1: i32, %arg2: i32) -> (i32, i32) {
    %c0_i32 = arith.constant 0 : i32
    return %arg0, %arg1 : i32, i32
  }
  func.func @transform_4(%arg0: i32, %arg1: i32, %arg2: i32) -> (i32, i32) {
    %c0_i32 = arith.constant 0 : i32
    return %arg0, %arg1 : i32, i32
  }
  func.func @transform_5(%arg0: i32, %arg1: i32, %arg2: i32) -> (i32, i32) {
    %c0_i32 = arith.constant 0 : i32
    return %arg0, %arg1 : i32, i32
  }
}

module attributes {stable_mosaic.version = 11 : i64} {
  func.func @_matmul_kernel(%arg0: i32, %arg1: i32, %arg2: i32, %arg3: memref<32x16xbf16, #tpu.memory_space<vmem>>, %arg4: memref<16x128xbf16, #tpu.memory_space<vmem>>, %arg5: memref<1x128xf32, #tpu.memory_space<vmem>>, %arg6: memref<32x128xf32, #tpu.memory_space<vmem>>, %arg7: memref<8x128xf32, #tpu.memory_space<vmem>>, %arg8: memref<8x128xf32, #tpu.memory_space<vmem>>, %arg9: memref<32x128xf32, #tpu.memory_space<vmem>>) attributes {dimension_semantics = [#tpu.dimension_semantics<parallel>, #tpu.dimension_semantics<parallel>, #tpu.dimension_semantics<arbitrary>], iteration_bounds = array<i64: 1, 1, 1>, scalar_prefetch = 0 : i64, scratch_operands = 1 : i64, tpu.core_type = #tpu.core_type<tc>, window_params = [{transform_indices = @transform_0, window_bounds = array<i64: 32, 16>}, {transform_indices = @transform_1, window_bounds = array<i64: 16, 128>}, {transform_indices = @transform_2, window_bounds = array<i64: 1, 128>}, {transform_indices = @transform_3, window_bounds = array<i64: 32, 128>}, {transform_indices = @transform_4, window_bounds = array<i64: 8, 128>}, {transform_indices = @transform_5, window_bounds = array<i64: 8, 128>}]} {
    %c0_i32 = arith.constant 0 : i32
    %0 = arith.cmpi eq, %arg2, %c0_i32 : i32
    %1 = arith.extui %0 : i1 to i32
    %c0_i32_0 = arith.constant 0 : i32
    %2 = arith.cmpi ne, %1, %c0_i32_0 : i32
    scf.if %2 {
      %cst_10 = arith.constant 0.000000e+00 : f32
      %12 = vector.broadcast %cst_10 : f32 to vector<32x128xf32>
      %c0_11 = arith.constant 0 : index
      %c0_12 = arith.constant 0 : index
      %13 = vector.load %arg9[%c0_11, %c0_12] : memref<32x128xf32, #tpu.memory_space<vmem>>, vector<32x128xf32>
      tpu.vector_store %arg9[%c0_11, %c0_12], %12 {strides = array<i32>} : memref<32x128xf32, #tpu.memory_space<vmem>>, vector<32x128xf32>,
    } else {
    }
    %c0 = arith.constant 0 : index
    %c0_1 = arith.constant 0 : index
    %3 = vector.load %arg9[%c0, %c0_1] : memref<32x128xf32, #tpu.memory_space<vmem>>, vector<32x128xf32>
    %c0_2 = arith.constant 0 : index
    %c0_3 = arith.constant 0 : index
    %4 = vector.load %arg3[%c0_2, %c0_3] : memref<32x16xbf16, #tpu.memory_space<vmem>>, vector<32x16xbf16>
    %c0_4 = arith.constant 0 : index
    %c0_5 = arith.constant 0 : index
    %5 = vector.load %arg4[%c0_4, %c0_5] : memref<16x128xbf16, #tpu.memory_space<vmem>>, vector<16x128xbf16>
    %cst = arith.constant dense<0.000000e+00> : vector<32x128xf32>
    %6 = tpu.matmul %4, %5, %cst {dimension_numbers = #tpu.dot_dimension_numbers<[1], [0], [0], [1], [0, 0, 1, 1], [], []>} : vector<32x16xbf16>, vector<16x128xbf16>, vector<32x128xf32> -> vector<32x128xf32>
    %7 = arith.addf %3, %6 : vector<32x128xf32>
    %c0_6 = arith.constant 0 : index
    %c0_7 = arith.constant 0 : index
    %8 = vector.load %arg9[%c0_6, %c0_7] : memref<32x128xf32, #tpu.memory_space<vmem>>, vector<32x128xf32>
    tpu.vector_store %arg9[%c0_6, %c0_7], %7 {strides = array<i32>} : memref<32x128xf32, #tpu.memory_space<vmem>>, vector<32x128xf32>,
    %c0_i32_8 = arith.constant 0 : i32
    %9 = arith.cmpi eq, %arg2, %c0_i32_8 : i32
    %10 = arith.extui %9 : i1 to i32
    %c0_i32_9 = arith.constant 0 : i32
    %11 = arith.cmpi ne, %10, %c0_i32_9 : i32
    scf.if %11 {
      %c0_10 = arith.constant 0 : index
      %c0_11 = arith.constant 0 : index
      %12 = vector.load %arg9[%c0_10, %c0_11] : memref<32x128xf32, #tpu.memory_space<vmem>>, vector<32x128xf32>
      %cst_12 = arith.constant dense<0.000000e+00> : vector<128xf32>
      %13 = vector.multi_reduction <add>, %12, %cst_12 [0] : vector<32x128xf32> to vector<128xf32>
      %14 = vector.shape_cast %13 : vector<128xf32> to vector<1x128xf32>
      %15 = arith.mulf %12, %12 : vector<32x128xf32>
      %cst_13 = arith.constant dense<0.000000e+00> : vector<128xf32>
      %16 = vector.multi_reduction <add>, %15, %cst_13 [0] : vector<32x128xf32> to vector<128xf32>
      %17 = vector.shape_cast %16 : vector<128xf32> to vector<1x128xf32>
      %18 = vector.shape_cast %14 : vector<1x128xf32> to vector<1x128xf32>
      %19 = vector.broadcast %18 : vector<1x128xf32> to vector<8x128xf32>
      %c0_14 = arith.constant 0 : index
      %c0_15 = arith.constant 0 : index
      %20 = vector.load %arg7[%c0_14, %c0_15] : memref<8x128xf32, #tpu.memory_space<vmem>>, vector<8x128xf32>
      tpu.vector_store %arg7[%c0_14, %c0_15], %19 {strides = array<i32>} : memref<8x128xf32, #tpu.memory_space<vmem>>, vector<8x128xf32>,
      %21 = vector.shape_cast %17 : vector<1x128xf32> to vector<1x128xf32>
      %22 = vector.broadcast %21 : vector<1x128xf32> to vector<8x128xf32>
      %c0_16 = arith.constant 0 : index
      %c0_17 = arith.constant 0 : index
      %23 = vector.load %arg8[%c0_16, %c0_17] : memref<8x128xf32, #tpu.memory_space<vmem>>, vector<8x128xf32>
      tpu.vector_store %arg8[%c0_16, %c0_17], %22 {strides = array<i32>} : memref<8x128xf32, #tpu.memory_space<vmem>>, vector<8x128xf32>,
      %c0_18 = arith.constant 0 : index
      %c0_19 = arith.constant 0 : index
      %24 = vector.load %arg5[%c0_18, %c0_19] : memref<1x128xf32, #tpu.memory_space<vmem>>, vector<1x128xf32>
      %25 = vector.broadcast %24 : vector<1x128xf32> to vector<32x128xf32>
      %26 = arith.addf %12, %25 : vector<32x128xf32>
      %c0_20 = arith.constant 0 : index
      %c0_21 = arith.constant 0 : index
      %27 = vector.load %arg6[%c0_20, %c0_21] : memref<32x128xf32, #tpu.memory_space<vmem>>, vector<32x128xf32>
      tpu.vector_store %arg6[%c0_20, %c0_21], %26 {strides = array<i32>} : memref<32x128xf32, #tpu.memory_space<vmem>>, vector<32x128xf32>,
    } else {
    }
    return
  }
  func.func @transform_0(%arg0: i32, %arg1: i32, %arg2: i32) -> (i32, i32) {
    %c0_i32 = arith.constant 0 : i32
    return %arg0, %arg2 : i32, i32
  }
  func.func @transform_1(%arg0: i32, %arg1: i32, %arg2: i32) -> (i32, i32) {
    %c0_i32 = arith.constant 0 : i32
    return %arg2, %arg1 : i32, i32
  }
  func.func @transform_2(%arg0: i32, %arg1: i32, %arg2: i32) -> (i32, i32) {
    %c0_i32 = arith.constant 0 : i32
    %c0_i32_0 = arith.constant 0 : i32
    return %c0_i32, %arg1 : i32, i32
  }
  func.func @transform_3(%arg0: i32, %arg1: i32, %arg2: i32) -> (i32, i32) {
    %c0_i32 = arith.constant 0 : i32
    return %arg0, %arg1 : i32, i32
  }
  func.func @transform_4(%arg0: i32, %arg1: i32, %arg2: i32) -> (i32, i32) {
    %c0_i32 = arith.constant 0 : i32
    return %arg0, %arg1 : i32, i32
  }
  func.func @transform_5(%arg0: i32, %arg1: i32, %arg2: i32) -> (i32, i32) {
    %c0_i32 = arith.constant 0 : i32
    return %arg0, %arg1 : i32, i32
  }
}

module attributes {stable_mosaic.version = 11 : i64} {
  func.func @_matmul_kernel(%arg0: i32, %arg1: i32, %arg2: i32, %arg3: memref<32x144xbf16, #tpu.memory_space<vmem>>, %arg4: memref<144x128xbf16, #tpu.memory_space<vmem>>, %arg5: memref<1x128xf32, #tpu.memory_space<vmem>>, %arg6: memref<32x128xf32, #tpu.memory_space<vmem>>, %arg7: memref<8x128xf32, #tpu.memory_space<vmem>>, %arg8: memref<8x128xf32, #tpu.memory_space<vmem>>, %arg9: memref<32x128xf32, #tpu.memory_space<vmem>>) attributes {dimension_semantics = [#tpu.dimension_semantics<parallel>, #tpu.dimension_semantics<parallel>, #tpu.dimension_semantics<arbitrary>], iteration_bounds = array<i64: 1, 1, 1>, scalar_prefetch = 0 : i64, scratch_operands = 1 : i64, tpu.core_type = #tpu.core_type<tc>, window_params = [{transform_indices = @transform_0, window_bounds = array<i64: 32, 144>}, {transform_indices = @transform_1, window_bounds = array<i64: 144, 128>}, {transform_indices = @transform_2, window_bounds = array<i64: 1, 128>}, {transform_indices = @transform_3, window_bounds = array<i64: 32, 128>}, {transform_indices = @transform_4, window_bounds = array<i64: 8, 128>}, {transform_indices = @transform_5, window_bounds = array<i64: 8, 128>}]} {
    %c0_i32 = arith.constant 0 : i32
    %0 = arith.cmpi eq, %arg2, %c0_i32 : i32
    %1 = arith.extui %0 : i1 to i32
    %c0_i32_0 = arith.constant 0 : i32
    %2 = arith.cmpi ne, %1, %c0_i32_0 : i32
    scf.if %2 {
      %cst_10 = arith.constant 0.000000e+00 : f32
      %12 = vector.broadcast %cst_10 : f32 to vector<32x128xf32>
      %c0_11 = arith.constant 0 : index
      %c0_12 = arith.constant 0 : index
      %13 = vector.load %arg9[%c0_11, %c0_12] : memref<32x128xf32, #tpu.memory_space<vmem>>, vector<32x128xf32>
      tpu.vector_store %arg9[%c0_11, %c0_12], %12 {strides = array<i32>} : memref<32x128xf32, #tpu.memory_space<vmem>>, vector<32x128xf32>,
    } else {
    }
    %c0 = arith.constant 0 : index
    %c0_1 = arith.constant 0 : index
    %3 = vector.load %arg9[%c0, %c0_1] : memref<32x128xf32, #tpu.memory_space<vmem>>, vector<32x128xf32>
    %c0_2 = arith.constant 0 : index
    %c0_3 = arith.constant 0 : index
    %4 = vector.load %arg3[%c0_2, %c0_3] : memref<32x144xbf16, #tpu.memory_space<vmem>>, vector<32x144xbf16>
    %c0_4 = arith.constant 0 : index
    %c0_5 = arith.constant 0 : index
    %5 = vector.load %arg4[%c0_4, %c0_5] : memref<144x128xbf16, #tpu.memory_space<vmem>>, vector<144x128xbf16>
    %cst = arith.constant dense<0.000000e+00> : vector<32x128xf32>
    %6 = tpu.matmul %4, %5, %cst {dimension_numbers = #tpu.dot_dimension_numbers<[1], [0], [0], [1], [0, 0, 1, 1], [], []>} : vector<32x144xbf16>, vector<144x128xbf16>, vector<32x128xf32> -> vector<32x128xf32>
    %7 = arith.addf %3, %6 : vector<32x128xf32>
    %c0_6 = arith.constant 0 : index
    %c0_7 = arith.constant 0 : index
    %8 = vector.load %arg9[%c0_6, %c0_7] : memref<32x128xf32, #tpu.memory_space<vmem>>, vector<32x128xf32>
    tpu.vector_store %arg9[%c0_6, %c0_7], %7 {strides = array<i32>} : memref<32x128xf32, #tpu.memory_space<vmem>>, vector<32x128xf32>,
    %c0_i32_8 = arith.constant 0 : i32
    %9 = arith.cmpi eq, %arg2, %c0_i32_8 : i32
    %10 = arith.extui %9 : i1 to i32
    %c0_i32_9 = arith.constant 0 : i32
    %11 = arith.cmpi ne, %10, %c0_i32_9 : i32
    scf.if %11 {
      %c0_10 = arith.constant 0 : index
      %c0_11 = arith.constant 0 : index
      %12 = vector.load %arg9[%c0_10, %c0_11] : memref<32x128xf32, #tpu.memory_space<vmem>>, vector<32x128xf32>
      %cst_12 = arith.constant dense<0.000000e+00> : vector<128xf32>
      %13 = vector.multi_reduction <add>, %12, %cst_12 [0] : vector<32x128xf32> to vector<128xf32>
      %14 = vector.shape_cast %13 : vector<128xf32> to vector<1x128xf32>
      %15 = arith.mulf %12, %12 : vector<32x128xf32>
      %cst_13 = arith.constant dense<0.000000e+00> : vector<128xf32>
      %16 = vector.multi_reduction <add>, %15, %cst_13 [0] : vector<32x128xf32> to vector<128xf32>
      %17 = vector.shape_cast %16 : vector<128xf32> to vector<1x128xf32>
      %18 = vector.shape_cast %14 : vector<1x128xf32> to vector<1x128xf32>
      %19 = vector.broadcast %18 : vector<1x128xf32> to vector<8x128xf32>
      %c0_14 = arith.constant 0 : index
      %c0_15 = arith.constant 0 : index
      %20 = vector.load %arg7[%c0_14, %c0_15] : memref<8x128xf32, #tpu.memory_space<vmem>>, vector<8x128xf32>
      tpu.vector_store %arg7[%c0_14, %c0_15], %19 {strides = array<i32>} : memref<8x128xf32, #tpu.memory_space<vmem>>, vector<8x128xf32>,
      %21 = vector.shape_cast %17 : vector<1x128xf32> to vector<1x128xf32>
      %22 = vector.broadcast %21 : vector<1x128xf32> to vector<8x128xf32>
      %c0_16 = arith.constant 0 : index
      %c0_17 = arith.constant 0 : index
      %23 = vector.load %arg8[%c0_16, %c0_17] : memref<8x128xf32, #tpu.memory_space<vmem>>, vector<8x128xf32>
      tpu.vector_store %arg8[%c0_16, %c0_17], %22 {strides = array<i32>} : memref<8x128xf32, #tpu.memory_space<vmem>>, vector<8x128xf32>,
      %c0_18 = arith.constant 0 : index
      %c0_19 = arith.constant 0 : index
      %24 = vector.load %arg5[%c0_18, %c0_19] : memref<1x128xf32, #tpu.memory_space<vmem>>, vector<1x128xf32>
      %25 = vector.broadcast %24 : vector<1x128xf32> to vector<32x128xf32>
      %26 = arith.addf %12, %25 : vector<32x128xf32>
      %c0_20 = arith.constant 0 : index
      %c0_21 = arith.constant 0 : index
      %27 = vector.load %arg6[%c0_20, %c0_21] : memref<32x128xf32, #tpu.memory_space<vmem>>, vector<32x128xf32>
      tpu.vector_store %arg6[%c0_20, %c0_21], %26 {strides = array<i32>} : memref<32x128xf32, #tpu.memory_space<vmem>>, vector<32x128xf32>,
    } else {
    }
    return
  }
  func.func @transform_0(%arg0: i32, %arg1: i32, %arg2: i32) -> (i32, i32) {
    %c0_i32 = arith.constant 0 : i32
    return %arg0, %arg2 : i32, i32
  }
  func.func @transform_1(%arg0: i32, %arg1: i32, %arg2: i32) -> (i32, i32) {
    %c0_i32 = arith.constant 0 : i32
    return %arg2, %arg1 : i32, i32
  }
  func.func @transform_2(%arg0: i32, %arg1: i32, %arg2: i32) -> (i32, i32) {
    %c0_i32 = arith.constant 0 : i32
    %c0_i32_0 = arith.constant 0 : i32
    return %c0_i32, %arg1 : i32, i32
  }
  func.func @transform_3(%arg0: i32, %arg1: i32, %arg2: i32) -> (i32, i32) {
    %c0_i32 = arith.constant 0 : i32
    return %arg0, %arg1 : i32, i32
  }
  func.func @transform_4(%arg0: i32, %arg1: i32, %arg2: i32) -> (i32, i32) {
    %c0_i32 = arith.constant 0 : i32
    return %arg0, %arg1 : i32, i32
  }
  func.func @transform_5(%arg0: i32, %arg1: i32, %arg2: i32) -> (i32, i32) {
    %c0_i32 = arith.constant 0 : i32
    return %arg0, %arg1 : i32, i32
  }
}

module attributes {stable_mosaic.version = 11 : i64} {
  func.func @_affine_kernel(%arg0: i32, %arg1: memref<32x128xf32, #tpu.memory_space<vmem>>, %arg2: memref<1x128xf32, #tpu.memory_space<vmem>>, %arg3: memref<1x128xf32, #tpu.memory_space<vmem>>, %arg4: memref<32x128xf32, #tpu.memory_space<vmem>>) attributes {dimension_semantics = [#tpu.dimension_semantics<parallel>], iteration_bounds = array<i64: 1>, scalar_prefetch = 0 : i64, scratch_operands = 0 : i64, tpu.core_type = #tpu.core_type<tc>, window_params = [{transform_indices = @transform_0, window_bounds = array<i64: 32, 128>}, {pipeline_mode = #tpu.pipeline_mode<synchronous>, transform_indices = @transform_1, window_bounds = array<i64: 1, 128>}, {pipeline_mode = #tpu.pipeline_mode<synchronous>, transform_indices = @transform_2, window_bounds = array<i64: 1, 128>}, {transform_indices = @transform_3, window_bounds = array<i64: 32, 128>}]} {
    %c0 = arith.constant 0 : index
    %c0_0 = arith.constant 0 : index
    %0 = vector.load %arg1[%c0, %c0_0] : memref<32x128xf32, #tpu.memory_space<vmem>>, vector<32x128xf32>
    %c0_1 = arith.constant 0 : index
    %c0_2 = arith.constant 0 : index
    %1 = vector.load %arg2[%c0_1, %c0_2] : memref<1x128xf32, #tpu.memory_space<vmem>>, vector<1x128xf32>
    %2 = vector.broadcast %1 : vector<1x128xf32> to vector<32x128xf32>
    %3 = arith.mulf %0, %2 : vector<32x128xf32>
    %c0_3 = arith.constant 0 : index
    %c0_4 = arith.constant 0 : index
    %4 = vector.load %arg3[%c0_3, %c0_4] : memref<1x128xf32, #tpu.memory_space<vmem>>, vector<1x128xf32>
    %5 = vector.broadcast %4 : vector<1x128xf32> to vector<32x128xf32>
    %6 = arith.addf %3, %5 : vector<32x128xf32>
    %cst = arith.constant 0.000000e+00 : f32
    %7 = vector.broadcast %cst : f32 to vector<32x128xf32>
    %8 = arith.maximumf %6, %7 : vector<32x128xf32>
    %c0_5 = arith.constant 0 : index
    %c0_6 = arith.constant 0 : index
    %9 = vector.load %arg4[%c0_5, %c0_6] : memref<32x128xf32, #tpu.memory_space<vmem>>, vector<32x128xf32>
    tpu.vector_store %arg4[%c0_5, %c0_6], %8 {strides = array<i32>} : memref<32x128xf32, #tpu.memory_space<vmem>>, vector<32x128xf32>,
    return
  }
  func.func @transform_0(%arg0: i32) -> (i32, i32) {
    %c0_i32 = arith.constant 0 : i32
    %c0_i32_0 = arith.constant 0 : i32
    return %arg0, %c0_i32 : i32, i32
  }
  func.func @transform_1(%arg0: i32) -> (i32, i32) {
    %c0_i32 = arith.constant 0 : i32
    %c0_i32_0 = arith.constant 0 : i32
    %c0_i32_1 = arith.constant 0 : i32
    return %c0_i32, %c0_i32_0 : i32, i32
  }
  func.func @transform_2(%arg0: i32) -> (i32, i32) {
    %c0_i32 = arith.constant 0 : i32
    %c0_i32_0 = arith.constant 0 : i32
    %c0_i32_1 = arith.constant 0 : i32
    return %c0_i32, %c0_i32_0 : i32, i32
  }
  func.func @transform_3(%arg0: i32) -> (i32, i32) {
    %c0_i32 = arith.constant 0 : i32
    %c0_i32_0 = arith.constant 0 : i32
    return %arg0, %c0_i32 : i32, i32
  }
}

module attributes {stable_mosaic.version = 11 : i64} {
  func.func @_matmul_kernel(%arg0: i32, %arg1: i32, %arg2: i32, %arg3: memref<32x288xbf16, #tpu.memory_space<vmem>>, %arg4: memref<288x128xbf16, #tpu.memory_space<vmem>>, %arg5: memref<1x128xf32, #tpu.memory_space<vmem>>, %arg6: memref<32x128xf32, #tpu.memory_space<vmem>>, %arg7: memref<8x128xf32, #tpu.memory_space<vmem>>, %arg8: memref<8x128xf32, #tpu.memory_space<vmem>>, %arg9: memref<32x128xf32, #tpu.memory_space<vmem>>) attributes {dimension_semantics = [#tpu.dimension_semantics<parallel>, #tpu.dimension_semantics<parallel>, #tpu.dimension_semantics<arbitrary>], iteration_bounds = array<i64: 1, 1, 1>, scalar_prefetch = 0 : i64, scratch_operands = 1 : i64, tpu.core_type = #tpu.core_type<tc>, window_params = [{transform_indices = @transform_0, window_bounds = array<i64: 32, 288>}, {transform_indices = @transform_1, window_bounds = array<i64: 288, 128>}, {transform_indices = @transform_2, window_bounds = array<i64: 1, 128>}, {transform_indices = @transform_3, window_bounds = array<i64: 32, 128>}, {transform_indices = @transform_4, window_bounds = array<i64: 8, 128>}, {transform_indices = @transform_5, window_bounds = array<i64: 8, 128>}]} {
    %c0_i32 = arith.constant 0 : i32
    %0 = arith.cmpi eq, %arg2, %c0_i32 : i32
    %1 = arith.extui %0 : i1 to i32
    %c0_i32_0 = arith.constant 0 : i32
    %2 = arith.cmpi ne, %1, %c0_i32_0 : i32
    scf.if %2 {
      %cst_10 = arith.constant 0.000000e+00 : f32
      %12 = vector.broadcast %cst_10 : f32 to vector<32x128xf32>
      %c0_11 = arith.constant 0 : index
      %c0_12 = arith.constant 0 : index
      %13 = vector.load %arg9[%c0_11, %c0_12] : memref<32x128xf32, #tpu.memory_space<vmem>>, vector<32x128xf32>
      tpu.vector_store %arg9[%c0_11, %c0_12], %12 {strides = array<i32>} : memref<32x128xf32, #tpu.memory_space<vmem>>, vector<32x128xf32>,
    } else {
    }
    %c0 = arith.constant 0 : index
    %c0_1 = arith.constant 0 : index
    %3 = vector.load %arg9[%c0, %c0_1] : memref<32x128xf32, #tpu.memory_space<vmem>>, vector<32x128xf32>
    %c0_2 = arith.constant 0 : index
    %c0_3 = arith.constant 0 : index
    %4 = vector.load %arg3[%c0_2, %c0_3] : memref<32x288xbf16, #tpu.memory_space<vmem>>, vector<32x288xbf16>
    %c0_4 = arith.constant 0 : index
    %c0_5 = arith.constant 0 : index
    %5 = vector.load %arg4[%c0_4, %c0_5] : memref<288x128xbf16, #tpu.memory_space<vmem>>, vector<288x128xbf16>
    %cst = arith.constant dense<0.000000e+00> : vector<32x128xf32>
    %6 = tpu.matmul %4, %5, %cst {dimension_numbers = #tpu.dot_dimension_numbers<[1], [0], [0], [1], [0, 0, 1, 1], [], []>} : vector<32x288xbf16>, vector<288x128xbf16>, vector<32x128xf32> -> vector<32x128xf32>
    %7 = arith.addf %3, %6 : vector<32x128xf32>
    %c0_6 = arith.constant 0 : index
    %c0_7 = arith.constant 0 : index
    %8 = vector.load %arg9[%c0_6, %c0_7] : memref<32x128xf32, #tpu.memory_space<vmem>>, vector<32x128xf32>
    tpu.vector_store %arg9[%c0_6, %c0_7], %7 {strides = array<i32>} : memref<32x128xf32, #tpu.memory_space<vmem>>, vector<32x128xf32>,
    %c0_i32_8 = arith.constant 0 : i32
    %9 = arith.cmpi eq, %arg2, %c0_i32_8 : i32
    %10 = arith.extui %9 : i1 to i32
    %c0_i32_9 = arith.constant 0 : i32
    %11 = arith.cmpi ne, %10, %c0_i32_9 : i32
    scf.if %11 {
      %c0_10 = arith.constant 0 : index
      %c0_11 = arith.constant 0 : index
      %12 = vector.load %arg9[%c0_10, %c0_11] : memref<32x128xf32, #tpu.memory_space<vmem>>, vector<32x128xf32>
      %cst_12 = arith.constant dense<0.000000e+00> : vector<128xf32>
      %13 = vector.multi_reduction <add>, %12, %cst_12 [0] : vector<32x128xf32> to vector<128xf32>
      %14 = vector.shape_cast %13 : vector<128xf32> to vector<1x128xf32>
      %15 = arith.mulf %12, %12 : vector<32x128xf32>
      %cst_13 = arith.constant dense<0.000000e+00> : vector<128xf32>
      %16 = vector.multi_reduction <add>, %15, %cst_13 [0] : vector<32x128xf32> to vector<128xf32>
      %17 = vector.shape_cast %16 : vector<128xf32> to vector<1x128xf32>
      %18 = vector.shape_cast %14 : vector<1x128xf32> to vector<1x128xf32>
      %19 = vector.broadcast %18 : vector<1x128xf32> to vector<8x128xf32>
      %c0_14 = arith.constant 0 : index
      %c0_15 = arith.constant 0 : index
      %20 = vector.load %arg7[%c0_14, %c0_15] : memref<8x128xf32, #tpu.memory_space<vmem>>, vector<8x128xf32>
      tpu.vector_store %arg7[%c0_14, %c0_15], %19 {strides = array<i32>} : memref<8x128xf32, #tpu.memory_space<vmem>>, vector<8x128xf32>,
      %21 = vector.shape_cast %17 : vector<1x128xf32> to vector<1x128xf32>
      %22 = vector.broadcast %21 : vector<1x128xf32> to vector<8x128xf32>
      %c0_16 = arith.constant 0 : index
      %c0_17 = arith.constant 0 : index
      %23 = vector.load %arg8[%c0_16, %c0_17] : memref<8x128xf32, #tpu.memory_space<vmem>>, vector<8x128xf32>
      tpu.vector_store %arg8[%c0_16, %c0_17], %22 {strides = array<i32>} : memref<8x128xf32, #tpu.memory_space<vmem>>, vector<8x128xf32>,
      %c0_18 = arith.constant 0 : index
      %c0_19 = arith.constant 0 : index
      %24 = vector.load %arg5[%c0_18, %c0_19] : memref<1x128xf32, #tpu.memory_space<vmem>>, vector<1x128xf32>
      %25 = vector.broadcast %24 : vector<1x128xf32> to vector<32x128xf32>
      %26 = arith.addf %12, %25 : vector<32x128xf32>
      %c0_20 = arith.constant 0 : index
      %c0_21 = arith.constant 0 : index
      %27 = vector.load %arg6[%c0_20, %c0_21] : memref<32x128xf32, #tpu.memory_space<vmem>>, vector<32x128xf32>
      tpu.vector_store %arg6[%c0_20, %c0_21], %26 {strides = array<i32>} : memref<32x128xf32, #tpu.memory_space<vmem>>, vector<32x128xf32>,
    } else {
    }
    return
  }
  func.func @transform_0(%arg0: i32, %arg1: i32, %arg2: i32) -> (i32, i32) {
    %c0_i32 = arith.constant 0 : i32
    return %arg0, %arg2 : i32, i32
  }
  func.func @transform_1(%arg0: i32, %arg1: i32, %arg2: i32) -> (i32, i32) {
    %c0_i32 = arith.constant 0 : i32
    return %arg2, %arg1 : i32, i32
  }
  func.func @transform_2(%arg0: i32, %arg1: i32, %arg2: i32) -> (i32, i32) {
    %c0_i32 = arith.constant 0 : i32
    %c0_i32_0 = arith.constant 0 : i32
    return %c0_i32, %arg1 : i32, i32
  }
  func.func @transform_3(%arg0: i32, %arg1: i32, %arg2: i32) -> (i32, i32) {
    %c0_i32 = arith.constant 0 : i32
    return %arg0, %arg1 : i32, i32
  }
  func.func @transform_4(%arg0: i32, %arg1: i32, %arg2: i32) -> (i32, i32) {
    %c0_i32 = arith.constant 0 : i32
    return %arg0, %arg1 : i32, i32
  }
  func.func @transform_5(%arg0: i32, %arg1: i32, %arg2: i32) -> (i32, i32) {
    %c0_i32 = arith.constant 0 : i32
    return %arg0, %arg1 : i32, i32
  }
}

module attributes {stable_mosaic.version = 11 : i64} {
  func.func @_affine_res_kernel(%arg0: i32, %arg1: memref<32x128xf32, #tpu.memory_space<vmem>>, %arg2: memref<32x128xf32, #tpu.memory_space<vmem>>, %arg3: memref<1x128xf32, #tpu.memory_space<vmem>>, %arg4: memref<1x128xf32, #tpu.memory_space<vmem>>, %arg5: memref<32x128xf32, #tpu.memory_space<vmem>>) attributes {dimension_semantics = [#tpu.dimension_semantics<parallel>], iteration_bounds = array<i64: 1>, scalar_prefetch = 0 : i64, scratch_operands = 0 : i64, tpu.core_type = #tpu.core_type<tc>, window_params = [{transform_indices = @transform_0, window_bounds = array<i64: 32, 128>}, {transform_indices = @transform_1, window_bounds = array<i64: 32, 128>}, {pipeline_mode = #tpu.pipeline_mode<synchronous>, transform_indices = @transform_2, window_bounds = array<i64: 1, 128>}, {pipeline_mode = #tpu.pipeline_mode<synchronous>, transform_indices = @transform_3, window_bounds = array<i64: 1, 128>}, {transform_indices = @transform_4, window_bounds = array<i64: 32, 128>}]} {
    %c0 = arith.constant 0 : index
    %c0_0 = arith.constant 0 : index
    %0 = vector.load %arg1[%c0, %c0_0] : memref<32x128xf32, #tpu.memory_space<vmem>>, vector<32x128xf32>
    %c0_1 = arith.constant 0 : index
    %c0_2 = arith.constant 0 : index
    %1 = vector.load %arg3[%c0_1, %c0_2] : memref<1x128xf32, #tpu.memory_space<vmem>>, vector<1x128xf32>
    %2 = vector.broadcast %1 : vector<1x128xf32> to vector<32x128xf32>
    %3 = arith.mulf %0, %2 : vector<32x128xf32>
    %c0_3 = arith.constant 0 : index
    %c0_4 = arith.constant 0 : index
    %4 = vector.load %arg4[%c0_3, %c0_4] : memref<1x128xf32, #tpu.memory_space<vmem>>, vector<1x128xf32>
    %5 = vector.broadcast %4 : vector<1x128xf32> to vector<32x128xf32>
    %6 = arith.addf %3, %5 : vector<32x128xf32>
    %c0_5 = arith.constant 0 : index
    %c0_6 = arith.constant 0 : index
    %7 = vector.load %arg2[%c0_5, %c0_6] : memref<32x128xf32, #tpu.memory_space<vmem>>, vector<32x128xf32>
    %8 = arith.addf %6, %7 : vector<32x128xf32>
    %cst = arith.constant 0.000000e+00 : f32
    %9 = vector.broadcast %cst : f32 to vector<32x128xf32>
    %10 = arith.maximumf %8, %9 : vector<32x128xf32>
    %c0_7 = arith.constant 0 : index
    %c0_8 = arith.constant 0 : index
    %11 = vector.load %arg5[%c0_7, %c0_8] : memref<32x128xf32, #tpu.memory_space<vmem>>, vector<32x128xf32>
    tpu.vector_store %arg5[%c0_7, %c0_8], %10 {strides = array<i32>} : memref<32x128xf32, #tpu.memory_space<vmem>>, vector<32x128xf32>,
    return
  }
  func.func @transform_0(%arg0: i32) -> (i32, i32) {
    %c0_i32 = arith.constant 0 : i32
    %c0_i32_0 = arith.constant 0 : i32
    return %arg0, %c0_i32 : i32, i32
  }
  func.func @transform_1(%arg0: i32) -> (i32, i32) {
    %c0_i32 = arith.constant 0 : i32
    %c0_i32_0 = arith.constant 0 : i32
    return %arg0, %c0_i32 : i32, i32
  }
  func.func @transform_2(%arg0: i32) -> (i32, i32) {
    %c0_i32 = arith.constant 0 : i32
    %c0_i32_0 = arith.constant 0 : i32
    %c0_i32_1 = arith.constant 0 : i32
    return %c0_i32, %c0_i32_0 : i32, i32
  }
  func.func @transform_3(%arg0: i32) -> (i32, i32) {
    %c0_i32 = arith.constant 0 : i32
    %c0_i32_0 = arith.constant 0 : i32
    %c0_i32_1 = arith.constant 0 : i32
    return %c0_i32, %c0_i32_0 : i32, i32
  }
  func.func @transform_4(%arg0: i32) -> (i32, i32) {
    %c0_i32 = arith.constant 0 : i32
    %c0_i32_0 = arith.constant 0 : i32
    return %arg0, %c0_i32 : i32, i32
  }
}

module attributes {stable_mosaic.version = 11 : i64} {
  func.func @_matmul_kernel(%arg0: i32, %arg1: i32, %arg2: i32, %arg3: memref<32x32xbf16, #tpu.memory_space<vmem>>, %arg4: memref<32x128xbf16, #tpu.memory_space<vmem>>, %arg5: memref<1x128xf32, #tpu.memory_space<vmem>>, %arg6: memref<32x128xf32, #tpu.memory_space<vmem>>, %arg7: memref<8x128xf32, #tpu.memory_space<vmem>>, %arg8: memref<8x128xf32, #tpu.memory_space<vmem>>, %arg9: memref<32x128xf32, #tpu.memory_space<vmem>>) attributes {dimension_semantics = [#tpu.dimension_semantics<parallel>, #tpu.dimension_semantics<parallel>, #tpu.dimension_semantics<arbitrary>], iteration_bounds = array<i64: 1, 1, 1>, scalar_prefetch = 0 : i64, scratch_operands = 1 : i64, tpu.core_type = #tpu.core_type<tc>, window_params = [{transform_indices = @transform_0, window_bounds = array<i64: 32, 32>}, {transform_indices = @transform_1, window_bounds = array<i64: 32, 128>}, {transform_indices = @transform_2, window_bounds = array<i64: 1, 128>}, {transform_indices = @transform_3, window_bounds = array<i64: 32, 128>}, {transform_indices = @transform_4, window_bounds = array<i64: 8, 128>}, {transform_indices = @transform_5, window_bounds = array<i64: 8, 128>}]} {
    %c0_i32 = arith.constant 0 : i32
    %0 = arith.cmpi eq, %arg2, %c0_i32 : i32
    %1 = arith.extui %0 : i1 to i32
    %c0_i32_0 = arith.constant 0 : i32
    %2 = arith.cmpi ne, %1, %c0_i32_0 : i32
    scf.if %2 {
      %cst_10 = arith.constant 0.000000e+00 : f32
      %12 = vector.broadcast %cst_10 : f32 to vector<32x128xf32>
      %c0_11 = arith.constant 0 : index
      %c0_12 = arith.constant 0 : index
      %13 = vector.load %arg9[%c0_11, %c0_12] : memref<32x128xf32, #tpu.memory_space<vmem>>, vector<32x128xf32>
      tpu.vector_store %arg9[%c0_11, %c0_12], %12 {strides = array<i32>} : memref<32x128xf32, #tpu.memory_space<vmem>>, vector<32x128xf32>,
    } else {
    }
    %c0 = arith.constant 0 : index
    %c0_1 = arith.constant 0 : index
    %3 = vector.load %arg9[%c0, %c0_1] : memref<32x128xf32, #tpu.memory_space<vmem>>, vector<32x128xf32>
    %c0_2 = arith.constant 0 : index
    %c0_3 = arith.constant 0 : index
    %4 = vector.load %arg3[%c0_2, %c0_3] : memref<32x32xbf16, #tpu.memory_space<vmem>>, vector<32x32xbf16>
    %c0_4 = arith.constant 0 : index
    %c0_5 = arith.constant 0 : index
    %5 = vector.load %arg4[%c0_4, %c0_5] : memref<32x128xbf16, #tpu.memory_space<vmem>>, vector<32x128xbf16>
    %cst = arith.constant dense<0.000000e+00> : vector<32x128xf32>
    %6 = tpu.matmul %4, %5, %cst {dimension_numbers = #tpu.dot_dimension_numbers<[1], [0], [0], [1], [0, 0, 1, 1], [], []>} : vector<32x32xbf16>, vector<32x128xbf16>, vector<32x128xf32> -> vector<32x128xf32>
    %7 = arith.addf %3, %6 : vector<32x128xf32>
    %c0_6 = arith.constant 0 : index
    %c0_7 = arith.constant 0 : index
    %8 = vector.load %arg9[%c0_6, %c0_7] : memref<32x128xf32, #tpu.memory_space<vmem>>, vector<32x128xf32>
    tpu.vector_store %arg9[%c0_6, %c0_7], %7 {strides = array<i32>} : memref<32x128xf32, #tpu.memory_space<vmem>>, vector<32x128xf32>,
    %c0_i32_8 = arith.constant 0 : i32
    %9 = arith.cmpi eq, %arg2, %c0_i32_8 : i32
    %10 = arith.extui %9 : i1 to i32
    %c0_i32_9 = arith.constant 0 : i32
    %11 = arith.cmpi ne, %10, %c0_i32_9 : i32
    scf.if %11 {
      %c0_10 = arith.constant 0 : index
      %c0_11 = arith.constant 0 : index
      %12 = vector.load %arg9[%c0_10, %c0_11] : memref<32x128xf32, #tpu.memory_space<vmem>>, vector<32x128xf32>
      %cst_12 = arith.constant dense<0.000000e+00> : vector<128xf32>
      %13 = vector.multi_reduction <add>, %12, %cst_12 [0] : vector<32x128xf32> to vector<128xf32>
      %14 = vector.shape_cast %13 : vector<128xf32> to vector<1x128xf32>
      %15 = arith.mulf %12, %12 : vector<32x128xf32>
      %cst_13 = arith.constant dense<0.000000e+00> : vector<128xf32>
      %16 = vector.multi_reduction <add>, %15, %cst_13 [0] : vector<32x128xf32> to vector<128xf32>
      %17 = vector.shape_cast %16 : vector<128xf32> to vector<1x128xf32>
      %18 = vector.shape_cast %14 : vector<1x128xf32> to vector<1x128xf32>
      %19 = vector.broadcast %18 : vector<1x128xf32> to vector<8x128xf32>
      %c0_14 = arith.constant 0 : index
      %c0_15 = arith.constant 0 : index
      %20 = vector.load %arg7[%c0_14, %c0_15] : memref<8x128xf32, #tpu.memory_space<vmem>>, vector<8x128xf32>
      tpu.vector_store %arg7[%c0_14, %c0_15], %19 {strides = array<i32>} : memref<8x128xf32, #tpu.memory_space<vmem>>, vector<8x128xf32>,
      %21 = vector.shape_cast %17 : vector<1x128xf32> to vector<1x128xf32>
      %22 = vector.broadcast %21 : vector<1x128xf32> to vector<8x128xf32>
      %c0_16 = arith.constant 0 : index
      %c0_17 = arith.constant 0 : index
      %23 = vector.load %arg8[%c0_16, %c0_17] : memref<8x128xf32, #tpu.memory_space<vmem>>, vector<8x128xf32>
      tpu.vector_store %arg8[%c0_16, %c0_17], %22 {strides = array<i32>} : memref<8x128xf32, #tpu.memory_space<vmem>>, vector<8x128xf32>,
      %c0_18 = arith.constant 0 : index
      %c0_19 = arith.constant 0 : index
      %24 = vector.load %arg5[%c0_18, %c0_19] : memref<1x128xf32, #tpu.memory_space<vmem>>, vector<1x128xf32>
      %25 = vector.broadcast %24 : vector<1x128xf32> to vector<32x128xf32>
      %26 = arith.addf %12, %25 : vector<32x128xf32>
      %c0_20 = arith.constant 0 : index
      %c0_21 = arith.constant 0 : index
      %27 = vector.load %arg6[%c0_20, %c0_21] : memref<32x128xf32, #tpu.memory_space<vmem>>, vector<32x128xf32>
      tpu.vector_store %arg6[%c0_20, %c0_21], %26 {strides = array<i32>} : memref<32x128xf32, #tpu.memory_space<vmem>>, vector<32x128xf32>,
    } else {
    }
    return
  }
  func.func @transform_0(%arg0: i32, %arg1: i32, %arg2: i32) -> (i32, i32) {
    %c0_i32 = arith.constant 0 : i32
    return %arg0, %arg2 : i32, i32
  }
  func.func @transform_1(%arg0: i32, %arg1: i32, %arg2: i32) -> (i32, i32) {
    %c0_i32 = arith.constant 0 : i32
    return %arg2, %arg1 : i32, i32
  }
  func.func @transform_2(%arg0: i32, %arg1: i32, %arg2: i32) -> (i32, i32) {
    %c0_i32 = arith.constant 0 : i32
    %c0_i32_0 = arith.constant 0 : i32
    return %c0_i32, %arg1 : i32, i32
  }
  func.func @transform_3(%arg0: i32, %arg1: i32, %arg2: i32) -> (i32, i32) {
    %c0_i32 = arith.constant 0 : i32
    return %arg0, %arg1 : i32, i32
  }
  func.func @transform_4(%arg0: i32, %arg1: i32, %arg2: i32) -> (i32, i32) {
    %c0_i32 = arith.constant 0 : i32
    return %arg0, %arg1 : i32, i32
  }
  func.func @transform_5(%arg0: i32, %arg1: i32, %arg2: i32) -> (i32, i32) {
    %c0_i32 = arith.constant 0 : i32
    return %arg0, %arg1 : i32, i32
  }
}

module attributes {stable_mosaic.version = 11 : i64} {
  func.func @_matmul_kernel(%arg0: i32, %arg1: i32, %arg2: i32, %arg3: memref<8x512xbf16, #tpu.memory_space<vmem>>, %arg4: memref<512x128xbf16, #tpu.memory_space<vmem>>, %arg5: memref<1x128xf32, #tpu.memory_space<vmem>>, %arg6: memref<8x128xf32, #tpu.memory_space<vmem>>, %arg7: memref<8x128xf32, #tpu.memory_space<vmem>>, %arg8: memref<8x128xf32, #tpu.memory_space<vmem>>, %arg9: memref<8x128xf32, #tpu.memory_space<vmem>>) attributes {dimension_semantics = [#tpu.dimension_semantics<parallel>, #tpu.dimension_semantics<parallel>, #tpu.dimension_semantics<arbitrary>], iteration_bounds = array<i64: 1, 1, 1>, scalar_prefetch = 0 : i64, scratch_operands = 1 : i64, tpu.core_type = #tpu.core_type<tc>, window_params = [{transform_indices = @transform_0, window_bounds = array<i64: 8, 512>}, {transform_indices = @transform_1, window_bounds = array<i64: 512, 128>}, {transform_indices = @transform_2, window_bounds = array<i64: 1, 128>}, {transform_indices = @transform_3, window_bounds = array<i64: 8, 128>}, {transform_indices = @transform_4, window_bounds = array<i64: 8, 128>}, {transform_indices = @transform_5, window_bounds = array<i64: 8, 128>}]} {
    %c0_i32 = arith.constant 0 : i32
    %0 = arith.cmpi eq, %arg2, %c0_i32 : i32
    %1 = arith.extui %0 : i1 to i32
    %c0_i32_0 = arith.constant 0 : i32
    %2 = arith.cmpi ne, %1, %c0_i32_0 : i32
    scf.if %2 {
      %cst_10 = arith.constant 0.000000e+00 : f32
      %12 = vector.broadcast %cst_10 : f32 to vector<8x128xf32>
      %c0_11 = arith.constant 0 : index
      %c0_12 = arith.constant 0 : index
      %13 = vector.load %arg9[%c0_11, %c0_12] : memref<8x128xf32, #tpu.memory_space<vmem>>, vector<8x128xf32>
      tpu.vector_store %arg9[%c0_11, %c0_12], %12 {strides = array<i32>} : memref<8x128xf32, #tpu.memory_space<vmem>>, vector<8x128xf32>,
    } else {
    }
    %c0 = arith.constant 0 : index
    %c0_1 = arith.constant 0 : index
    %3 = vector.load %arg9[%c0, %c0_1] : memref<8x128xf32, #tpu.memory_space<vmem>>, vector<8x128xf32>
    %c0_2 = arith.constant 0 : index
    %c0_3 = arith.constant 0 : index
    %4 = vector.load %arg3[%c0_2, %c0_3] : memref<8x512xbf16, #tpu.memory_space<vmem>>, vector<8x512xbf16>
    %c0_4 = arith.constant 0 : index
    %c0_5 = arith.constant 0 : index
    %5 = vector.load %arg4[%c0_4, %c0_5] : memref<512x128xbf16, #tpu.memory_space<vmem>>, vector<512x128xbf16>
    %cst = arith.constant dense<0.000000e+00> : vector<8x128xf32>
    %6 = tpu.matmul %4, %5, %cst {dimension_numbers = #tpu.dot_dimension_numbers<[1], [0], [0], [1], [0, 0, 1, 1], [], []>} : vector<8x512xbf16>, vector<512x128xbf16>, vector<8x128xf32> -> vector<8x128xf32>
    %7 = arith.addf %3, %6 : vector<8x128xf32>
    %c0_6 = arith.constant 0 : index
    %c0_7 = arith.constant 0 : index
    %8 = vector.load %arg9[%c0_6, %c0_7] : memref<8x128xf32, #tpu.memory_space<vmem>>, vector<8x128xf32>
    tpu.vector_store %arg9[%c0_6, %c0_7], %7 {strides = array<i32>} : memref<8x128xf32, #tpu.memory_space<vmem>>, vector<8x128xf32>,
    %c0_i32_8 = arith.constant 0 : i32
    %9 = arith.cmpi eq, %arg2, %c0_i32_8 : i32
    %10 = arith.extui %9 : i1 to i32
    %c0_i32_9 = arith.constant 0 : i32
    %11 = arith.cmpi ne, %10, %c0_i32_9 : i32
    scf.if %11 {
      %c0_10 = arith.constant 0 : index
      %c0_11 = arith.constant 0 : index
      %12 = vector.load %arg9[%c0_10, %c0_11] : memref<8x128xf32, #tpu.memory_space<vmem>>, vector<8x128xf32>
      %cst_12 = arith.constant dense<0.000000e+00> : vector<128xf32>
      %13 = vector.multi_reduction <add>, %12, %cst_12 [0] : vector<8x128xf32> to vector<128xf32>
      %14 = vector.shape_cast %13 : vector<128xf32> to vector<1x128xf32>
      %15 = arith.mulf %12, %12 : vector<8x128xf32>
      %cst_13 = arith.constant dense<0.000000e+00> : vector<128xf32>
      %16 = vector.multi_reduction <add>, %15, %cst_13 [0] : vector<8x128xf32> to vector<128xf32>
      %17 = vector.shape_cast %16 : vector<128xf32> to vector<1x128xf32>
      %18 = vector.shape_cast %14 : vector<1x128xf32> to vector<1x128xf32>
      %19 = vector.broadcast %18 : vector<1x128xf32> to vector<8x128xf32>
      %c0_14 = arith.constant 0 : index
      %c0_15 = arith.constant 0 : index
      %20 = vector.load %arg7[%c0_14, %c0_15] : memref<8x128xf32, #tpu.memory_space<vmem>>, vector<8x128xf32>
      tpu.vector_store %arg7[%c0_14, %c0_15], %19 {strides = array<i32>} : memref<8x128xf32, #tpu.memory_space<vmem>>, vector<8x128xf32>,
      %21 = vector.shape_cast %17 : vector<1x128xf32> to vector<1x128xf32>
      %22 = vector.broadcast %21 : vector<1x128xf32> to vector<8x128xf32>
      %c0_16 = arith.constant 0 : index
      %c0_17 = arith.constant 0 : index
      %23 = vector.load %arg8[%c0_16, %c0_17] : memref<8x128xf32, #tpu.memory_space<vmem>>, vector<8x128xf32>
      tpu.vector_store %arg8[%c0_16, %c0_17], %22 {strides = array<i32>} : memref<8x128xf32, #tpu.memory_space<vmem>>, vector<8x128xf32>,
      %c0_18 = arith.constant 0 : index
      %c0_19 = arith.constant 0 : index
      %24 = vector.load %arg5[%c0_18, %c0_19] : memref<1x128xf32, #tpu.memory_space<vmem>>, vector<1x128xf32>
      %25 = vector.broadcast %24 : vector<1x128xf32> to vector<8x128xf32>
      %26 = arith.addf %12, %25 : vector<8x128xf32>
      %cst_20 = arith.constant 0.000000e+00 : f32
      %27 = vector.broadcast %cst_20 : f32 to vector<8x128xf32>
      %28 = arith.maximumf %26, %27 : vector<8x128xf32>
      %c0_21 = arith.constant 0 : index
      %c0_22 = arith.constant 0 : index
      %29 = vector.load %arg6[%c0_21, %c0_22] : memref<8x128xf32, #tpu.memory_space<vmem>>, vector<8x128xf32>
      tpu.vector_store %arg6[%c0_21, %c0_22], %28 {strides = array<i32>} : memref<8x128xf32, #tpu.memory_space<vmem>>, vector<8x128xf32>,
    } else {
    }
    return
  }
  func.func @transform_0(%arg0: i32, %arg1: i32, %arg2: i32) -> (i32, i32) {
    %c0_i32 = arith.constant 0 : i32
    return %arg0, %arg2 : i32, i32
  }
  func.func @transform_1(%arg0: i32, %arg1: i32, %arg2: i32) -> (i32, i32) {
    %c0_i32 = arith.constant 0 : i32
    return %arg2, %arg1 : i32, i32
  }
  func.func @transform_2(%arg0: i32, %arg1: i32, %arg2: i32) -> (i32, i32) {
    %c0_i32 = arith.constant 0 : i32
    %c0_i32_0 = arith.constant 0 : i32
    return %c0_i32, %arg1 : i32, i32
  }
  func.func @transform_3(%arg0: i32, %arg1: i32, %arg2: i32) -> (i32, i32) {
    %c0_i32 = arith.constant 0 : i32
    return %arg0, %arg1 : i32, i32
  }
  func.func @transform_4(%arg0: i32, %arg1: i32, %arg2: i32) -> (i32, i32) {
    %c0_i32 = arith.constant 0 : i32
    return %arg0, %arg1 : i32, i32
  }
  func.func @transform_5(%arg0: i32, %arg1: i32, %arg2: i32) -> (i32, i32) {
    %c0_i32 = arith.constant 0 : i32
    return %arg0, %arg1 : i32, i32
  }
}

module attributes {stable_mosaic.version = 11 : i64} {
  func.func @_matmul_kernel(%arg0: i32, %arg1: i32, %arg2: i32, %arg3: memref<8x32xbf16, #tpu.memory_space<vmem>>, %arg4: memref<32x128xbf16, #tpu.memory_space<vmem>>, %arg5: memref<1x128xf32, #tpu.memory_space<vmem>>, %arg6: memref<8x128xf32, #tpu.memory_space<vmem>>, %arg7: memref<8x128xf32, #tpu.memory_space<vmem>>, %arg8: memref<8x128xf32, #tpu.memory_space<vmem>>, %arg9: memref<8x128xf32, #tpu.memory_space<vmem>>) attributes {dimension_semantics = [#tpu.dimension_semantics<parallel>, #tpu.dimension_semantics<parallel>, #tpu.dimension_semantics<arbitrary>], iteration_bounds = array<i64: 1, 1, 1>, scalar_prefetch = 0 : i64, scratch_operands = 1 : i64, tpu.core_type = #tpu.core_type<tc>, window_params = [{transform_indices = @transform_0, window_bounds = array<i64: 8, 32>}, {transform_indices = @transform_1, window_bounds = array<i64: 32, 128>}, {transform_indices = @transform_2, window_bounds = array<i64: 1, 128>}, {transform_indices = @transform_3, window_bounds = array<i64: 8, 128>}, {transform_indices = @transform_4, window_bounds = array<i64: 8, 128>}, {transform_indices = @transform_5, window_bounds = array<i64: 8, 128>}]} {
    %c0_i32 = arith.constant 0 : i32
    %0 = arith.cmpi eq, %arg2, %c0_i32 : i32
    %1 = arith.extui %0 : i1 to i32
    %c0_i32_0 = arith.constant 0 : i32
    %2 = arith.cmpi ne, %1, %c0_i32_0 : i32
    scf.if %2 {
      %cst_10 = arith.constant 0.000000e+00 : f32
      %12 = vector.broadcast %cst_10 : f32 to vector<8x128xf32>
      %c0_11 = arith.constant 0 : index
      %c0_12 = arith.constant 0 : index
      %13 = vector.load %arg9[%c0_11, %c0_12] : memref<8x128xf32, #tpu.memory_space<vmem>>, vector<8x128xf32>
      tpu.vector_store %arg9[%c0_11, %c0_12], %12 {strides = array<i32>} : memref<8x128xf32, #tpu.memory_space<vmem>>, vector<8x128xf32>,
    } else {
    }
    %c0 = arith.constant 0 : index
    %c0_1 = arith.constant 0 : index
    %3 = vector.load %arg9[%c0, %c0_1] : memref<8x128xf32, #tpu.memory_space<vmem>>, vector<8x128xf32>
    %c0_2 = arith.constant 0 : index
    %c0_3 = arith.constant 0 : index
    %4 = vector.load %arg3[%c0_2, %c0_3] : memref<8x32xbf16, #tpu.memory_space<vmem>>, vector<8x32xbf16>
    %c0_4 = arith.constant 0 : index
    %c0_5 = arith.constant 0 : index
    %5 = vector.load %arg4[%c0_4, %c0_5] : memref<32x128xbf16, #tpu.memory_space<vmem>>, vector<32x128xbf16>
    %cst = arith.constant dense<0.000000e+00> : vector<8x128xf32>
    %6 = tpu.matmul %4, %5, %cst {dimension_numbers = #tpu.dot_dimension_numbers<[1], [0], [0], [1], [0, 0, 1, 1], [], []>} : vector<8x32xbf16>, vector<32x128xbf16>, vector<8x128xf32> -> vector<8x128xf32>
    %7 = arith.addf %3, %6 : vector<8x128xf32>
    %c0_6 = arith.constant 0 : index
    %c0_7 = arith.constant 0 : index
    %8 = vector.load %arg9[%c0_6, %c0_7] : memref<8x128xf32, #tpu.memory_space<vmem>>, vector<8x128xf32>
    tpu.vector_store %arg9[%c0_6, %c0_7], %7 {strides = array<i32>} : memref<8x128xf32, #tpu.memory_space<vmem>>, vector<8x128xf32>,
    %c0_i32_8 = arith.constant 0 : i32
    %9 = arith.cmpi eq, %arg2, %c0_i32_8 : i32
    %10 = arith.extui %9 : i1 to i32
    %c0_i32_9 = arith.constant 0 : i32
    %11 = arith.cmpi ne, %10, %c0_i32_9 : i32
    scf.if %11 {
      %c0_10 = arith.constant 0 : index
      %c0_11 = arith.constant 0 : index
      %12 = vector.load %arg9[%c0_10, %c0_11] : memref<8x128xf32, #tpu.memory_space<vmem>>, vector<8x128xf32>
      %cst_12 = arith.constant dense<0.000000e+00> : vector<128xf32>
      %13 = vector.multi_reduction <add>, %12, %cst_12 [0] : vector<8x128xf32> to vector<128xf32>
      %14 = vector.shape_cast %13 : vector<128xf32> to vector<1x128xf32>
      %15 = arith.mulf %12, %12 : vector<8x128xf32>
      %cst_13 = arith.constant dense<0.000000e+00> : vector<128xf32>
      %16 = vector.multi_reduction <add>, %15, %cst_13 [0] : vector<8x128xf32> to vector<128xf32>
      %17 = vector.shape_cast %16 : vector<128xf32> to vector<1x128xf32>
      %18 = vector.shape_cast %14 : vector<1x128xf32> to vector<1x128xf32>
      %19 = vector.broadcast %18 : vector<1x128xf32> to vector<8x128xf32>
      %c0_14 = arith.constant 0 : index
      %c0_15 = arith.constant 0 : index
      %20 = vector.load %arg7[%c0_14, %c0_15] : memref<8x128xf32, #tpu.memory_space<vmem>>, vector<8x128xf32>
      tpu.vector_store %arg7[%c0_14, %c0_15], %19 {strides = array<i32>} : memref<8x128xf32, #tpu.memory_space<vmem>>, vector<8x128xf32>,
      %21 = vector.shape_cast %17 : vector<1x128xf32> to vector<1x128xf32>
      %22 = vector.broadcast %21 : vector<1x128xf32> to vector<8x128xf32>
      %c0_16 = arith.constant 0 : index
      %c0_17 = arith.constant 0 : index
      %23 = vector.load %arg8[%c0_16, %c0_17] : memref<8x128xf32, #tpu.memory_space<vmem>>, vector<8x128xf32>
      tpu.vector_store %arg8[%c0_16, %c0_17], %22 {strides = array<i32>} : memref<8x128xf32, #tpu.memory_space<vmem>>, vector<8x128xf32>,
      %c0_18 = arith.constant 0 : index
      %c0_19 = arith.constant 0 : index
      %24 = vector.load %arg5[%c0_18, %c0_19] : memref<1x128xf32, #tpu.memory_space<vmem>>, vector<1x128xf32>
      %25 = vector.broadcast %24 : vector<1x128xf32> to vector<8x128xf32>
      %26 = arith.addf %12, %25 : vector<8x128xf32>
      %c0_20 = arith.constant 0 : index
      %c0_21 = arith.constant 0 : index
      %27 = vector.load %arg6[%c0_20, %c0_21] : memref<8x128xf32, #tpu.memory_space<vmem>>, vector<8x128xf32>
      tpu.vector_store %arg6[%c0_20, %c0_21], %26 {strides = array<i32>} : memref<8x128xf32, #tpu.memory_space<vmem>>, vector<8x128xf32>,
    } else {
    }
    return
  }
  func.func @transform_0(%arg0: i32, %arg1: i32, %arg2: i32) -> (i32, i32) {
    %c0_i32 = arith.constant 0 : i32
    return %arg0, %arg2 : i32, i32
  }
  func.func @transform_1(%arg0: i32, %arg1: i32, %arg2: i32) -> (i32, i32) {
    %c0_i32 = arith.constant 0 : i32
    return %arg2, %arg1 : i32, i32
  }
  func.func @transform_2(%arg0: i32, %arg1: i32, %arg2: i32) -> (i32, i32) {
    %c0_i32 = arith.constant 0 : i32
    %c0_i32_0 = arith.constant 0 : i32
    return %c0_i32, %arg1 : i32, i32
  }
  func.func @transform_3(%arg0: i32, %arg1: i32, %arg2: i32) -> (i32, i32) {
    %c0_i32 = arith.constant 0 : i32
    return %arg0, %arg1 : i32, i32
  }
  func.func @transform_4(%arg0: i32, %arg1: i32, %arg2: i32) -> (i32, i32) {
    %c0_i32 = arith.constant 0 : i32
    return %arg0, %arg1 : i32, i32
  }
  func.func @transform_5(%arg0: i32, %arg1: i32, %arg2: i32) -> (i32, i32) {
    %c0_i32 = arith.constant 0 : i32
    return %arg0, %arg1 : i32, i32
  }
}

</mosaic_0001>

<bundles_post_ra>
// kernel: resnet50_forward.25
= control target key start
LH: loop header
LB: loop body
LE: loop exit
PB: predicated region body
PF: predicated region fallthrough
CT: control target
= control target key end

     0   :  { %s832_s0 = inlined_call_operand.vmem [shape: f32[512,128], index: 0, kind: input, shape index: {}]   ;;  %s833_s1 = inlined_call_operand.vmem [shape: f32[1,128], index: 1, kind: input, shape index: {}]   ;;  %s834_s2 = inlined_call_operand.vmem [shape: f32[1,128], index: 2, kind: input, shape index: {}]   ;;  %s835_s3 = inlined_call_operand.vmem [shape: f32[512,128], index: 3, kind: output, shape index: {}]  }
   0x1   :  { %v14_v0 = vld [vmem:[%s832_s0] sm:$0xff]  ;;  %v15_v4 = vld [vmem:[%s832_s0 + $0x8] sm:$0xff]  ;;  %v16_v5 = vld [vmem:[%s832_s0 + $0x10] sm:$0xff] }
   0x2   :  { %v316_v1 = vld [vmem:[%s833_s1] ss:$0 sm:$0xff]  ;;  %v17_v6 = vld [vmem:[%s832_s0 + $0x18] sm:$0xff]  ;;  %v19_v11 = vld [vmem:[%s832_s0 + $0x28] sm:$0xff] }
   0x3   :  { %v321_v2 = vld [vmem:[%s834_s2] ss:$0 sm:$0xff]  ;;  %v85_v3 = vmul.f32 %v316_v1, %v14_v0  ;;  %v86_v7 = vmul.f32 %v316_v1, %v15_v4  ;;  %v87_v8 = vmul.f32 %v316_v1, %v16_v5  ;;  %v88_v9 = vmul.f32 %v316_v1, %v17_v6  ;;  %v20_v12 = vld [vmem:[%s832_s0 + $0x30] sm:$0xff]  ;;  %v21_v17 = vld [vmem:[%s832_s0 + $0x38] sm:$0xff] }
   0x4   :  { %v18_v10 = vld [vmem:[%s832_s0 + $0x20] sm:$0xff]  ;;  %v90_v15 = vmul.f32 %v316_v1, %v19_v11  ;;  %v91_v16 = vmul.f32 %v316_v1, %v20_v12  ;;  %v23_v19 = vld [vmem:[%s832_s0 + $0x48] sm:$0xff]  ;;  %v92_v23 = vmul.f32 %v316_v1, %v21_v17  ;;  %v24_v24 = vld [vmem:[%s832_s0 + $0x50] sm:$0xff] }
   0x5   :  { %v156_v13 = vadd.f32 %v321_v2, %v85_v3  ;;  %v89_v14 = vmul.f32 %v316_v1, %v18_v10  ;;  %v22_v18 = vld [vmem:[%s832_s0 + $0x40] sm:$0xff]  ;;  %v157_v20 = vadd.f32 %v321_v2, %v86_v7  ;;  %v158_v21 = vadd.f32 %v321_v2, %v87_v8  ;;  %v25_v25 = vld [vmem:[%s832_s0 + $0x58] sm:$0xff]  ;;  %v27_v31 = vld [vmem:[%s832_s0 + $0x68] sm:$0xff] }
   0x6   :  { %v159_v22 = vadd.f32 %v321_v2, %v88_v9  ;;  %v26_v26 = vld [vmem:[%s832_s0 + $0x60] sm:$0xff]  ;;  %v161_v28 = vadd.f32 %v321_v2, %v90_v15  ;;  %v162_v29 = vadd.f32 %v321_v2, %v91_v16  ;;  %v93_v30 = vmul.f32 %v316_v1, %v22_v18  ;;  %v28_v32 = vld [vmem:[%s832_s0 + $0x70] sm:$0xff]  ;;  %v29_v33 = vld [vmem:[%s832_s0 + $0x78] sm:$0xff] }
   0x7   :  { %220 = vst [vmem:[%s835_s3] sm:$0xff] %v156_v13  ;;  %v160_v27 = vadd.f32 %v321_v2, %v89_v14  ;;  %221 = vst [vmem:[%s835_s3 + $0x8] sm:$0xff] %v157_v20  ;;  %v163_v34 = vadd.f32 %v321_v2, %v92_v23  ;;  %v94_v35 = vmul.f32 %v316_v1, %v23_v19  ;;  %v30_v38 = vld [vmem:[%s832_s0 + $0x80] sm:$0xff]  ;;  %v31_v43 = vld [vmem:[%s832_s0 + $0x88] sm:$0xff] }
   0x8   :  { %222 = vst [vmem:[%s835_s3 + $0x10] sm:$0xff] %v158_v21  ;;  %223 = vst [vmem:[%s835_s3 + $0x18] sm:$0xff] %v159_v22  ;;  %v95_v36 = vmul.f32 %v316_v1, %v24_v24  ;;  %v96_v37 = vmul.f32 %v316_v1, %v25_v25  ;;  %v164_v39 = vadd.f32 %v321_v2, %v93_v30  ;;  %v32_v44 = vld [vmem:[%s832_s0 + $0x90] sm:$0xff]  ;;  %v33_v45 = vld [vmem:[%s832_s0 + $0x98] sm:$0xff] }
   0x9   :  { %224 = vst [vmem:[%s835_s3 + $0x20] sm:$0xff] %v160_v27  ;;  %225 = vst [vmem:[%s835_s3 + $0x28] sm:$0xff] %v161_v28  ;;  %v97_v40 = vmul.f32 %v316_v1, %v26_v26  ;;  %v98_v41 = vmul.f32 %v316_v1, %v27_v31  ;;  %v99_v42 = vmul.f32 %v316_v1, %v28_v32  ;;  %v34_v50 = vld [vmem:[%s832_s0 + $0xa0] sm:$0xff]  ;;  %v35_v51 = vld [vmem:[%s832_s0 + $0xa8] sm:$0xff] }
   0xa   :  { %226 = vst [vmem:[%s835_s3 + $0x30] sm:$0xff] %v162_v29  ;;  %227 = vst [vmem:[%s835_s3 + $0x38] sm:$0xff] %v163_v34  ;;  %v165_v46 = vadd.f32 %v321_v2, %v94_v35  ;;  %v166_v47 = vadd.f32 %v321_v2, %v95_v36  ;;  %v167_v48 = vadd.f32 %v321_v2, %v96_v37  ;;  %v36_v52 = vld [vmem:[%s832_s0 + $0xb0] sm:$0xff]  ;;  %v37_v57 = vld [vmem:[%s832_s0 + $0xb8] sm:$0xff] }
   0xb   :  { %v100_v49 = vmul.f32 %v316_v1, %v29_v33  ;;  %228 = vst [vmem:[%s835_s3 + $0x40] sm:$0xff] %v164_v39  ;;  %v168_v53 = vadd.f32 %v321_v2, %v97_v40  ;;  %v169_v54 = vadd.f32 %v321_v2, %v98_v41  ;;  %v170_v55 = vadd.f32 %v321_v2, %v99_v42  ;;  %v38_v62 = vld [vmem:[%s832_s0 + $0xc0] sm:$0xff]  ;;  %v39_v5 = vld [vmem:[%s832_s0 + $0xc8] sm:$0xff]  ;;  %v40_v6 = vld [vmem:[%s832_s0 + $0xd0] sm:$0xff] }
   0xc   :  { %v101_v56 = vmul.f32 %v316_v1, %v30_v38  ;;  %229 = vst [vmem:[%s835_s3 + $0x48] sm:$0xff] %v165_v46  ;;  %230 = vst [vmem:[%s835_s3 + $0x50] sm:$0xff] %v166_v47  ;;  %v102_v59 = vmul.f32 %v316_v1, %v31_v43  ;;  %v103_v60 = vmul.f32 %v316_v1, %v32_v44  ;;  %v41_v7 = vld [vmem:[%s832_s0 + $0xd8] sm:$0xff]  ;;  %v42_v12 = vld [vmem:[%s832_s0 + $0xe0] sm:$0xff] }
   0xd   :  { %231 = vst [vmem:[%s835_s3 + $0x58] sm:$0xff] %v167_v48  ;;  %v171_v58 = vadd.f32 %v321_v2, %v100_v49  ;;  %v104_v61 = vmul.f32 %v316_v1, %v33_v45  ;;  %232 = vst [vmem:[%s835_s3 + $0x60] sm:$0xff] %v168_v53  ;;  %v105_v0 = vmul.f32 %v316_v1, %v34_v50  ;;  %v43_v13 = vld [vmem:[%s832_s0 + $0xe8] sm:$0xff]  ;;  %v44_v14 = vld [vmem:[%s832_s0 + $0xf0] sm:$0xff] }
   0xe   :  { %233 = vst [vmem:[%s835_s3 + $0x68] sm:$0xff] %v169_v54  ;;  %234 = vst [vmem:[%s835_s3 + $0x70] sm:$0xff] %v170_v55  ;;  %v172_v63 = vadd.f32 %v321_v2, %v101_v56  ;;  %v106_v3 = vmul.f32 %v316_v1, %v35_v51  ;;  %v107_v4 = vmul.f32 %v316_v1, %v36_v52  ;;  %v45_v19 = vld [vmem:[%s832_s0 + $0xf8] sm:$0xff]  ;;  %v46_v24 = vld [vmem:[%s832_s0 + $0x100] sm:$0xff] }
   0xf   :  { %235 = vst [vmem:[%s835_s3 + $0x78] sm:$0xff] %v171_v58  ;;  %v173_v8 = vadd.f32 %v321_v2, %v102_v59  ;;  %v174_v9 = vadd.f32 %v321_v2, %v103_v60  ;;  %v175_v10 = vadd.f32 %v321_v2, %v104_v61  ;;  %v108_v11 = vmul.f32 %v316_v1, %v37_v57  ;;  %v47_v29 = vld [vmem:[%s832_s0 + $0x108] sm:$0xff]  ;;  %v48_v30 = vld [vmem:[%s832_s0 + $0x110] sm:$0xff]  ;;  %v49_v31 = vld [vmem:[%s832_s0 + $0x118] sm:$0xff] }
  0x10   :  { %236 = vst [vmem:[%s835_s3 + $0x80] sm:$0xff] %v172_v63  ;;  %v176_v15 = vadd.f32 %v321_v2, %v105_v0  ;;  %v177_v16 = vadd.f32 %v321_v2, %v106_v3  ;;  %v178_v17 = vadd.f32 %v321_v2, %v107_v4  ;;  %v109_v18 = vmul.f32 %v316_v1, %v38_v62  ;;  %v50_v36 = vld [vmem:[%s832_s0 + $0x120] sm:$0xff]  ;;  %v51_v37 = vld [vmem:[%s832_s0 + $0x128] sm:$0xff]  ;;  %v52_v38 = vld [vmem:[%s832_s0 + $0x130] sm:$0xff] }
  0x11   :  { %237 = vst [vmem:[%s835_s3 + $0x88] sm:$0xff] %v173_v8  ;;  %238 = vst [vmem:[%s835_s3 + $0x90] sm:$0xff] %v174_v9  ;;  %v179_v20 = vadd.f32 %v321_v2, %v108_v11  ;;  %v110_v21 = vmul.f32 %v316_v1, %v39_v5  ;;  %v111_v22 = vmul.f32 %v316_v1, %v40_v6  ;;  %v53_v43 = vld [vmem:[%s832_s0 + $0x138] sm:$0xff]  ;;  %v54_v48 = vld [vmem:[%s832_s0 + $0x140] sm:$0xff] }
  0x12   :  { %239 = vst [vmem:[%s835_s3 + $0x98] sm:$0xff] %v175_v10  ;;  %v112_v23 = vmul.f32 %v316_v1, %v41_v7  ;;  %240 = vst [vmem:[%s835_s3 + $0xa0] sm:$0xff] %v176_v15  ;;  %v180_v25 = vadd.f32 %v321_v2, %v109_v18  ;;  %v113_v26 = vmul.f32 %v316_v1, %v42_v12  ;;  %v55_v53 = vld [vmem:[%s832_s0 + $0x148] sm:$0xff]  ;;  %v56_v54 = vld [vmem:[%s832_s0 + $0x150] sm:$0xff] }
  0x13   :  { %241 = vst [vmem:[%s835_s3 + $0xa8] sm:$0xff] %v177_v16  ;;  %242 = vst [vmem:[%s835_s3 + $0xb0] sm:$0xff] %v178_v17  ;;  %v114_v27 = vmul.f32 %v316_v1, %v43_v13  ;;  %v115_v28 = vmul.f32 %v316_v1, %v44_v14  ;;  %v181_v32 = vadd.f32 %v321_v2, %v110_v21  ;;  %v57_v55 = vld [vmem:[%s832_s0 + $0x158] sm:$0xff]  ;;  %v58_v60 = vld [vmem:[%s832_s0 + $0x160] sm:$0xff] }
  0x14   :  { %243 = vst [vmem:[%s835_s3 + $0xb8] sm:$0xff] %v179_v20  ;;  %v182_v33 = vadd.f32 %v321_v2, %v111_v22  ;;  %v183_v34 = vadd.f32 %v321_v2, %v112_v23  ;;  %v116_v35 = vmul.f32 %v316_v1, %v45_v19  ;;  %244 = vst [vmem:[%s835_s3 + $0xc0] sm:$0xff] %v180_v25  ;;  %v59_v61 = vld [vmem:[%s832_s0 + $0x168] sm:$0xff]  ;;  %v60_v62 = vld [vmem:[%s832_s0 + $0x170] sm:$0xff] }
  0x15   :  { %v184_v39 = vadd.f32 %v321_v2, %v113_v26  ;;  %v185_v40 = vadd.f32 %v321_v2, %v114_v27  ;;  %v186_v41 = vadd.f32 %v321_v2, %v115_v28  ;;  %v117_v42 = vmul.f32 %v316_v1, %v46_v24  ;;  %245 = vst [vmem:[%s835_s3 + $0xc8] sm:$0xff] %v181_v32  ;;  %v61_v5 = vld [vmem:[%s832_s0 + $0x178] sm:$0xff]  ;;  %v62_v10 = vld [vmem:[%s832_s0 + $0x180] sm:$0xff]  ;;  %v63_v15 = vld [vmem:[%s832_s0 + $0x188] sm:$0xff] }
  0x16   :  { %246 = vst [vmem:[%s835_s3 + $0xd0] sm:$0xff] %v182_v33  ;;  %247 = vst [vmem:[%s835_s3 + $0xd8] sm:$0xff] %v183_v34  ;;  %v187_v44 = vadd.f32 %v321_v2, %v116_v35  ;;  %v118_v45 = vmul.f32 %v316_v1, %v47_v29  ;;  %v119_v46 = vmul.f32 %v316_v1, %v48_v30  ;;  %v64_v16 = vld [vmem:[%s832_s0 + $0x190] sm:$0xff]  ;;  %v65_v17 = vld [vmem:[%s832_s0 + $0x198] sm:$0xff] }
  0x17   :  { %v120_v47 = vmul.f32 %v316_v1, %v49_v31  ;;  %248 = vst [vmem:[%s835_s3 + $0xe0] sm:$0xff] %v184_v39  ;;  %249 = vst [vmem:[%s835_s3 + $0xe8] sm:$0xff] %v185_v40  ;;  %v188_v49 = vadd.f32 %v321_v2, %v117_v42  ;;  %v121_v50 = vmul.f32 %v316_v1, %v50_v36  ;;  %v66_v22 = vld [vmem:[%s832_s0 + $0x1a0] sm:$0xff]  ;;  %v67_v23 = vld [vmem:[%s832_s0 + $0x1a8] sm:$0xff] }
  0x18   :  { %250 = vst [vmem:[%s835_s3 + $0xf0] sm:$0xff] %v186_v41  ;;  %v122_v51 = vmul.f32 %v316_v1, %v51_v37  ;;  %v123_v52 = vmul.f32 %v316_v1, %v52_v38  ;;  %251 = vst [vmem:[%s835_s3 + $0xf8] sm:$0xff] %v187_v44  ;;  %v189_v56 = vadd.f32 %v321_v2, %v118_v45  ;;  %v68_v24 = vld [vmem:[%s832_s0 + $0x1b0] sm:$0xff]  ;;  %v69_v29 = vld [vmem:[%s832_s0 + $0x1b8] sm:$0xff] }
  0x19   :  { %v190_v57 = vadd.f32 %v321_v2, %v119_v46  ;;  %v191_v58 = vadd.f32 %v321_v2, %v120_v47  ;;  %v124_v59 = vmul.f32 %v316_v1, %v53_v43  ;;  %252 = vst [vmem:[%s835_s3 + $0x100] sm:$0xff] %v188_v49  ;;  %v192_v63 = vadd.f32 %v321_v2, %v121_v50  ;;  %v70_v34 = vld [vmem:[%s832_s0 + $0x1c0] sm:$0xff]  ;;  %v71_v39 = vld [vmem:[%s832_s0 + $0x1c8] sm:$0xff]  ;;  %v72_v40 = vld [vmem:[%s832_s0 + $0x1d0] sm:$0xff] }
  0x1a   :  { %v193_v0 = vadd.f32 %v321_v2, %v122_v51  ;;  %v194_v3 = vadd.f32 %v321_v2, %v123_v52  ;;  %v125_v4 = vmul.f32 %v316_v1, %v54_v48  ;;  %253 = vst [vmem:[%s835_s3 + $0x108] sm:$0xff] %v189_v56  ;;  %v126_v7 = vmul.f32 %v316_v1, %v55_v53  ;;  %v73_v41 = vld [vmem:[%s832_s0 + $0x1d8] sm:$0xff]  ;;  %v74_v46 = vld [vmem:[%s832_s0 + $0x1e0] sm:$0xff]  ;;  %v75_v47 = vld [vmem:[%s832_s0 + $0x1e8] sm:$0xff] }
  0x1b   :  { %254 = vst [vmem:[%s835_s3 + $0x110] sm:$0xff] %v190_v57  ;;  %255 = vst [vmem:[%s835_s3 + $0x118] sm:$0xff] %v191_v58  ;;  %v195_v6 = vadd.f32 %v321_v2, %v124_v59  ;;  %v127_v8 = vmul.f32 %v316_v1, %v56_v54  ;;  %v128_v9 = vmul.f32 %v316_v1, %v57_v55  ;;  %v76_v48 = vld [vmem:[%s832_s0 + $0x1f0] sm:$0xff]  ;;  %v77_v53 = vld [vmem:[%s832_s0 + $0x1f8] sm:$0xff] }
  0x1c   :  { %256 = vst [vmem:[%s835_s3 + $0x120] sm:$0xff] %v192_v63  ;;  %257 = vst [vmem:[%s835_s3 + $0x128] sm:$0xff] %v193_v0  ;;  %v196_v11 = vadd.f32 %v321_v2, %v125_v4  ;;  %v129_v12 = vmul.f32 %v316_v1, %v58_v60  ;;  %v130_v13 = vmul.f32 %v316_v1, %v59_v61 }
  0x1d   :  { %258 = vst [vmem:[%s835_s3 + $0x130] sm:$0xff] %v194_v3  ;;  %v131_v14 = vmul.f32 %v316_v1, %v60_v62  ;;  %259 = vst [vmem:[%s835_s3 + $0x138] sm:$0xff] %v195_v6  ;;  %v197_v18 = vadd.f32 %v321_v2, %v126_v7  ;;  %v198_v19 = vadd.f32 %v321_v2, %v127_v8 }
  0x1e   :  { %v199_v20 = vadd.f32 %v321_v2, %v128_v9  ;;  %v132_v21 = vmul.f32 %v316_v1, %v61_v5  ;;  %260 = vst [vmem:[%s835_s3 + $0x140] sm:$0xff] %v196_v11  ;;  %v200_v25 = vadd.f32 %v321_v2, %v129_v12  ;;  %v201_v26 = vadd.f32 %v321_v2, %v130_v13 }
  0x1f   :  { %v202_v27 = vadd.f32 %v321_v2, %v131_v14  ;;  %v133_v28 = vmul.f32 %v316_v1, %v62_v10  ;;  %261 = vst [vmem:[%s835_s3 + $0x148] sm:$0xff] %v197_v18  ;;  %262 = vst [vmem:[%s835_s3 + $0x150] sm:$0xff] %v198_v19  ;;  %v134_v31 = vmul.f32 %v316_v1, %v63_v15 }
  0x20   :  { %263 = vst [vmem:[%s835_s3 + $0x158] sm:$0xff] %v199_v20  ;;  %v203_v30 = vadd.f32 %v321_v2, %v132_v21  ;;  %v135_v32 = vmul.f32 %v316_v1, %v64_v16  ;;  %v136_v33 = vmul.f32 %v316_v1, %v65_v17  ;;  %264 = vst [vmem:[%s835_s3 + $0x160] sm:$0xff] %v200_v25 }
  0x21   :  { %265 = vst [vmem:[%s835_s3 + $0x168] sm:$0xff] %v201_v26  ;;  %266 = vst [vmem:[%s835_s3 + $0x170] sm:$0xff] %v202_v27  ;;  %v204_v35 = vadd.f32 %v321_v2, %v133_v28  ;;  %v137_v36 = vmul.f32 %v316_v1, %v66_v22  ;;  %v138_v37 = vmul.f32 %v316_v1, %v67_v23 }
  0x22   :  { %v139_v38 = vmul.f32 %v316_v1, %v68_v24  ;;  %267 = vst [vmem:[%s835_s3 + $0x178] sm:$0xff] %v203_v30  ;;  %v205_v42 = vadd.f32 %v321_v2, %v134_v31  ;;  %v206_v43 = vadd.f32 %v321_v2, %v135_v32  ;;  %v207_v44 = vadd.f32 %v321_v2, %v136_v33 }
  0x23   :  { %v140_v45 = vmul.f32 %v316_v1, %v69_v29  ;;  %268 = vst [vmem:[%s835_s3 + $0x180] sm:$0xff] %v204_v35  ;;  %v208_v49 = vadd.f32 %v321_v2, %v137_v36  ;;  %v209_v50 = vadd.f32 %v321_v2, %v138_v37  ;;  %v141_v52 = vmul.f32 %v316_v1, %v70_v34 }
  0x24   :  { %v210_v51 = vadd.f32 %v321_v2, %v139_v38  ;;  %269 = vst [vmem:[%s835_s3 + $0x188] sm:$0xff] %v205_v42  ;;  %270 = vst [vmem:[%s835_s3 + $0x190] sm:$0xff] %v206_v43  ;;  %v142_v55 = vmul.f32 %v316_v1, %v71_v39  ;;  %v143_v56 = vmul.f32 %v316_v1, %v72_v40 }
  0x25   :  { %271 = vst [vmem:[%s835_s3 + $0x198] sm:$0xff] %v207_v44  ;;  %v211_v54 = vadd.f32 %v321_v2, %v140_v45  ;;  %v144_v57 = vmul.f32 %v316_v1, %v73_v41  ;;  %272 = vst [vmem:[%s835_s3 + $0x1a0] sm:$0xff] %v208_v49  ;;  %v212_v58 = vadd.f32 %v321_v2, %v141_v52 }
  0x26   :  { %273 = vst [vmem:[%s835_s3 + $0x1a8] sm:$0xff] %v209_v50  ;;  %274 = vst [vmem:[%s835_s3 + $0x1b0] sm:$0xff] %v210_v51  ;;  %v145_v59 = vmul.f32 %v316_v1, %v74_v46  ;;  %v146_v60 = vmul.f32 %v316_v1, %v75_v47  ;;  %v147_v61 = vmul.f32 %v316_v1, %v76_v48 }
  0x27   :  { %275 = vst [vmem:[%s835_s3 + $0x1b8] sm:$0xff] %v211_v54  ;;  %v213_v62 = vadd.f32 %v321_v2, %v142_v55  ;;  %v214_v63 = vadd.f32 %v321_v2, %v143_v56  ;;  %v215_v0 = vadd.f32 %v321_v2, %v144_v57  ;;  %v148_v3 = vmul.f32 %v316_v1, %v77_v53 }
  0x28   :  { %276 = vst [vmem:[%s835_s3 + $0x1c0] sm:$0xff] %v212_v58  ;;  %v216_v4 = vadd.f32 %v321_v2, %v145_v59  ;;  %v217_v5 = vadd.f32 %v321_v2, %v146_v60  ;;  %v218_v6 = vadd.f32 %v321_v2, %v147_v61 }
  0x29   :  { %277 = vst [vmem:[%s835_s3 + $0x1c8] sm:$0xff] %v213_v62  ;;  %278 = vst [vmem:[%s835_s3 + $0x1d0] sm:$0xff] %v214_v63  ;;  %v219_v1 = vadd.f32 %v321_v2, %v148_v3 }
  0x2a   :  { %279 = vst [vmem:[%s835_s3 + $0x1d8] sm:$0xff] %v215_v0  ;;  %280 = vst [vmem:[%s835_s3 + $0x1e0] sm:$0xff] %v216_v4 }
  0x2b   :  { %281 = vst [vmem:[%s835_s3 + $0x1e8] sm:$0xff] %v217_v5  ;;  %282 = vst [vmem:[%s835_s3 + $0x1f0] sm:$0xff] %v218_v6 }
  0x2c   :  { %283 = vst [vmem:[%s835_s3 + $0x1f8] sm:$0xff] %v219_v1 }

// kernel: resnet50_forward.24
= control target key start
LH: loop header
LB: loop body
LE: loop exit
PB: predicated region body
PF: predicated region fallthrough
CT: control target
= control target key end

     0   :  { %s1440_s18 = smov 0   ;;  %s1442_s19 = smov 0   ;;  %s1671_s0 = inlined_call_operand.vmem [shape: bf16[512,27], index: 0, kind: input, shape index: {}]   ;;  %s1672_s1 = inlined_call_operand.vmem [shape: bf16[27,128], index: 1, kind: input, shape index: {}]   ;;  %s1673_s2 = inlined_call_operand.vmem [shape: f32[1,128], index: 2, kind: input, shape index: {}]   ;;  %s1674_s3 = inlined_call_operand.vmem [shape: f32[512,128], index: 3, kind: output, shape index: {0}]   ;;  %s1675_s4 = inlined_call_operand.vmem [shape: f32[16,128], index: 4, kind: output, shape index: {1}]   ;;  %s1676_s5 = inlined_call_operand.vmem [shape: f32[16,128], index: 5, kind: output, shape index: {2}]  }
   0x1   :  { %s1444_s20 = smov 0  }
   0x2 LB: > { %s35_s21 = sadd.s32 1, %s1403_s19  ;;  %p1240_p0 = scmp.ge.s32.totalorder %s1407_s20, 1  ;;  %s1407_s20 = sphi %s1444_s20, %s16_s20   ;;  %s1403_s19 = sphi %s1442_s19, %s1678_s19   ;;  %s1399_s18 = sphi %s1440_s18, %s1677_s18  }
   0x3   : > { %p37_p1 = scmp.ge.s32.totalorder %s35_s21, 2  ;;  %p247_p2 = scmp.lt.s32.totalorder %s1407_s20, 3 }
   0x5   : > { %s1680_s21 = smov (%p37_p1, %s35_s21), 0  ;;  %p248_p3 = pnand %p1240_p0, %p247_p2 }
   0x6   : > { %s1241_s24 = sshll.u32 (!%p248_p3), %s1399_s18, 5  ;;  %p336_p5 = scmp.lt.s32.totalorder (!%p248_p3), %s1399_s18, 1 }
   0x7   : > { %251 = sbr.rel (%p248_p3) target bundleno = 301 (0x12d), region = 32  ;;  %p307_p4 = scmp.lt.s32.totalorder (!%p248_p3), %s1241_s24, 63 }
   0xc   : > { %v1367_v0 = vld [vmem:[%s1672_s1 + $0x8] sm:$0x3f]   ;;  %vm595_vm0 = vcmask 1044480   ;;  %vm596_vm1 = vcmask 1045504   ;;  %v1409_v1 = vmov 65535   ;;  %v1368_v5 = vld [vmem:[%s1672_s1] sm:$0xff]  }
   0xd   : > { %v597_v2 = vsel %vm595_vm0, 4294967295, %v1409_v1  ;;  %s1682_s24 = smov (!%p307_p4, %s1241_s24), 63  ;;  %vm546_vm2 = vcmask 220160   ;;  %v1511_v22 = vld [vmem:[%s1673_s2] ss:$0 sm:$0xff]  ;;  %s1684_s18 = smov (!%p336_p5, %s1399_s18), 1 }
   0xe   : > { %v598_v3 = vsel %vm596_vm1, %v597_v2, 0  ;;  %s1242_s27 = sshll.u32 %s1682_s24, 2  ;;  %s1244_s6 = sshll.u32 %s1682_s24, 3 }
   0xf   : > { %v600_v4 = vand.u32 %v1367_v0, %v598_v3  ;;  %s1473_s30 = scalar_lea.vmem %s1671_s0, %s1242_s27  ;;  %s1516_s11 = scalar_lea.vmem %s1674_s3, %s1244_s6 }
  0x10   : > { %v1369_v6 = vld [vmem:[%s1473_s30] sm:$0xff]   ;;  %v1370_v7 = vld [vmem:[%s1473_s30 + $0x8] sm:$0xff]   ;;  %v1371_v8 = vld [vmem:[%s1473_s30 + $0x10] sm:$0xff]   ;;  %s1245_s12 = sshll.u32 %s1684_s18, 3 }
  0x11   : > { %1302 = vmatprep.subr.bf16.mxu0 %v600_v4  ;;  %1338 = vmatprep.subr.bf16.mxu1 %v600_v4  ;;  %v1372_v9 = vld [vmem:[%s1473_s30 + $0x18] sm:$0xff]   ;;  %v1373_v10 = vld [vmem:[%s1473_s30 + $0x20] sm:$0xff]   ;;  %v1378_v12 = vld [vmem:[%s1473_s30 + $0x48] sm:$0xff]   ;;  %s342_s15 = scalar_lea.vmem %s1675_s4, %s1245_s12  ;;  %s349_s22 = scalar_lea.vmem %s1676_s5, %s1245_s12 }
  0x12   : > { %1303 = vmatpush3.bf16.msra.mxu0 %v600_v4  ;;  %1340 = vmatpush3.bf16.msra.mxu1 %v600_v4  ;;  %v1377_v11 = vld [vmem:[%s1473_s30 + $0x40] sm:$0xff]   ;;  %v1379_v13 = vld [vmem:[%s1473_s30 + $0x50] sm:$0xff]   ;;  %v1380_v14 = vld [vmem:[%s1473_s30 + $0x58] sm:$0xff]  }
  0x13   : > { %1304 = vmatprep.subr.bf16.mxu0 %v1368_v5  ;;  %1339 = vmatprep.subr.bf16.mxu1 %v1368_v5  ;;  %v1381_v15 = vld [vmem:[%s1473_s30 + $0x60] sm:$0xff]   ;;  %v1374_v16 = vld [vmem:[%s1473_s30 + $0x28] sm:$0xff]   ;;  %v1375_v17 = vld [vmem:[%s1473_s30 + $0x30] sm:$0xff]  }
  0x14   : > { %1306 = vmatprep.mubr.msk.bf16.mxu0 %vm546_vm2, %v1369_v6  ;;  %1322 = vmatprep.mubr.msk.bf16.mxu1 %vm546_vm2, %v1377_v11  ;;  %v1382_v18 = vld [vmem:[%s1473_s30 + $0x68] sm:$0xff]   ;;  %v1383_v19 = vld [vmem:[%s1473_s30 + $0x70] sm:$0xff]   ;;  %v1376_v20 = vld [vmem:[%s1473_s30 + $0x38] sm:$0xff]  }
  0x15   : > { %v1384_v21 = vld [vmem:[%s1473_s30 + $0x78] sm:$0xff]  }
  0x16   : > { %1305 = vmatpush3.bf16.msra.mxu0 %v1368_v5  ;;  %1341 = vmatpush3.bf16.msra.mxu1 %v1368_v5 }
  0x19   : > { %1307 = vmatmul.mubr.msk.bf16.vlgmr.msra.gmra.mxu0 %vm546_vm2, %v1370_v7  ;;  %1323 = vmatmul.mubr.msk.bf16.vlgmr.msra.gmra.mxu1 %vm546_vm2, %v1378_v12 }
  0x1a   : > { %1310 = vmatprep.mubr.msk.bf16.mxu0 %vm546_vm2, %v1371_v8  ;;  %1326 = vmatprep.mubr.msk.bf16.mxu1 %vm546_vm2, %v1379_v13 }
  0x21   : > { %1311 = vmatmul.mubr.msk.bf16.gmra.mxu0 %vm546_vm2, %v1372_v9  ;;  %1327 = vmatmul.mubr.msk.bf16.gmra.mxu1 %vm546_vm2, %v1380_v14 }
  0x22   : > { %1314 = vmatprep.mubr.msk.bf16.mxu0 %vm546_vm2, %v1373_v10  ;;  %1330 = vmatprep.mubr.msk.bf16.mxu1 %vm546_vm2, %v1381_v15 }
  0x29   : > { %1315 = vmatmul.mubr.msk.bf16.gmra.mxu0 %vm546_vm2, %v1374_v16  ;;  %1331 = vmatmul.mubr.msk.bf16.gmra.mxu1 %vm546_vm2, %v1382_v18 }
  0x2a   : > { %1318 = vmatprep.mubr.msk.bf16.mxu0 %vm546_vm2, %v1375_v17  ;;  %1334 = vmatprep.mubr.msk.bf16.mxu1 %vm546_vm2, %v1383_v19 }
  0x31   : > { %1319 = vmatmul.mubr.msk.bf16.gmra.mxu0 %vm546_vm2, %v1376_v20  ;;  %1335 = vmatmul.mubr.msk.bf16.gmra.mxu1 %vm546_vm2, %v1384_v21 }
  0xd9   : > { %v1308_v23 = vpop.f32.mrf.mxu0  ;;  %v1523_v30 = vpop.f32.mrf.mxu1 }
  0xda   : > { %v979_v24 = vadd.f32 %v1308_v23, %v1511_v22  ;;  %v995_v36 = vadd.f32 %v1523_v30, %v1511_v22  ;;  %v901_v38 = vmul.f32 %v1308_v23, %v1308_v23 }
  0xdb   : > { %v636_v25 = vpop.f32.mrf.mxu0  ;;  %v1529_v37 = vpop.f32.mrf.mxu1 }
  0xdc   : > { %1011 = vst [vmem:[%s1516_s11 + $0x10] sm:$0xff] %v979_v24  ;;  %v977_v26 = vadd.f32 %v1511_v22, %v636_v25  ;;  %v899_v31 = vmul.f32 %v636_v25, %v636_v25  ;;  %1027 = vst [vmem:[%s1516_s11 + $0x90] sm:$0xff] %v995_v36  ;;  %v993_v43 = vadd.f32 %v1511_v22, %v1529_v37 }
  0xdd   : > { %v1309_v27 = vpop.f32.mrf.mxu0  ;;  %v1536_v44 = vpop.f32.mrf.mxu1 }
  0xde   : > { %1009 = vst [vmem:[%s1516_s11] sm:$0xff] %v977_v26  ;;  %v980_v28 = vadd.f32 %v1309_v27, %v1511_v22  ;;  %v902_v45 = vmul.f32 %v1309_v27, %v1309_v27  ;;  %1025 = vst [vmem:[%s1516_s11 + $0x80] sm:$0xff] %v993_v43  ;;  %v996_v50 = vadd.f32 %v1536_v44, %v1511_v22 }
  0xdf   : > { %v639_v29 = vpop.f32.mrf.mxu0  ;;  %v1543_v51 = vpop.f32.mrf.mxu1 }
  0xe0   : > { %1012 = vst [vmem:[%s1516_s11 + $0x18] sm:$0xff] %v980_v28  ;;  %v862_v32 = vadd.f32 %v639_v29, %v636_v25  ;;  %v900_v33 = vmul.f32 %v639_v29, %v639_v29  ;;  %v978_v34 = vadd.f32 %v1511_v22, %v639_v29  ;;  %1028 = vst [vmem:[%s1516_s11 + $0x98] sm:$0xff] %v996_v50 }
  0xe1   : > { %v1312_v35 = vpop.f32.mrf.mxu0  ;;  %v994_v57 = vadd.f32 %v1511_v22, %v1543_v51  ;;  %v1550_v58 = vpop.f32.mrf.mxu1 }
  0xe2   : > { %v863_v39 = vadd.f32 %v1308_v23, %v862_v32  ;;  %v931_v40 = vadd.f32 %v900_v33, %v899_v31  ;;  %1010 = vst [vmem:[%s1516_s11 + $0x8] sm:$0xff] %v978_v34  ;;  %v983_v41 = vadd.f32 %v1312_v35, %v1511_v22  ;;  %v999_v0 = vadd.f32 %v1550_v58, %v1511_v22 }
  0xe3   : > { %v652_v42 = vpop.f32.mrf.mxu0  ;;  %1026 = vst [vmem:[%s1516_s11 + $0x88] sm:$0xff] %v994_v57  ;;  %v1557_v1 = vpop.f32.mrf.mxu1  ;;  %v905_v2 = vmul.f32 %v1312_v35, %v1312_v35 }
  0xe4   : > { %v932_v46 = vadd.f32 %v931_v40, %v901_v38  ;;  %1015 = vst [vmem:[%s1516_s11 + $0x30] sm:$0xff] %v983_v41  ;;  %v864_v47 = vadd.f32 %v1309_v27, %v863_v39  ;;  %v981_v48 = vadd.f32 %v1511_v22, %v652_v42  ;;  %v903_v53 = vmul.f32 %v652_v42, %v652_v42 }
  0xe5   : > { %v1313_v49 = vpop.f32.mrf.mxu0  ;;  %1031 = vst [vmem:[%s1516_s11 + $0xb0] sm:$0xff] %v999_v0  ;;  %v997_v7 = vadd.f32 %v1511_v22, %v1557_v1  ;;  %v1564_v8 = vpop.f32.mrf.mxu1 }
  0xe6   : > { %v865_v52 = vadd.f32 %v864_v47, %v652_v42  ;;  %v933_v54 = vadd.f32 %v932_v46, %v902_v45  ;;  %1013 = vst [vmem:[%s1516_s11 + $0x20] sm:$0xff] %v981_v48  ;;  %v984_v55 = vadd.f32 %v1313_v49, %v1511_v22  ;;  %v906_v9 = vmul.f32 %v1313_v49, %v1313_v49 }
  0xe7   : > { %v655_v56 = vpop.f32.mrf.mxu0  ;;  %1029 = vst [vmem:[%s1516_s11 + $0xa0] sm:$0xff] %v997_v7  ;;  %v1000_v14 = vadd.f32 %v1564_v8, %v1511_v22  ;;  %v1571_v15 = vpop.f32.mrf.mxu1 }
  0xe8   : > { %v934_v59 = vadd.f32 %v933_v54, %v903_v53  ;;  %1016 = vst [vmem:[%s1516_s11 + $0x38] sm:$0xff] %v984_v55  ;;  %v866_v60 = vadd.f32 %v865_v52, %v655_v56  ;;  %v904_v61 = vmul.f32 %v655_v56, %v655_v56  ;;  %v982_v62 = vadd.f32 %v1511_v22, %v655_v56 }
  0xe9   : > { %v1316_v63 = vpop.f32.mrf.mxu0  ;;  %1032 = vst [vmem:[%s1516_s11 + $0xb8] sm:$0xff] %v1000_v14  ;;  %v998_v21 = vadd.f32 %v1511_v22, %v1571_v15  ;;  %v1578_v23 = vpop.f32.mrf.mxu1 }
  0xea   : > { %v867_v3 = vadd.f32 %v1312_v35, %v866_v60  ;;  %v935_v4 = vadd.f32 %v934_v59, %v904_v61  ;;  %1014 = vst [vmem:[%s1516_s11 + $0x28] sm:$0xff] %v982_v62  ;;  %v987_v5 = vadd.f32 %v1316_v63, %v1511_v22  ;;  %v1003_v29 = vadd.f32 %v1578_v23, %v1511_v22 }
  0xeb   : > { %v668_v6 = vpop.f32.mrf.mxu0  ;;  %1030 = vst [vmem:[%s1516_s11 + $0xa8] sm:$0xff] %v998_v21  ;;  %v1585_v31 = vpop.f32.mrf.mxu1  ;;  %v909_v32 = vmul.f32 %v1316_v63, %v1316_v63 }
  0xec   : > { %v936_v10 = vadd.f32 %v935_v4, %v905_v2  ;;  %1019 = vst [vmem:[%s1516_s11 + $0x50] sm:$0xff] %v987_v5  ;;  %v868_v11 = vadd.f32 %v1313_v49, %v867_v3  ;;  %v985_v12 = vadd.f32 %v1511_v22, %v668_v6  ;;  %v907_v17 = vmul.f32 %v668_v6, %v668_v6 }
  0xed   : > { %v1317_v13 = vpop.f32.mrf.mxu0  ;;  %1035 = vst [vmem:[%s1516_s11 + $0xd0] sm:$0xff] %v1003_v29  ;;  %v1001_v38 = vadd.f32 %v1511_v22, %v1585_v31  ;;  %v1592_v39 = vpop.f32.mrf.mxu1  ;;  %v920_v29 = vmul.f32 %v1571_v15, %v1571_v15 }
  0xee   : > { %v869_v16 = vadd.f32 %v868_v11, %v668_v6  ;;  %v937_v18 = vadd.f32 %v936_v10, %v906_v9  ;;  %1017 = vst [vmem:[%s1516_s11 + $0x40] sm:$0xff] %v985_v12  ;;  %v988_v19 = vadd.f32 %v1317_v13, %v1511_v22  ;;  %v910_v40 = vmul.f32 %v1317_v13, %v1317_v13 }
  0xef   : > { %v671_v20 = vpop.f32.mrf.mxu0  ;;  %1033 = vst [vmem:[%s1516_s11 + $0xc0] sm:$0xff] %v1001_v38  ;;  %v1004_v46 = vadd.f32 %v1592_v39, %v1511_v22  ;;  %v735_v47 = vpop.f32.mrf.mxu1  ;;  %v915_v11 = vmul.f32 %v1529_v37, %v1529_v37 }
  0xf0   : > { %v938_v24 = vadd.f32 %v937_v18, %v907_v17  ;;  %1020 = vst [vmem:[%s1516_s11 + $0x58] sm:$0xff] %v988_v19  ;;  %v870_v25 = vadd.f32 %v869_v16, %v671_v20  ;;  %v908_v26 = vmul.f32 %v671_v20, %v671_v20  ;;  %v986_v27 = vadd.f32 %v1511_v22, %v671_v20 }
  0xf1   : > { %v1320_v28 = vpop.f32.mrf.mxu0  ;;  %1036 = vst [vmem:[%s1516_s11 + $0xd8] sm:$0xff] %v1004_v46  ;;  %v1002_v54 = vadd.f32 %v1511_v22, %v735_v47  ;;  %v1603_v55 = vpop.f32.mrf.mxu1  ;;  %v916_v17 = vmul.f32 %v1543_v51, %v1543_v51  ;;  %v917_v19 = vmul.f32 %v1523_v30, %v1523_v30 }
  0xf2   : > { %v871_v33 = vadd.f32 %v1316_v63, %v870_v25  ;;  %v939_v34 = vadd.f32 %v938_v24, %v908_v26  ;;  %1018 = vst [vmem:[%s1516_s11 + $0x48] sm:$0xff] %v986_v27  ;;  %v991_v35 = vadd.f32 %v1320_v28, %v1511_v22  ;;  %v1007_v61 = vadd.f32 %v1603_v55, %v1511_v22 }
  0xf3   : > { %v684_v36 = vpop.f32.mrf.mxu0  ;;  %1034 = vst [vmem:[%s1516_s11 + $0xc8] sm:$0xff] %v1002_v54  ;;  %v748_v62 = vpop.f32.mrf.mxu1  ;;  %v913_v63 = vmul.f32 %v1320_v28, %v1320_v28  ;;  %v918_v24 = vmul.f32 %v1536_v44, %v1536_v44  ;;  %v919_v26 = vmul.f32 %v1557_v1, %v1557_v1 }
  0xf4   : > { %v940_v41 = vadd.f32 %v939_v34, %v909_v32  ;;  %1023 = vst [vmem:[%s1516_s11 + $0x70] sm:$0xff] %v991_v35  ;;  %v872_v42 = vadd.f32 %v1317_v13, %v871_v33  ;;  %v989_v43 = vadd.f32 %v1511_v22, %v684_v36  ;;  %v911_v49 = vmul.f32 %v684_v36, %v684_v36 }
  0xf5   : > { %v1321_v45 = vpop.f32.mrf.mxu0  ;;  %v1005_v3 = vadd.f32 %v1511_v22, %v748_v62  ;;  %1039 = vst [vmem:[%s1516_s11 + $0xf0] sm:$0xff] %v1007_v61  ;;  %v1337_v4 = vpop.f32.mrf.mxu1 }
  0xf6   : > { %v873_v48 = vadd.f32 %v872_v42, %v684_v36  ;;  %v941_v50 = vadd.f32 %v940_v41, %v910_v40  ;;  %1021 = vst [vmem:[%s1516_s11 + $0x60] sm:$0xff] %v989_v43  ;;  %v992_v52 = vadd.f32 %v1321_v45, %v1511_v22  ;;  %v914_v5 = vmul.f32 %v1321_v45, %v1321_v45 }
  0xf7   : > { %v687_v53 = vpop.f32.mrf.mxu0  ;;  %1037 = vst [vmem:[%s1516_s11 + $0xe0] sm:$0xff] %v1005_v3  ;;  %v1008_v9 = vadd.f32 %v1337_v4, %v1511_v22  ;;  %v751_v10 = vpop.f32.mrf.mxu1  ;;  %v923_v36 = vmul.f32 %v1585_v31, %v1585_v31  ;;  %v924_v41 = vmul.f32 %v735_v47, %v735_v47  ;;  %v925_v42 = vmul.f32 %v1578_v23, %v1578_v23 }
  0xf8   : > { %v942_v56 = vadd.f32 %v941_v50, %v911_v49  ;;  %1024 = vst [vmem:[%s1516_s11 + $0x78] sm:$0xff] %v992_v52  ;;  %v874_v57 = vadd.f32 %v873_v48, %v687_v53  ;;  %v912_v59 = vmul.f32 %v687_v53, %v687_v53  ;;  %v990_v60 = vadd.f32 %v1511_v22, %v687_v53 }
  0xf9   : > { %1040 = vst [vmem:[%s1516_s11 + $0xf8] sm:$0xff] %v1008_v9  ;;  %v1006_v14 = vadd.f32 %v1511_v22, %v751_v10  ;;  %v929_v53 = vmul.f32 %v1603_v55, %v1603_v55 }
  0xfa   : > { %v875_v0 = vadd.f32 %v1320_v28, %v874_v57  ;;  %v943_v2 = vadd.f32 %v942_v56, %v912_v59  ;;  %1022 = vst [vmem:[%s1516_s11 + $0x68] sm:$0xff] %v990_v60  ;;  %v930_v56 = vmul.f32 %v1337_v4, %v1337_v4 }
  0xfb   : > { %1038 = vst [vmem:[%s1516_s11 + $0xe8] sm:$0xff] %v1006_v14 }
  0xfc   : > { %v876_v6 = vadd.f32 %v1321_v45, %v875_v0  ;;  %v944_v7 = vadd.f32 %v943_v2, %v913_v63  ;;  %v926_v45 = vmul.f32 %v1592_v39, %v1592_v39 }
  0xfe   : > { %v945_v12 = vadd.f32 %v944_v7, %v914_v5  ;;  %v877_v13 = vadd.f32 %v876_v6, %v1529_v37 }
 0x100   : > { %v878_v16 = vadd.f32 %v877_v13, %v1543_v51  ;;  %v946_v18 = vadd.f32 %v945_v12, %v915_v11 }
 0x102   : > { %v879_v20 = vadd.f32 %v1523_v30, %v878_v16  ;;  %v947_v21 = vadd.f32 %v946_v18, %v916_v17  ;;  %v921_v30 = vmul.f32 %v1550_v58, %v1550_v58 }
 0x104   : > { %v948_v37 = vadd.f32 %v947_v21, %v917_v19  ;;  %v880_v25 = vadd.f32 %v1536_v44, %v879_v20  ;;  %v922_v44 = vmul.f32 %v1564_v8, %v1564_v8 }
 0x106   : > { %v881_v22 = vadd.f32 %v880_v25, %v1557_v1  ;;  %v949_v51 = vadd.f32 %v948_v37, %v918_v24 }
 0x108   : > { %v950_v27 = vadd.f32 %v949_v51, %v919_v26  ;;  %v882_v28 = vadd.f32 %v881_v22, %v1571_v15 }
 0x10a   : > { %v883_v32 = vadd.f32 %v1550_v58, %v882_v28  ;;  %v951_v33 = vadd.f32 %v950_v27, %v920_v29 }
 0x10c   : > { %v952_v34 = vadd.f32 %v951_v33, %v921_v30  ;;  %v884_v35 = vadd.f32 %v1564_v8, %v883_v32 }
 0x10e   : > { %v885_v1 = vadd.f32 %v884_v35, %v1585_v31  ;;  %v953_v38 = vadd.f32 %v952_v34, %v922_v44  ;;  %v927_v31 = vmul.f32 %v748_v62, %v748_v62 }
 0x110   : > { %v954_v40 = vadd.f32 %v953_v38, %v923_v36  ;;  %v886_v15 = vadd.f32 %v885_v1, %v735_v47  ;;  %v928_v47 = vmul.f32 %v751_v10, %v751_v10 }
 0x112   : > { %v887_v58 = vadd.f32 %v1578_v23, %v886_v15  ;;  %v955_v43 = vadd.f32 %v954_v40, %v924_v41 }
 0x114   : > { %v956_v8 = vadd.f32 %v955_v43, %v925_v42  ;;  %v888_v46 = vadd.f32 %v1592_v39, %v887_v58 }
 0x116   : > { %v889_v48 = vadd.f32 %v888_v46, %v748_v62  ;;  %v957_v49 = vadd.f32 %v956_v8, %v926_v45 }
 0x118   : > { %v958_v50 = vadd.f32 %v957_v49, %v927_v31  ;;  %v890_v52 = vadd.f32 %v889_v48, %v751_v10 }
 0x11a   : > { %v891_v54 = vadd.f32 %v1603_v55, %v890_v52  ;;  %v959_v23 = vadd.f32 %v958_v50, %v928_v47 }
 0x11c   : > { %v892_v57 = vadd.f32 %v1337_v4, %v891_v54  ;;  %v960_v59 = vadd.f32 %v959_v23, %v929_v53 }
 0x11e   : > { %v893_v60 = vrot.slane %v892_v57, 4  ;;  %v961_v61 = vadd.f32 %v960_v59, %v930_v56 }
 0x120   : > { %v894_v39 = vadd.f32 %v893_v60, %v892_v57  ;;  %v962_v63 = vrot.slane %v961_v61, 4 }
 0x122   : > { %v895_v62 = vrot.slane %v894_v39, 2  ;;  %v963_v0 = vadd.f32 %v962_v63, %v961_v61 }
 0x124   : > { %v896_v2 = vadd.f32 %v895_v62, %v894_v39  ;;  %v964_v3 = vrot.slane %v963_v0, 2 }
 0x126   : > { %v897_v5 = vrot.slane %v896_v2, 1  ;;  %v965_v6 = vadd.f32 %v964_v3, %v963_v0 }
 0x128   : > { %v898_v55 = vadd.f32 %v897_v5, %v896_v2  ;;  %v966_v7 = vrot.slane %v965_v6, 1 }
 0x12a   : > { %v967_v4 = vadd.f32 %v966_v7, %v965_v6  ;;  %968 = vst [vmem:[%s342_s15] sm:$0xff] %v898_v55 }
 0x12c   : > { %969 = vst [vmem:[%s349_s22] sm:$0xff] %v967_v4 }
 0x12d PF: > { %s16_s20 = sadd.s32 1, %s1407_s20   ;;  %s1677_s18 = smov %s1403_s19 }
 0x12e   : > { %p13_p6 = scmp.ge.s32.totalorder %s16_s20, 4   ;;  %s1678_s19 = smov %s1680_s21 }
 0x130   :  { %15 = sbr.rel (!%p13_p6) target bundleno = 2 (0x2), region = 100 }

// kernel: resnet50_forward.26
= control target key start
LH: loop header
LB: loop body
LE: loop exit
PB: predicated region body
PF: predicated region fallthrough
CT: control target
= control target key end

     0   :  { %11 = vsyncpa [#allocation4], 0  ;;  %vm138_vm0 = vcmask 1043456   ;;  %vm113_vm1 = vcmask 64512   ;;  %s671_s0 = inlined_call_operand.vmem [shape: bf16[128,8], index: 0, kind: input, shape index: {}]   ;;  %s672_s1 = inlined_call_operand.vmem [shape: bf16[8,128], index: 1, kind: input, shape index: {}]   ;;  %s673_s2 = inlined_call_operand.vmem [shape: f32[1,128], index: 2, kind: input, shape index: {}]   ;;  %s674_s3 = inlined_call_operand.vmem [shape: f32[128,128], index: 3, kind: output, shape index: {0}]   ;;  %s675_s4 = inlined_call_operand.hbm [shape: f32[8,128], index: 4, kind: output, shape index: {1}]   ;;  %s676_s5 = inlined_call_operand.hbm [shape: f32[8,128], index: 5, kind: output, shape index: {2}]  }
   0x1   :  { %v72_v0 = vld [vmem:[%s672_s1] sm:$0xf]  ;;  %v472_v3 = vld [vmem:[%s671_s0 + $0x8] sm:$0xff]   ;;  %v473_v4 = vld [vmem:[%s671_s0 + $0x10] sm:$0xff]  }
   0x2   :  { %v471_v1 = vld [vmem:[%s671_s0] sm:$0xff]   ;;  %467 = vmatprep.subr.msk.bf16.mxu0 %vm138_vm0, %v72_v0  ;;  %v140_v2 = vsel %vm138_vm0, %v72_v0, 0  ;;  %468 = vmatprep.subr.msk.bf16.mxu1 %vm138_vm0, %v72_v0  ;;  %v476_v6 = vld [vmem:[%s671_s0 + $0x28] sm:$0xff]   ;;  %v477_v7 = vld [vmem:[%s671_s0 + $0x30] sm:$0xff]  }
   0x3   :  { %448 = vmatpush3.bf16.msra.mxu0 %v140_v2  ;;  %449 = vmatprep.mubr.msk.bf16.mxu0 %vm113_vm1, %v471_v1  ;;  %v475_v5 = vld [vmem:[%s671_s0 + $0x20] sm:$0xff]  }
   0x4   :  { %466 = vmatpush3.bf16.msra.mxu1 %v140_v2  ;;  %457 = vmatprep.mubr.msk.bf16.mxu1 %vm113_vm1, %v475_v5 }
   0x6   :  { %450 = vmatmul.mubr.msk.bf16.vlgmr.msra.gmra.mxu0 %vm113_vm1, %v472_v3 }
   0x7   :  { %453 = vmatprep.mubr.msk.bf16.mxu0 %vm113_vm1, %v473_v4  ;;  %458 = vmatmul.mubr.msk.bf16.vlgmr.msra.gmra.mxu1 %vm113_vm1, %v476_v6 }
   0x8   :  { %12 = vsyncpa [#allocation6], 0  ;;  %v474_v8 = vld [vmem:[%s671_s0 + $0x18] sm:$0xff]   ;;  %461 = vmatprep.mubr.msk.bf16.mxu1 %vm113_vm1, %v477_v7  ;;  %v593_v10 = vld [vmem:[%s673_s2] ss:$0 sm:$0xff]  ;;  %s524_s15 = smov [#allocation5]  }
   0x9   :  { %v478_v9 = vld [vmem:[%s671_s0 + $0x38] sm:$0xff]   ;;  %s407_s16 = sshll.u32 %s524_s15, 4  ;;  %s408_s16 = int_to_ptr.vmem [resolvable:$true] %s407_s16 }
   0xe   :  { %454 = vmatmul.mubr.msk.bf16.gmra.mxu0 %vm113_vm1, %v474_v8 }
   0xf   :  { %462 = vmatmul.mubr.msk.bf16.gmra.mxu1 %vm113_vm1, %v478_v9 }
  0xc6   :  { %v451_v11 = vpop.f32.mrf.mxu0 }
  0xc7   :  { %v359_v12 = vadd.f32 %v451_v11, %v593_v10  ;;  %v600_v15 = vpop.f32.mrf.mxu1  ;;  %v313_v29 = vmul.f32 %v451_v11, %v451_v11 }
  0xc8   :  { %v176_v13 = vpop.f32.mrf.mxu0  ;;  %v367_v17 = vadd.f32 %v600_v15, %v593_v10  ;;  %v321_v6 = vmul.f32 %v600_v15, %v600_v15 }
  0xc9   :  { %375 = vst [vmem:[%s674_s3 + $0x10] sm:$0xff] %v359_v12  ;;  %v357_v14 = vadd.f32 %v593_v10, %v176_v13  ;;  %v208_v19 = vpop.f32.mrf.mxu1  ;;  %v311_v22 = vmul.f32 %v176_v13, %v176_v13 }
  0xca   :  { %v452_v16 = vpop.f32.mrf.mxu0  ;;  %383 = vst [vmem:[%s674_s3 + $0x50] sm:$0xff] %v367_v17  ;;  %v365_v21 = vadd.f32 %v593_v10, %v208_v19  ;;  %v319_v0 = vmul.f32 %v208_v19, %v208_v19 }
  0xcb   :  { %373 = vst [vmem:[%s674_s3] sm:$0xff] %v357_v14  ;;  %v360_v18 = vadd.f32 %v452_v16, %v593_v10  ;;  %v460_v26 = vpop.f32.mrf.mxu1  ;;  %v314_v36 = vmul.f32 %v452_v16, %v452_v16 }
  0xcc   :  { %v179_v20 = vpop.f32.mrf.mxu0  ;;  %381 = vst [vmem:[%s674_s3 + $0x40] sm:$0xff] %v365_v21  ;;  %v368_v28 = vadd.f32 %v460_v26, %v593_v10  ;;  %v322_v9 = vmul.f32 %v460_v26, %v460_v26 }
  0xcd   :  { %376 = vst [vmem:[%s674_s3 + $0x18] sm:$0xff] %v360_v18  ;;  %v290_v23 = vadd.f32 %v179_v20, %v176_v13  ;;  %v312_v24 = vmul.f32 %v179_v20, %v179_v20  ;;  %v358_v25 = vadd.f32 %v593_v10, %v179_v20  ;;  %v211_v33 = vpop.f32.mrf.mxu1 }
  0xce   :  { %v455_v27 = vpop.f32.mrf.mxu0  ;;  %384 = vst [vmem:[%s674_s3 + $0x58] sm:$0xff] %v368_v28  ;;  %v366_v35 = vadd.f32 %v593_v10, %v211_v33  ;;  %v320_v4 = vmul.f32 %v211_v33, %v211_v33 }
  0xcf   :  { %v291_v30 = vadd.f32 %v451_v11, %v290_v23  ;;  %v327_v31 = vadd.f32 %v312_v24, %v311_v22  ;;  %374 = vst [vmem:[%s674_s3 + $0x8] sm:$0xff] %v358_v25  ;;  %v363_v32 = vadd.f32 %v455_v27, %v593_v10  ;;  %v463_v40 = vpop.f32.mrf.mxu1  ;;  %v317_v56 = vmul.f32 %v455_v27, %v455_v27 }
  0xd0   :  { %v192_v34 = vpop.f32.mrf.mxu0  ;;  %382 = vst [vmem:[%s674_s3 + $0x48] sm:$0xff] %v366_v35  ;;  %v371_v42 = vadd.f32 %v463_v40, %v593_v10  ;;  %v325_v20 = vmul.f32 %v463_v40, %v463_v40 }
  0xd1   :  { %v328_v37 = vadd.f32 %v327_v31, %v313_v29  ;;  %379 = vst [vmem:[%s674_s3 + $0x30] sm:$0xff] %v363_v32  ;;  %v292_v38 = vadd.f32 %v452_v16, %v291_v30  ;;  %v361_v39 = vadd.f32 %v593_v10, %v192_v34  ;;  %v315_v44 = vmul.f32 %v192_v34, %v192_v34  ;;  %v224_v47 = vpop.f32.mrf.mxu1 }
  0xd2   :  { %v456_v41 = vpop.f32.mrf.mxu0  ;;  %387 = vst [vmem:[%s674_s3 + $0x70] sm:$0xff] %v371_v42  ;;  %v369_v49 = vadd.f32 %v593_v10, %v224_v47  ;;  %v323_v13 = vmul.f32 %v224_v47, %v224_v47 }
  0xd3   :  { %v293_v43 = vadd.f32 %v292_v38, %v192_v34  ;;  %v329_v45 = vadd.f32 %v328_v37, %v314_v36  ;;  %377 = vst [vmem:[%s674_s3 + $0x20] sm:$0xff] %v361_v39  ;;  %v364_v46 = vadd.f32 %v456_v41, %v593_v10  ;;  %v464_v54 = vpop.f32.mrf.mxu1  ;;  %v318_v61 = vmul.f32 %v456_v41, %v456_v41 }
  0xd4   :  { %v195_v48 = vpop.f32.mrf.mxu0  ;;  %385 = vst [vmem:[%s674_s3 + $0x60] sm:$0xff] %v369_v49  ;;  %v372_v55 = vadd.f32 %v464_v54, %v593_v10  ;;  %v326_v22 = vmul.f32 %v464_v54, %v464_v54 }
  0xd5   :  { %v330_v50 = vadd.f32 %v329_v45, %v315_v44  ;;  %380 = vst [vmem:[%s674_s3 + $0x38] sm:$0xff] %v364_v46  ;;  %v294_v51 = vadd.f32 %v293_v43, %v195_v48  ;;  %v316_v52 = vmul.f32 %v195_v48, %v195_v48  ;;  %v362_v53 = vadd.f32 %v593_v10, %v195_v48  ;;  %v227_v59 = vpop.f32.mrf.mxu1 }
  0xd6   :  { %388 = vst [vmem:[%s674_s3 + $0x78] sm:$0xff] %v372_v55  ;;  %v370_v60 = vadd.f32 %v593_v10, %v227_v59  ;;  %v324_v18 = vmul.f32 %v227_v59, %v227_v59 }
  0xd7   :  { %v295_v57 = vadd.f32 %v455_v27, %v294_v51  ;;  %v331_v58 = vadd.f32 %v330_v50, %v316_v52  ;;  %378 = vst [vmem:[%s674_s3 + $0x28] sm:$0xff] %v362_v53 }
  0xd8   :  { %386 = vst [vmem:[%s674_s3 + $0x68] sm:$0xff] %v370_v60  ;;  %s523_s3 = smov [#allocation3]  }
  0xd9   :  { %v296_v62 = vadd.f32 %v456_v41, %v295_v57  ;;  %v332_v63 = vadd.f32 %v331_v58, %v317_v56  ;;  %s397_s2 = sshll.u32 %s523_s3, 4  ;;  %s398_s2 = int_to_ptr.vmem [resolvable:$true] %s397_s2 }
  0xda   :  { %s479_s17 = scalar_lea.vmem %s398_s2, 128  ;;  %p484_p1 = scmp.lt.s32.totalorder %s398_s2, %s398_s2 }
  0xdb   :  { %v333_v1 = vadd.f32 %v332_v63, %v318_v61  ;;  %v297_v2 = vadd.f32 %v296_v62, %v208_v19  ;;  %p480_p0 = scmp.ne.s32.totalorder %s398_s2, %s479_s17  ;;  %p485_p2 = scmp.lt.s32.totalorder %s479_s17, %s479_s17 }
  0xdd   :  { %v298_v3 = vadd.f32 %v297_v2, %v211_v33  ;;  %v334_v5 = vadd.f32 %v333_v1, %v319_v0  ;;  %p486_p3 = por %p485_p2, %p484_p1 }
  0xdf   :  { %v299_v7 = vadd.f32 %v600_v15, %v298_v3  ;;  %v335_v8 = vadd.f32 %v334_v5, %v320_v4  ;;  %p487_p4 = pnand %p486_p3, %p480_p0 }
  0xe1   :  { %v336_v10 = vadd.f32 %v335_v8, %v321_v6  ;;  %v300_v11 = vadd.f32 %v460_v26, %v299_v7 }
  0xe3   :  { %v301_v12 = vadd.f32 %v300_v11, %v224_v47  ;;  %v337_v14 = vadd.f32 %v336_v10, %v322_v9 }
  0xe5   :  { %v338_v16 = vadd.f32 %v337_v14, %v323_v13  ;;  %v302_v17 = vadd.f32 %v301_v12, %v227_v59 }
  0xe7   :  { %v303_v19 = vadd.f32 %v463_v40, %v302_v17  ;;  %v339_v21 = vadd.f32 %v338_v16, %v324_v18 }
  0xe9   :  { %v304_v23 = vadd.f32 %v464_v54, %v303_v19  ;;  %v340_v24 = vadd.f32 %v339_v21, %v325_v20 }
  0xeb   :  { %v341_v25 = vadd.f32 %v340_v24, %v326_v22  ;;  %v305_v27 = vrot.slane %v304_v23, 4 }
  0xed   :  { %v306_v28 = vadd.f32 %v305_v27, %v304_v23  ;;  %v342_v15 = vrot.slane %v341_v25, 4 }
  0xef   :  { %v307_v29 = vrot.slane %v306_v28, 2  ;;  %v343_v30 = vadd.f32 %v342_v15, %v341_v25 }
  0xf1   :  { %v308_v31 = vadd.f32 %v307_v29, %v306_v28  ;;  %v344_v26 = vrot.slane %v343_v30, 2 }
  0xf3   :  { %v309_v32 = vrot.slane %v308_v31, 1  ;;  %v345_v33 = vadd.f32 %v344_v26, %v343_v30 }
  0xf5   :  { %v310_v34 = vadd.f32 %v309_v32, %v308_v31  ;;  %v346_v35 = vrot.slane %v345_v33, 1 }
  0xf7   :  { %348 = vst [vmem:[#allocation3] sm:$0xff] %v310_v34  ;;  %v347_v36 = vadd.f32 %v346_v35, %v345_v33 }
  0xf8   :  { %490 = shalt.err (!%p487_p4)
}
  0xf9   :  { %400 = dma.vmem_to_hbm [thread:$0]  %s398_s2, 128, %s675_s4, [#allocation4]   ;;  %349 = vst [vmem:[#allocation5] sm:$0xff] %v347_v36 }
  0xfa   :  { %s499_s20 = scalar_lea.vmem %s408_s16, 128  ;;  %p504_p6 = scmp.lt.s32.totalorder %s408_s16, %s408_s16 }
  0xfb   :  { %p500_p5 = scmp.ne.s32.totalorder %s408_s16, %s499_s20  ;;  %p505_p7 = scmp.lt.s32.totalorder %s499_s20, %s499_s20 }
  0xfd   :  { %p506_p8 = por %p505_p7, %p504_p6 }
  0xff   :  { %p507_p9 = pnand %p506_p8, %p500_p5 }
 0x101   :  { %510 = shalt.err (!%p507_p9)
}
 0x102   :  { %410 = dma.vmem_to_hbm [thread:$0]  %s408_s16, 128, %s676_s5, [#allocation6]  }
 0x103   :  { %519 = dma.done.wait [#allocation4], 128  }
 0x104   :  { %520 = vsyncadd [#allocation4], 4294967168 }
 0x105   :  { %521 = dma.done.wait [#allocation6], 128  }
 0x106   :  { %522 = vsyncadd [#allocation6], 4294967168 }
 0x107   :  { %419 = vsyncpa [#allocation4], 1 }
 0x108   :  { %420 = vsyncpa [#allocation6], 1 }

// kernel: resnet50_forward.28
= control target key start
LH: loop header
LB: loop body
LE: loop exit
PB: predicated region body
PF: predicated region fallthrough
CT: control target
= control target key end

     0   :  { %s254_s0 = inlined_call_operand.vmem [shape: f32[128,128], index: 0, kind: input, shape index: {}]   ;;  %s255_s1 = inlined_call_operand.vmem [shape: f32[1,128], index: 1, kind: input, shape index: {}]   ;;  %s256_s2 = inlined_call_operand.vmem [shape: f32[1,128], index: 2, kind: input, shape index: {}]   ;;  %s257_s3 = inlined_call_operand.vmem [shape: f32[128,128], index: 3, kind: output, shape index: {}]  }
   0x1   :  { %v14_v0 = vld [vmem:[%s254_s0] sm:$0xff]  ;;  %v15_v4 = vld [vmem:[%s254_s0 + $0x8] sm:$0xff]  ;;  %v16_v5 = vld [vmem:[%s254_s0 + $0x10] sm:$0xff] }
   0x2   :  { %v112_v1 = vld [vmem:[%s255_s1] ss:$0 sm:$0xff]  ;;  %v17_v6 = vld [vmem:[%s254_s0 + $0x18] sm:$0xff]  ;;  %v19_v11 = vld [vmem:[%s254_s0 + $0x28] sm:$0xff] }
   0x3   :  { %v143_v2 = vld [vmem:[%s256_s2] ss:$0 sm:$0xff]  ;;  %v37_v3 = vmul.f32 %v112_v1, %v14_v0  ;;  %v38_v7 = vmul.f32 %v112_v1, %v15_v4  ;;  %v39_v8 = vmul.f32 %v112_v1, %v16_v5  ;;  %v40_v9 = vmul.f32 %v112_v1, %v17_v6  ;;  %v20_v12 = vld [vmem:[%s254_s0 + $0x30] sm:$0xff]  ;;  %v21_v17 = vld [vmem:[%s254_s0 + $0x38] sm:$0xff] }
   0x4   :  { %v18_v10 = vld [vmem:[%s254_s0 + $0x20] sm:$0xff]  ;;  %v42_v15 = vmul.f32 %v112_v1, %v19_v11  ;;  %v43_v16 = vmul.f32 %v112_v1, %v20_v12  ;;  %v44_v21 = vmul.f32 %v112_v1, %v21_v17  ;;  %v23_v27 = vld [vmem:[%s254_s0 + $0x48] sm:$0xff]  ;;  %v24_v28 = vld [vmem:[%s254_s0 + $0x50] sm:$0xff] }
   0x5   :  { %v60_v13 = vadd.f32 %v143_v2, %v37_v3  ;;  %v41_v14 = vmul.f32 %v112_v1, %v18_v10  ;;  %v61_v18 = vadd.f32 %v143_v2, %v38_v7  ;;  %v62_v19 = vadd.f32 %v143_v2, %v39_v8  ;;  %v22_v22 = vld [vmem:[%s254_s0 + $0x40] sm:$0xff]  ;;  %v25_v29 = vld [vmem:[%s254_s0 + $0x58] sm:$0xff]  ;;  %v27_v35 = vld [vmem:[%s254_s0 + $0x68] sm:$0xff] }
   0x6   :  { %v63_v20 = vadd.f32 %v143_v2, %v40_v9  ;;  %v65_v25 = vadd.f32 %v143_v2, %v42_v15  ;;  %v66_v26 = vadd.f32 %v143_v2, %v43_v16  ;;  %v67_v33 = vadd.f32 %v143_v2, %v44_v21  ;;  %v26_v34 = vld [vmem:[%s254_s0 + $0x60] sm:$0xff]  ;;  %v28_v36 = vld [vmem:[%s254_s0 + $0x70] sm:$0xff]  ;;  %v29_v41 = vld [vmem:[%s254_s0 + $0x78] sm:$0xff] }
   0x7   :  { %v76_v23 = vmax.f32 %v60_v13, 0.0  ;;  %v64_v24 = vadd.f32 %v143_v2, %v41_v14  ;;  %v77_v30 = vmax.f32 %v61_v18, 0.0  ;;  %v78_v31 = vmax.f32 %v62_v19, 0.0 }
   0x8   :  { %v79_v32 = vmax.f32 %v63_v20, 0.0  ;;  %v81_v38 = vmax.f32 %v65_v25, 0.0  ;;  %v82_v39 = vmax.f32 %v66_v26, 0.0  ;;  %v45_v40 = vmul.f32 %v112_v1, %v22_v22 }
   0x9   :  { %92 = vst [vmem:[%s257_s3] sm:$0xff] %v76_v23  ;;  %v80_v37 = vmax.f32 %v64_v24, 0.0  ;;  %93 = vst [vmem:[%s257_s3 + $0x8] sm:$0xff] %v77_v30  ;;  %v83_v42 = vmax.f32 %v67_v33, 0.0  ;;  %v46_v43 = vmul.f32 %v112_v1, %v23_v27  ;;  %v47_v44 = vmul.f32 %v112_v1, %v24_v28 }
   0xa   :  { %94 = vst [vmem:[%s257_s3 + $0x10] sm:$0xff] %v78_v31  ;;  %95 = vst [vmem:[%s257_s3 + $0x18] sm:$0xff] %v79_v32  ;;  %v48_v45 = vmul.f32 %v112_v1, %v25_v29  ;;  %v68_v46 = vadd.f32 %v143_v2, %v45_v40  ;;  %v49_v47 = vmul.f32 %v112_v1, %v26_v34 }
   0xb   :  { %96 = vst [vmem:[%s257_s3 + $0x20] sm:$0xff] %v80_v37  ;;  %97 = vst [vmem:[%s257_s3 + $0x28] sm:$0xff] %v81_v38  ;;  %v50_v48 = vmul.f32 %v112_v1, %v27_v35  ;;  %v51_v49 = vmul.f32 %v112_v1, %v28_v36  ;;  %v69_v50 = vadd.f32 %v143_v2, %v46_v43 }
   0xc   :  { %98 = vst [vmem:[%s257_s3 + $0x30] sm:$0xff] %v82_v39  ;;  %99 = vst [vmem:[%s257_s3 + $0x38] sm:$0xff] %v83_v42  ;;  %v70_v51 = vadd.f32 %v143_v2, %v47_v44  ;;  %v71_v52 = vadd.f32 %v143_v2, %v48_v45  ;;  %v52_v53 = vmul.f32 %v112_v1, %v29_v41  ;;  %v84_v54 = vmax.f32 %v68_v46, 0.0 }
   0xd   :  { %v72_v55 = vadd.f32 %v143_v2, %v49_v47  ;;  %v73_v56 = vadd.f32 %v143_v2, %v50_v48  ;;  %v74_v57 = vadd.f32 %v143_v2, %v51_v49  ;;  %v85_v58 = vmax.f32 %v69_v50, 0.0 }
   0xe   :  { %v86_v59 = vmax.f32 %v70_v51, 0.0  ;;  %v87_v60 = vmax.f32 %v71_v52, 0.0  ;;  %v75_v61 = vadd.f32 %v143_v2, %v52_v53  ;;  %100 = vst [vmem:[%s257_s3 + $0x40] sm:$0xff] %v84_v54 }
   0xf   :  { %v88_v62 = vmax.f32 %v72_v55, 0.0  ;;  %v89_v63 = vmax.f32 %v73_v56, 0.0  ;;  %v90_v0 = vmax.f32 %v74_v57, 0.0  ;;  %101 = vst [vmem:[%s257_s3 + $0x48] sm:$0xff] %v85_v58 }
  0x10   :  { %102 = vst [vmem:[%s257_s3 + $0x50] sm:$0xff] %v86_v59  ;;  %103 = vst [vmem:[%s257_s3 + $0x58] sm:$0xff] %v87_v60  ;;  %v91_v1 = vmax.f32 %v75_v61, 0.0 }
  0x11   :  { %104 = vst [vmem:[%s257_s3 + $0x60] sm:$0xff] %v88_v62  ;;  %105 = vst [vmem:[%s257_s3 + $0x68] sm:$0xff] %v89_v63 }
  0x12   :  { %106 = vst [vmem:[%s257_s3 + $0x70] sm:$0xff] %v90_v0  ;;  %107 = vst [vmem:[%s257_s3 + $0x78] sm:$0xff] %v91_v1 }

// kernel: resnet50_forward.27
= control target key start
LH: loop header
LB: loop body
LE: loop exit
PB: predicated region body
PF: predicated region fallthrough
CT: control target
= control target key end

     0   :  { %vm171_vm0 = vcmask 1043456   ;;  %vm146_vm1 = vcmask 588800   ;;  %s672_s1 = inlined_call_operand.vmem [shape: bf16[72,128], index: 1, kind: input, shape index: {}]   ;;  %s673_s0 = inlined_call_operand.vmem [shape: bf16[128,72], index: 0, kind: input, shape index: {}]   ;;  %s674_s2 = inlined_call_operand.vmem [shape: f32[1,128], index: 2, kind: input, shape index: {}]   ;;  %s675_s3 = inlined_call_operand.vmem [shape: f32[128,128], index: 3, kind: output, shape index: {0}]   ;;  %s676_s4 = inlined_call_operand.vmem [shape: f32[8,128], index: 4, kind: output, shape index: {1}]   ;;  %s677_s5 = inlined_call_operand.vmem [shape: f32[8,128], index: 5, kind: output, shape index: {2}]  }
   0x1   :  { %v507_v0 = vld [vmem:[%s672_s1 + $0x20] ss:$0 sps:$4 sm:$0xff]   ;;  %v508_v1 = vld [vmem:[%s672_s1 + $0x18] sm:$0xff]   ;;  %v509_v3 = vld [vmem:[%s672_s1 + $0x10] sm:$0xff]  }
   0x2   :  { %505 = vmatprep.subr.msk.bf16.mxu0 %vm171_vm0, %v507_v0  ;;  %v173_v2 = vsel %vm171_vm0, %v507_v0, 0  ;;  %506 = vmatprep.subr.msk.bf16.mxu1 %vm171_vm0, %v507_v0  ;;  %v512_v4 = vld [vmem:[%s673_s0] sm:$0xff]   ;;  %v510_v5 = vld [vmem:[%s672_s1 + $0x8] sm:$0xff]   ;;  %v514_v10 = vld [vmem:[%s673_s0 + $0x10] sm:$0xff]  }
   0x3   :  { %470 = vmatpush3.bf16.msra.mxu0 %v173_v2  ;;  %500 = vmatpush3.bf16.msra.mxu1 %v173_v2  ;;  %v516_v6 = vld [vmem:[%s673_s0 + $0x20] sm:$0xff]   ;;  %v513_v8 = vld [vmem:[%s673_s0 + $0x8] sm:$0xff]   ;;  %v518_v11 = vld [vmem:[%s673_s0 + $0x30] sm:$0xff]  }
   0x4   :  { %471 = vmatprep.subr.bf16.mxu0 %v508_v1  ;;  %496 = vmatprep.subr.bf16.mxu1 %v508_v1  ;;  %v511_v7 = vld [vmem:[%s672_s1] sm:$0xff]   ;;  %v517_v9 = vld [vmem:[%s673_s0 + $0x28] sm:$0xff]   ;;  %v515_v12 = vld [vmem:[%s673_s0 + $0x18] sm:$0xff]  }
   0x5   :  { %479 = vmatprep.mubr.msk.bf16.mxu0 %vm146_vm1, %v512_v4  ;;  %487 = vmatprep.mubr.msk.bf16.mxu1 %vm146_vm1, %v516_v6  ;;  %v519_v13 = vld [vmem:[%s673_s0 + $0x38] sm:$0xff]   ;;  %v455_v14 = vld [vmem:[%s674_s2] ss:$0 sm:$0xff] }
   0x7   :  { %472 = vmatpush3.bf16.msra.mxu0 %v508_v1  ;;  %501 = vmatpush3.bf16.msra.mxu1 %v508_v1 }
   0x8   :  { %473 = vmatprep.subr.bf16.mxu0 %v509_v3  ;;  %497 = vmatprep.subr.bf16.mxu1 %v509_v3 }
   0xb   :  { %474 = vmatpush3.bf16.msra.mxu0 %v509_v3  ;;  %502 = vmatpush3.bf16.msra.mxu1 %v509_v3 }
   0xc   :  { %475 = vmatprep.subr.bf16.mxu0 %v510_v5  ;;  %498 = vmatprep.subr.bf16.mxu1 %v510_v5 }
   0xf   :  { %476 = vmatpush3.bf16.msra.mxu0 %v510_v5  ;;  %503 = vmatpush3.bf16.msra.mxu1 %v510_v5 }
  0x10   :  { %477 = vmatprep.subr.bf16.mxu0 %v511_v7  ;;  %499 = vmatprep.subr.bf16.mxu1 %v511_v7 }
  0x13   :  { %478 = vmatpush3.bf16.msra.mxu0 %v511_v7  ;;  %504 = vmatpush3.bf16.msra.mxu1 %v511_v7 }
  0x16   :  { %480 = vmatmul.mubr.msk.bf16.vlgmr.msra.gmra.mxu0 %vm146_vm1, %v513_v8  ;;  %488 = vmatmul.mubr.msk.bf16.vlgmr.msra.gmra.mxu1 %vm146_vm1, %v517_v9 }
  0x17   :  { %483 = vmatprep.mubr.msk.bf16.mxu0 %vm146_vm1, %v514_v10  ;;  %491 = vmatprep.mubr.msk.bf16.mxu1 %vm146_vm1, %v518_v11 }
  0x1e   :  { %484 = vmatmul.mubr.msk.bf16.gmra.mxu0 %vm146_vm1, %v515_v12  ;;  %492 = vmatmul.mubr.msk.bf16.gmra.mxu1 %vm146_vm1, %v519_v13 }
  0xd6   :  { %v481_v15 = vpop.f32.mrf.mxu0  ;;  %v600_v16 = vpop.f32.mrf.mxu1 }
  0xd7   :  { %v392_v17 = vadd.f32 %v481_v15, %v455_v14  ;;  %v400_v18 = vadd.f32 %v600_v16, %v455_v14  ;;  %v346_v36 = vmul.f32 %v481_v15, %v481_v15  ;;  %v354_v10 = vmul.f32 %v600_v16, %v600_v16 }
  0xd8   :  { %v209_v19 = vpop.f32.mrf.mxu0  ;;  %v603_v20 = vpop.f32.mrf.mxu1 }
  0xd9   :  { %408 = vst [vmem:[%s675_s3 + $0x10] sm:$0xff] %v392_v17  ;;  %v390_v21 = vadd.f32 %v455_v14, %v209_v19  ;;  %416 = vst [vmem:[%s675_s3 + $0x50] sm:$0xff] %v400_v18  ;;  %v398_v22 = vadd.f32 %v455_v14, %v603_v20  ;;  %v344_v29 = vmul.f32 %v209_v19, %v209_v19 }
  0xda   :  { %v482_v23 = vpop.f32.mrf.mxu0  ;;  %v612_v24 = vpop.f32.mrf.mxu1  ;;  %v352_v4 = vmul.f32 %v603_v20, %v603_v20 }
  0xdb   :  { %406 = vst [vmem:[%s675_s3] sm:$0xff] %v390_v21  ;;  %v393_v25 = vadd.f32 %v482_v23, %v455_v14  ;;  %414 = vst [vmem:[%s675_s3 + $0x40] sm:$0xff] %v398_v22  ;;  %v401_v26 = vadd.f32 %v612_v24, %v455_v14  ;;  %v347_v43 = vmul.f32 %v482_v23, %v482_v23 }
  0xdc   :  { %v212_v27 = vpop.f32.mrf.mxu0  ;;  %v244_v28 = vpop.f32.mrf.mxu1  ;;  %v355_v13 = vmul.f32 %v612_v24, %v612_v24 }
  0xdd   :  { %409 = vst [vmem:[%s675_s3 + $0x18] sm:$0xff] %v393_v25  ;;  %v323_v30 = vadd.f32 %v212_v27, %v209_v19  ;;  %v345_v31 = vmul.f32 %v212_v27, %v212_v27  ;;  %v391_v32 = vadd.f32 %v455_v14, %v212_v27  ;;  %417 = vst [vmem:[%s675_s3 + $0x58] sm:$0xff] %v401_v26 }
  0xde   :  { %v485_v33 = vpop.f32.mrf.mxu0  ;;  %v399_v34 = vadd.f32 %v455_v14, %v244_v28  ;;  %v493_v35 = vpop.f32.mrf.mxu1  ;;  %v353_v8 = vmul.f32 %v244_v28, %v244_v28 }
  0xdf   :  { %v324_v37 = vadd.f32 %v481_v15, %v323_v30  ;;  %v360_v38 = vadd.f32 %v345_v31, %v344_v29  ;;  %407 = vst [vmem:[%s675_s3 + $0x8] sm:$0xff] %v391_v32  ;;  %v396_v39 = vadd.f32 %v485_v33, %v455_v14  ;;  %v404_v41 = vadd.f32 %v493_v35, %v455_v14 }
  0xe0   :  { %v225_v40 = vpop.f32.mrf.mxu0  ;;  %415 = vst [vmem:[%s675_s3 + $0x48] sm:$0xff] %v399_v34  ;;  %v257_v42 = vpop.f32.mrf.mxu1  ;;  %v350_v62 = vmul.f32 %v485_v33, %v485_v33 }
  0xe1   :  { %v361_v44 = vadd.f32 %v360_v38, %v346_v36  ;;  %412 = vst [vmem:[%s675_s3 + $0x30] sm:$0xff] %v396_v39  ;;  %v325_v45 = vadd.f32 %v482_v23, %v324_v37  ;;  %v394_v46 = vadd.f32 %v455_v14, %v225_v40  ;;  %420 = vst [vmem:[%s675_s3 + $0x70] sm:$0xff] %v404_v41 }
  0xe2   :  { %v486_v47 = vpop.f32.mrf.mxu0  ;;  %v402_v48 = vadd.f32 %v455_v14, %v257_v42  ;;  %v494_v49 = vpop.f32.mrf.mxu1  ;;  %v348_v51 = vmul.f32 %v225_v40, %v225_v40  ;;  %v356_v18 = vmul.f32 %v257_v42, %v257_v42  ;;  %v358_v23 = vmul.f32 %v493_v35, %v493_v35 }
  0xe3   :  { %v326_v50 = vadd.f32 %v325_v45, %v225_v40  ;;  %v362_v52 = vadd.f32 %v361_v44, %v347_v43  ;;  %410 = vst [vmem:[%s675_s3 + $0x20] sm:$0xff] %v394_v46  ;;  %v397_v53 = vadd.f32 %v486_v47, %v455_v14  ;;  %v405_v55 = vadd.f32 %v494_v49, %v455_v14 }
  0xe4   :  { %v228_v54 = vpop.f32.mrf.mxu0  ;;  %418 = vst [vmem:[%s675_s3 + $0x60] sm:$0xff] %v402_v48  ;;  %v260_v56 = vpop.f32.mrf.mxu1  ;;  %v351_v1 = vmul.f32 %v486_v47, %v486_v47  ;;  %v359_v27 = vmul.f32 %v494_v49, %v494_v49 }
  0xe5   :  { %v363_v57 = vadd.f32 %v362_v52, %v348_v51  ;;  %413 = vst [vmem:[%s675_s3 + $0x38] sm:$0xff] %v397_v53  ;;  %v327_v58 = vadd.f32 %v326_v50, %v228_v54  ;;  %v349_v59 = vmul.f32 %v228_v54, %v228_v54  ;;  %v395_v60 = vadd.f32 %v455_v14, %v228_v54 }
  0xe6   :  { %421 = vst [vmem:[%s675_s3 + $0x78] sm:$0xff] %v405_v55  ;;  %v403_v61 = vadd.f32 %v455_v14, %v260_v56  ;;  %v357_v22 = vmul.f32 %v260_v56, %v260_v56 }
  0xe7   :  { %v328_v63 = vadd.f32 %v485_v33, %v327_v58  ;;  %v364_v0 = vadd.f32 %v363_v57, %v349_v59  ;;  %411 = vst [vmem:[%s675_s3 + $0x28] sm:$0xff] %v395_v60 }
  0xe8   :  { %419 = vst [vmem:[%s675_s3 + $0x68] sm:$0xff] %v403_v61 }
  0xe9   :  { %v329_v2 = vadd.f32 %v486_v47, %v328_v63  ;;  %v365_v3 = vadd.f32 %v364_v0, %v350_v62 }
  0xeb   :  { %v366_v5 = vadd.f32 %v365_v3, %v351_v1  ;;  %v330_v6 = vadd.f32 %v329_v2, %v603_v20 }
  0xed   :  { %v331_v7 = vadd.f32 %v330_v6, %v244_v28  ;;  %v367_v9 = vadd.f32 %v366_v5, %v352_v4 }
  0xef   :  { %v332_v11 = vadd.f32 %v600_v16, %v331_v7  ;;  %v368_v12 = vadd.f32 %v367_v9, %v353_v8 }
  0xf1   :  { %v369_v14 = vadd.f32 %v368_v12, %v354_v10  ;;  %v333_v15 = vadd.f32 %v612_v24, %v332_v11 }
  0xf3   :  { %v334_v17 = vadd.f32 %v333_v15, %v257_v42  ;;  %v370_v19 = vadd.f32 %v369_v14, %v355_v13 }
  0xf5   :  { %v371_v21 = vadd.f32 %v370_v19, %v356_v18  ;;  %v335_v20 = vadd.f32 %v334_v17, %v260_v56 }
  0xf7   :  { %v336_v25 = vadd.f32 %v493_v35, %v335_v20  ;;  %v372_v26 = vadd.f32 %v371_v21, %v357_v22 }
  0xf9   :  { %v337_v28 = vadd.f32 %v494_v49, %v336_v25  ;;  %v373_v29 = vadd.f32 %v372_v26, %v358_v23 }
  0xfb   :  { %v338_v16 = vrot.slane %v337_v28, 4  ;;  %v374_v30 = vadd.f32 %v373_v29, %v359_v27 }
  0xfd   :  { %v339_v31 = vadd.f32 %v338_v16, %v337_v28  ;;  %v375_v32 = vrot.slane %v374_v30, 4 }
  0xff   :  { %v340_v33 = vrot.slane %v339_v31, 2  ;;  %v376_v34 = vadd.f32 %v375_v32, %v374_v30 }
 0x101   :  { %v341_v36 = vadd.f32 %v340_v33, %v339_v31  ;;  %v377_v24 = vrot.slane %v376_v34, 2 }
 0x103   :  { %v342_v37 = vrot.slane %v341_v36, 1  ;;  %v378_v38 = vadd.f32 %v377_v24, %v376_v34 }
 0x105   :  { %v343_v39 = vadd.f32 %v342_v37, %v341_v36  ;;  %v379_v40 = vrot.slane %v378_v38, 1 }
 0x107   :  { %v380_v41 = vadd.f32 %v379_v40, %v378_v38  ;;  %381 = vst [vmem:[%s676_s4] sm:$0xff] %v343_v39 }
 0x109   :  { %382 = vst [vmem:[%s677_s5] sm:$0xff] %v380_v41 }

// kernel: resnet50_forward.30
= control target key start
LH: loop header
LB: loop body
LE: loop exit
PB: predicated region body
PF: predicated region fallthrough
CT: control target
= control target key end

     0   :  { %s360_s0 = inlined_call_operand.vmem [shape: f32[128,128], index: 0, kind: input, shape index: {}]   ;;  %s361_s1 = inlined_call_operand.vmem [shape: f32[128,128], index: 1, kind: input, shape index: {}]   ;;  %s362_s2 = inlined_call_operand.vmem [shape: f32[1,128], index: 2, kind: input, shape index: {}]   ;;  %s363_s3 = inlined_call_operand.vmem [shape: f32[1,128], index: 3, kind: input, shape index: {}]   ;;  %s364_s4 = inlined_call_operand.vmem [shape: f32[128,128], index: 4, kind: output, shape index: {}]  }
   0x1   :  { %v17_v0 = vld [vmem:[%s360_s0] sm:$0xff]  ;;  %v18_v4 = vld [vmem:[%s360_s0 + $0x8] sm:$0xff]  ;;  %v19_v7 = vld [vmem:[%s360_s0 + $0x10] sm:$0xff] }
   0x2   :  { %v180_v1 = vld [vmem:[%s362_s2] ss:$0 sm:$0xff]  ;;  %v20_v8 = vld [vmem:[%s360_s0 + $0x18] sm:$0xff]  ;;  %v80_v10 = vld [vmem:[%s361_s1 + $0x8] sm:$0xff] }
   0x3   :  { %v185_v2 = vld [vmem:[%s363_s3] ss:$0 sm:$0xff]  ;;  %v40_v3 = vmul.f32 %v180_v1, %v17_v0  ;;  %v41_v6 = vmul.f32 %v180_v1, %v18_v4  ;;  %v42_v11 = vmul.f32 %v180_v1, %v19_v7  ;;  %v81_v12 = vld [vmem:[%s361_s1 + $0x10] sm:$0xff]  ;;  %v43_v13 = vmul.f32 %v180_v1, %v20_v8  ;;  %v82_v16 = vld [vmem:[%s361_s1 + $0x18] sm:$0xff] }
   0x4   :  { %v79_v5 = vld [vmem:[%s361_s1] sm:$0xff]  ;;  %v22_v18 = vld [vmem:[%s360_s0 + $0x28] sm:$0xff]  ;;  %v23_v19 = vld [vmem:[%s360_s0 + $0x30] sm:$0xff] }
   0x5   :  { %v63_v9 = vadd.f32 %v185_v2, %v40_v3  ;;  %v21_v14 = vld [vmem:[%s360_s0 + $0x20] sm:$0xff]  ;;  %v64_v15 = vadd.f32 %v185_v2, %v41_v6  ;;  %v65_v21 = vadd.f32 %v185_v2, %v42_v11  ;;  %v66_v22 = vadd.f32 %v185_v2, %v43_v13  ;;  %v24_v25 = vld [vmem:[%s360_s0 + $0x38] sm:$0xff]  ;;  %v84_v28 = vld [vmem:[%s361_s1 + $0x28] sm:$0xff] }
   0x6   :  { %v44_v17 = vmul.f32 %v180_v1, %v21_v14  ;;  %v83_v23 = vld [vmem:[%s361_s1 + $0x20] sm:$0xff]  ;;  %v45_v24 = vmul.f32 %v180_v1, %v22_v18  ;;  %v46_v29 = vmul.f32 %v180_v1, %v23_v19  ;;  %v47_v30 = vmul.f32 %v180_v1, %v24_v25  ;;  %v85_v36 = vld [vmem:[%s361_s1 + $0x30] sm:$0xff]  ;;  %v86_v37 = vld [vmem:[%s361_s1 + $0x38] sm:$0xff] }
   0x7   :  { %v95_v20 = vadd.f32 %v79_v5, %v63_v9  ;;  %v96_v26 = vadd.f32 %v80_v10, %v64_v15  ;;  %v25_v31 = vld [vmem:[%s360_s0 + $0x40] sm:$0xff]  ;;  %v97_v33 = vadd.f32 %v81_v12, %v65_v21  ;;  %v98_v34 = vadd.f32 %v82_v16, %v66_v22  ;;  %v26_v38 = vld [vmem:[%s360_s0 + $0x48] sm:$0xff]  ;;  %v27_v43 = vld [vmem:[%s360_s0 + $0x50] sm:$0xff] }
   0x8   :  { %v67_v27 = vadd.f32 %v185_v2, %v44_v17  ;;  %v68_v35 = vadd.f32 %v185_v2, %v45_v24  ;;  %v69_v41 = vadd.f32 %v185_v2, %v46_v29  ;;  %v70_v42 = vadd.f32 %v185_v2, %v47_v30  ;;  %v28_v44 = vld [vmem:[%s360_s0 + $0x58] sm:$0xff]  ;;  %v29_v49 = vld [vmem:[%s360_s0 + $0x60] sm:$0xff]  ;;  %v30_v55 = vld [vmem:[%s360_s0 + $0x68] sm:$0xff] }
   0x9   :  { %v111_v32 = vmax.f32 %v95_v20, 0.0  ;;  %v112_v39 = vmax.f32 %v96_v26, 0.0  ;;  %v113_v45 = vmax.f32 %v97_v33, 0.0  ;;  %v114_v46 = vmax.f32 %v98_v34, 0.0  ;;  %v87_v53 = vld [vmem:[%s361_s1 + $0x40] sm:$0xff]  ;;  %v88_v58 = vld [vmem:[%s361_s1 + $0x48] sm:$0xff] }
   0xa   :  { %v99_v40 = vadd.f32 %v83_v23, %v67_v27  ;;  %v100_v47 = vadd.f32 %v84_v28, %v68_v35  ;;  %v48_v48 = vmul.f32 %v180_v1, %v25_v31  ;;  %v101_v51 = vadd.f32 %v85_v36, %v69_v41  ;;  %v31_v61 = vld [vmem:[%s360_s0 + $0x70] sm:$0xff]  ;;  %v32_v62 = vld [vmem:[%s360_s0 + $0x78] sm:$0xff]  ;;  %v91_v10 = vld [vmem:[%s361_s1 + $0x60] sm:$0xff] }
   0xb   :  { %127 = vst [vmem:[%s364_s4] sm:$0xff] %v111_v32  ;;  %128 = vst [vmem:[%s364_s4 + $0x8] sm:$0xff] %v112_v39  ;;  %v102_v52 = vadd.f32 %v86_v37, %v70_v42  ;;  %v49_v54 = vmul.f32 %v180_v1, %v26_v38  ;;  %v50_v59 = vmul.f32 %v180_v1, %v27_v43  ;;  %v89_v4 = vld [vmem:[%s361_s1 + $0x50] sm:$0xff]  ;;  %v90_v5 = vld [vmem:[%s361_s1 + $0x58] sm:$0xff] }
   0xc   :  { %v115_v50 = vmax.f32 %v99_v40, 0.0  ;;  %129 = vst [vmem:[%s364_s4 + $0x10] sm:$0xff] %v113_v45  ;;  %130 = vst [vmem:[%s364_s4 + $0x18] sm:$0xff] %v114_v46  ;;  %v116_v56 = vmax.f32 %v100_v47, 0.0  ;;  %v71_v57 = vadd.f32 %v185_v2, %v48_v48  ;;  %v51_v60 = vmul.f32 %v180_v1, %v28_v44  ;;  %v92_v14 = vld [vmem:[%s361_s1 + $0x68] sm:$0xff]  ;;  %v93_v21 = vld [vmem:[%s361_s1 + $0x70] sm:$0xff] }
   0xd   :  { %v117_v63 = vmax.f32 %v101_v51, 0.0  ;;  %v118_v0 = vmax.f32 %v102_v52, 0.0  ;;  %v72_v3 = vadd.f32 %v185_v2, %v49_v54  ;;  %v52_v6 = vmul.f32 %v180_v1, %v29_v49  ;;  %v94_v22 = vld [vmem:[%s361_s1 + $0x78] sm:$0xff] }
   0xe   :  { %131 = vst [vmem:[%s364_s4 + $0x20] sm:$0xff] %v115_v50  ;;  %132 = vst [vmem:[%s364_s4 + $0x28] sm:$0xff] %v116_v56  ;;  %v103_v7 = vadd.f32 %v87_v53, %v71_v57  ;;  %v73_v8 = vadd.f32 %v185_v2, %v50_v59  ;;  %v74_v9 = vadd.f32 %v185_v2, %v51_v60 }
   0xf   :  { %v53_v11 = vmul.f32 %v180_v1, %v30_v55  ;;  %133 = vst [vmem:[%s364_s4 + $0x30] sm:$0xff] %v117_v63  ;;  %134 = vst [vmem:[%s364_s4 + $0x38] sm:$0xff] %v118_v0  ;;  %v104_v12 = vadd.f32 %v88_v58, %v72_v3  ;;  %v75_v13 = vadd.f32 %v185_v2, %v52_v6 }
  0x10   :  { %v54_v15 = vmul.f32 %v180_v1, %v31_v61  ;;  %v55_v16 = vmul.f32 %v180_v1, %v32_v62  ;;  %v119_v17 = vmax.f32 %v103_v7, 0.0  ;;  %v105_v18 = vadd.f32 %v89_v4, %v73_v8 }
  0x11   :  { %v106_v19 = vadd.f32 %v90_v5, %v74_v9  ;;  %v76_v20 = vadd.f32 %v185_v2, %v53_v11  ;;  %v120_v23 = vmax.f32 %v104_v12, 0.0  ;;  %v107_v24 = vadd.f32 %v91_v10, %v75_v13 }
  0x12   :  { %v77_v25 = vadd.f32 %v185_v2, %v54_v15  ;;  %v78_v26 = vadd.f32 %v185_v2, %v55_v16  ;;  %135 = vst [vmem:[%s364_s4 + $0x40] sm:$0xff] %v119_v17  ;;  %v121_v1 = vmax.f32 %v105_v18, 0.0 }
  0x13   :  { %v122_v27 = vmax.f32 %v106_v19, 0.0  ;;  %v108_v28 = vadd.f32 %v92_v14, %v76_v20  ;;  %136 = vst [vmem:[%s364_s4 + $0x48] sm:$0xff] %v120_v23  ;;  %v123_v29 = vmax.f32 %v107_v24, 0.0 }
  0x14   :  { %v109_v30 = vadd.f32 %v93_v21, %v77_v25  ;;  %v110_v31 = vadd.f32 %v94_v22, %v78_v26  ;;  %137 = vst [vmem:[%s364_s4 + $0x50] sm:$0xff] %v121_v1 }
  0x15   :  { %138 = vst [vmem:[%s364_s4 + $0x58] sm:$0xff] %v122_v27  ;;  %v124_v2 = vmax.f32 %v108_v28, 0.0  ;;  %139 = vst [vmem:[%s364_s4 + $0x60] sm:$0xff] %v123_v29 }
  0x16   :  { %v125_v32 = vmax.f32 %v109_v30, 0.0  ;;  %v126_v33 = vmax.f32 %v110_v31, 0.0 }
  0x17   :  { %140 = vst [vmem:[%s364_s4 + $0x68] sm:$0xff] %v124_v2 }
  0x18   :  { %141 = vst [vmem:[%s364_s4 + $0x70] sm:$0xff] %v125_v32  ;;  %142 = vst [vmem:[%s364_s4 + $0x78] sm:$0xff] %v126_v33 }

// kernel: resnet50_forward.31
= control target key start
LH: loop header
LB: loop body
LE: loop exit
PB: predicated region body
PF: predicated region fallthrough
CT: control target
= control target key end

     0   :  { %11 = vsyncpa [#allocation4], 0  ;;  %vm120_vm0 = vcmask 130048   ;;  %s686_s0 = inlined_call_operand.vmem [shape: bf16[128,16], index: 0, kind: input, shape index: {}]   ;;  %s687_s1 = inlined_call_operand.vmem [shape: bf16[16,128], index: 1, kind: input, shape index: {}]   ;;  %s688_s2 = inlined_call_operand.vmem [shape: f32[1,128], index: 2, kind: input, shape index: {}]   ;;  %s689_s3 = inlined_call_operand.vmem [shape: f32[128,128], index: 3, kind: output, shape index: {0}]   ;;  %s690_s4 = inlined_call_operand.hbm [shape: f32[8,128], index: 4, kind: output, shape index: {1}]   ;;  %s691_s5 = inlined_call_operand.hbm [shape: f32[8,128], index: 5, kind: output, shape index: {2}]  }
   0x1   :  { %v473_v0 = vld [vmem:[%s687_s1] sm:$0xff]   ;;  %v475_v2 = vld [vmem:[%s686_s0 + $0x8] sm:$0xff]   ;;  %v476_v3 = vld [vmem:[%s686_s0 + $0x10] sm:$0xff]  }
   0x2   :  { %v474_v1 = vld [vmem:[%s686_s0] sm:$0xff]   ;;  %451 = vmatprep.subr.bf16.mxu0 %v473_v0  ;;  %469 = vmatprep.subr.bf16.mxu1 %v473_v0  ;;  %v479_v5 = vld [vmem:[%s686_s0 + $0x28] sm:$0xff]   ;;  %v480_v6 = vld [vmem:[%s686_s0 + $0x30] sm:$0xff]  }
   0x3   :  { %452 = vmatpush3.bf16.msra.mxu0 %v473_v0  ;;  %453 = vmatprep.mubr.msk.bf16.mxu0 %vm120_vm0, %v474_v1  ;;  %v478_v4 = vld [vmem:[%s686_s0 + $0x20] sm:$0xff]  }
   0x4   :  { %470 = vmatpush3.bf16.msra.mxu1 %v473_v0  ;;  %461 = vmatprep.mubr.msk.bf16.mxu1 %vm120_vm0, %v478_v4 }
   0x6   :  { %454 = vmatmul.mubr.msk.bf16.vlgmr.msra.gmra.mxu0 %vm120_vm0, %v475_v2 }
   0x7   :  { %457 = vmatprep.mubr.msk.bf16.mxu0 %vm120_vm0, %v476_v3  ;;  %462 = vmatmul.mubr.msk.bf16.vlgmr.msra.gmra.mxu1 %vm120_vm0, %v479_v5 }
   0x8   :  { %465 = vmatprep.mubr.msk.bf16.mxu1 %vm120_vm0, %v480_v6 }
   0x9   :  { %12 = vsyncpa [#allocation6], 0  ;;  %v477_v7 = vld [vmem:[%s686_s0 + $0x18] sm:$0xff]   ;;  %v596_v9 = vld [vmem:[%s688_s2] ss:$0 sm:$0xff]  ;;  %s527_s15 = smov [#allocation5]  }
   0xa   :  { %v481_v8 = vld [vmem:[%s686_s0 + $0x38] sm:$0xff]   ;;  %s410_s16 = sshll.u32 %s527_s15, 4  ;;  %s411_s16 = int_to_ptr.vmem [resolvable:$true] %s410_s16 }
   0xe   :  { %458 = vmatmul.mubr.msk.bf16.gmra.mxu0 %vm120_vm0, %v477_v7 }
   0xf   :  { %466 = vmatmul.mubr.msk.bf16.gmra.mxu1 %vm120_vm0, %v481_v8 }
  0xc6   :  { %v455_v10 = vpop.f32.mrf.mxu0 }
  0xc7   :  { %v362_v11 = vadd.f32 %v455_v10, %v596_v9  ;;  %v599_v13 = vpop.f32.mrf.mxu1  ;;  %v316_v29 = vmul.f32 %v455_v10, %v455_v10 }
  0xc8   :  { %v179_v12 = vpop.f32.mrf.mxu0  ;;  %v370_v15 = vadd.f32 %v599_v13, %v596_v9  ;;  %v324_v5 = vmul.f32 %v599_v13, %v599_v13 }
  0xc9   :  { %378 = vst [vmem:[%s689_s3 + $0x10] sm:$0xff] %v362_v11  ;;  %v360_v14 = vadd.f32 %v596_v9, %v179_v12  ;;  %v607_v17 = vpop.f32.mrf.mxu1  ;;  %v314_v22 = vmul.f32 %v179_v12, %v179_v12 }
  0xca   :  { %v456_v16 = vpop.f32.mrf.mxu0  ;;  %386 = vst [vmem:[%s689_s3 + $0x50] sm:$0xff] %v370_v15  ;;  %v368_v19 = vadd.f32 %v596_v9, %v607_v17  ;;  %v322_v63 = vmul.f32 %v607_v17, %v607_v17 }
  0xcb   :  { %376 = vst [vmem:[%s689_s3] sm:$0xff] %v360_v14  ;;  %v363_v18 = vadd.f32 %v456_v16, %v596_v9  ;;  %v618_v21 = vpop.f32.mrf.mxu1  ;;  %v317_v36 = vmul.f32 %v456_v16, %v456_v16 }
  0xcc   :  { %v182_v20 = vpop.f32.mrf.mxu0  ;;  %384 = vst [vmem:[%s689_s3 + $0x40] sm:$0xff] %v368_v19  ;;  %v371_v27 = vadd.f32 %v618_v21, %v596_v9  ;;  %v325_v8 = vmul.f32 %v618_v21, %v618_v21 }
  0xcd   :  { %379 = vst [vmem:[%s689_s3 + $0x18] sm:$0xff] %v363_v18  ;;  %v293_v23 = vadd.f32 %v182_v20, %v179_v12  ;;  %v315_v24 = vmul.f32 %v182_v20, %v182_v20  ;;  %v361_v25 = vadd.f32 %v596_v9, %v182_v20  ;;  %v214_v28 = vpop.f32.mrf.mxu1 }
  0xce   :  { %v459_v26 = vpop.f32.mrf.mxu0  ;;  %387 = vst [vmem:[%s689_s3 + $0x58] sm:$0xff] %v371_v27  ;;  %v369_v34 = vadd.f32 %v596_v9, %v214_v28  ;;  %v323_v3 = vmul.f32 %v214_v28, %v214_v28 }
  0xcf   :  { %v294_v30 = vadd.f32 %v455_v10, %v293_v23  ;;  %v330_v31 = vadd.f32 %v315_v24, %v314_v22  ;;  %377 = vst [vmem:[%s689_s3 + $0x8] sm:$0xff] %v361_v25  ;;  %v366_v32 = vadd.f32 %v459_v26, %v596_v9  ;;  %v467_v35 = vpop.f32.mrf.mxu1  ;;  %v320_v56 = vmul.f32 %v459_v26, %v459_v26 }
  0xd0   :  { %v195_v33 = vpop.f32.mrf.mxu0  ;;  %385 = vst [vmem:[%s689_s3 + $0x48] sm:$0xff] %v369_v34  ;;  %v374_v41 = vadd.f32 %v467_v35, %v596_v9  ;;  %v328_v18 = vmul.f32 %v467_v35, %v467_v35 }
  0xd1   :  { %v331_v37 = vadd.f32 %v330_v31, %v316_v29  ;;  %382 = vst [vmem:[%s689_s3 + $0x30] sm:$0xff] %v366_v32  ;;  %v295_v38 = vadd.f32 %v456_v16, %v294_v30  ;;  %v364_v39 = vadd.f32 %v596_v9, %v195_v33  ;;  %v227_v42 = vpop.f32.mrf.mxu1  ;;  %v318_v44 = vmul.f32 %v195_v33, %v195_v33 }
  0xd2   :  { %v460_v40 = vpop.f32.mrf.mxu0  ;;  %390 = vst [vmem:[%s689_s3 + $0x70] sm:$0xff] %v374_v41  ;;  %v372_v48 = vadd.f32 %v596_v9, %v227_v42  ;;  %v326_v12 = vmul.f32 %v227_v42, %v227_v42 }
  0xd3   :  { %v296_v43 = vadd.f32 %v295_v38, %v195_v33  ;;  %v332_v45 = vadd.f32 %v331_v37, %v317_v36  ;;  %380 = vst [vmem:[%s689_s3 + $0x20] sm:$0xff] %v364_v39  ;;  %v367_v46 = vadd.f32 %v460_v40, %v596_v9  ;;  %v468_v49 = vpop.f32.mrf.mxu1  ;;  %v321_v60 = vmul.f32 %v460_v40, %v460_v40 }
  0xd4   :  { %v198_v47 = vpop.f32.mrf.mxu0  ;;  %388 = vst [vmem:[%s689_s3 + $0x60] sm:$0xff] %v372_v48  ;;  %v375_v54 = vadd.f32 %v468_v49, %v596_v9  ;;  %v329_v22 = vmul.f32 %v468_v49, %v468_v49 }
  0xd5   :  { %v333_v50 = vadd.f32 %v332_v45, %v318_v44  ;;  %383 = vst [vmem:[%s689_s3 + $0x38] sm:$0xff] %v367_v46  ;;  %v297_v51 = vadd.f32 %v296_v43, %v198_v47  ;;  %v319_v52 = vmul.f32 %v198_v47, %v198_v47  ;;  %v365_v53 = vadd.f32 %v596_v9, %v198_v47  ;;  %v230_v55 = vpop.f32.mrf.mxu1 }
  0xd6   :  { %v373_v59 = vadd.f32 %v596_v9, %v230_v55  ;;  %391 = vst [vmem:[%s689_s3 + $0x78] sm:$0xff] %v375_v54 }
  0xd7   :  { %v298_v57 = vadd.f32 %v459_v26, %v297_v51  ;;  %v334_v58 = vadd.f32 %v333_v50, %v319_v52  ;;  %381 = vst [vmem:[%s689_s3 + $0x28] sm:$0xff] %v365_v53 }
  0xd8   :  { %389 = vst [vmem:[%s689_s3 + $0x68] sm:$0xff] %v373_v59  ;;  %s526_s3 = smov [#allocation3]  }
  0xd9   :  { %v299_v61 = vadd.f32 %v460_v40, %v298_v57  ;;  %v335_v62 = vadd.f32 %v334_v58, %v320_v56  ;;  %s400_s14 = sshll.u32 %s526_s3, 4  ;;  %s401_s14 = int_to_ptr.vmem [resolvable:$true] %s400_s14 }
  0xda   :  { %s482_s17 = scalar_lea.vmem %s401_s14, 128  ;;  %p487_p1 = scmp.lt.s32.totalorder %s401_s14, %s401_s14 }
  0xdb   :  { %v336_v0 = vadd.f32 %v335_v62, %v321_v60  ;;  %v300_v1 = vadd.f32 %v299_v61, %v607_v17  ;;  %v327_v17 = vmul.f32 %v230_v55, %v230_v55  ;;  %p483_p0 = scmp.ne.s32.totalorder %s401_s14, %s482_s17  ;;  %p488_p2 = scmp.lt.s32.totalorder %s482_s17, %s482_s17 }
  0xdd   :  { %v301_v2 = vadd.f32 %v300_v1, %v214_v28  ;;  %v337_v4 = vadd.f32 %v336_v0, %v322_v63  ;;  %p489_p3 = por %p488_p2, %p487_p1 }
  0xdf   :  { %v302_v6 = vadd.f32 %v599_v13, %v301_v2  ;;  %v338_v7 = vadd.f32 %v337_v4, %v323_v3  ;;  %p490_p4 = pnand %p489_p3, %p483_p0 }
  0xe1   :  { %v339_v9 = vadd.f32 %v338_v7, %v324_v5  ;;  %v303_v10 = vadd.f32 %v618_v21, %v302_v6 }
  0xe3   :  { %v304_v11 = vadd.f32 %v303_v10, %v227_v42  ;;  %v340_v14 = vadd.f32 %v339_v9, %v325_v8 }
  0xe5   :  { %v341_v15 = vadd.f32 %v340_v14, %v326_v12  ;;  %v305_v16 = vadd.f32 %v304_v11, %v230_v55 }
  0xe7   :  { %v306_v19 = vadd.f32 %v467_v35, %v305_v16  ;;  %v342_v20 = vadd.f32 %v341_v15, %v327_v17 }
  0xe9   :  { %v307_v23 = vadd.f32 %v468_v49, %v306_v19  ;;  %v343_v24 = vadd.f32 %v342_v20, %v328_v18 }
  0xeb   :  { %v344_v13 = vadd.f32 %v343_v24, %v329_v22  ;;  %v308_v25 = vrot.slane %v307_v23, 4 }
  0xed   :  { %v309_v26 = vadd.f32 %v308_v25, %v307_v23  ;;  %v345_v27 = vrot.slane %v344_v13, 4 }
  0xef   :  { %v310_v28 = vrot.slane %v309_v26, 2  ;;  %v346_v29 = vadd.f32 %v345_v27, %v344_v13 }
  0xf1   :  { %v311_v30 = vadd.f32 %v310_v28, %v309_v26  ;;  %v347_v21 = vrot.slane %v346_v29, 2 }
  0xf3   :  { %v312_v31 = vrot.slane %v311_v30, 1  ;;  %v348_v32 = vadd.f32 %v347_v21, %v346_v29 }
  0xf5   :  { %v313_v33 = vadd.f32 %v312_v31, %v311_v30  ;;  %v349_v34 = vrot.slane %v348_v32, 1 }
  0xf7   :  { %351 = vst [vmem:[#allocation3] sm:$0xff] %v313_v33  ;;  %v350_v35 = vadd.f32 %v349_v34, %v348_v32 }
  0xf8   :  { %493 = shalt.err (!%p490_p4)
}
  0xf9   :  { %403 = dma.vmem_to_hbm [thread:$0]  %s401_s14, 128, %s690_s4, [#allocation4]   ;;  %352 = vst [vmem:[#allocation5] sm:$0xff] %v350_v35 }
  0xfa   :  { %s502_s20 = scalar_lea.vmem %s411_s16, 128  ;;  %p507_p6 = scmp.lt.s32.totalorder %s411_s16, %s411_s16 }
  0xfb   :  { %p503_p5 = scmp.ne.s32.totalorder %s411_s16, %s502_s20  ;;  %p508_p7 = scmp.lt.s32.totalorder %s502_s20, %s502_s20 }
  0xfd   :  { %p509_p8 = por %p508_p7, %p507_p6 }
  0xff   :  { %p510_p9 = pnand %p509_p8, %p503_p5 }
 0x101   :  { %513 = shalt.err (!%p510_p9)
}
 0x102   :  { %413 = dma.vmem_to_hbm [thread:$0]  %s411_s16, 128, %s691_s5, [#allocation6]  }
 0x103   :  { %522 = dma.done.wait [#allocation4], 128  }
 0x104   :  { %523 = vsyncadd [#allocation4], 4294967168 }
 0x105   :  { %524 = dma.done.wait [#allocation6], 128  }
 0x106   :  { %525 = vsyncadd [#allocation6], 4294967168 }
 0x107   :  { %422 = vsyncpa [#allocation4], 1 }
 0x108   :  { %423 = vsyncpa [#allocation6], 1 }

// kernel: resnet50_forward.29
= control target key start
LH: loop header
LB: loop body
LE: loop exit
PB: predicated region body
PF: predicated region fallthrough
CT: control target
= control target key end

     0   :  { %v584_v0 = vmov 0   ;;  %vm214_vm0 = vcmask 130048   ;;  %s803_s1 = inlined_call_operand.vmem [shape: bf16[144,128], index: 1, kind: input, shape index: {}]   ;;  %s804_s0 = inlined_call_operand.vmem [shape: bf16[128,144], index: 0, kind: input, shape index: {}]   ;;  %s805_s2 = inlined_call_operand.vmem [shape: f32[1,128], index: 2, kind: input, shape index: {}]   ;;  %s806_s3 = inlined_call_operand.vmem [shape: f32[128,128], index: 3, kind: output, shape index: {0}]   ;;  %s807_s4 = inlined_call_operand.vmem [shape: f32[8,128], index: 4, kind: output, shape index: {1}]   ;;  %s808_s5 = inlined_call_operand.vmem [shape: f32[8,128], index: 5, kind: output, shape index: {2}]  }
   0x1   :  { %239 = vmatprep.subr.bf16.mxu0 %v584_v0  ;;  %v551_v1 = vld [vmem:[%s803_s1 + $0x38] sm:$0xff]   ;;  %532 = vmatprep.subr.bf16.mxu1 %v584_v0  ;;  %v552_v2 = vld [vmem:[%s803_s1 + $0x30] sm:$0xff]   ;;  %v553_v3 = vld [vmem:[%s803_s1 + $0x28] sm:$0xff]  }
   0x2   :  { %240 = vmatpush1.bf16.msra.mxu0 %v551_v1  ;;  %541 = vmatpush1.bf16.msra.mxu1 %v551_v1  ;;  %v554_v4 = vld [vmem:[%s803_s1 + $0x20] sm:$0xff]   ;;  %v555_v7 = vld [vmem:[%s803_s1 + $0x18] sm:$0xff]   ;;  %v556_v8 = vld [vmem:[%s803_s1 + $0x10] sm:$0xff]  }
   0x3   :  { %241 = vmatprep.subr.bf16.mxu0 %v584_v0  ;;  %533 = vmatprep.subr.bf16.mxu1 %v584_v0  ;;  %v562_v5 = vld [vmem:[%s804_s0 + $0x4] ss:$8 sps:$4 sm:$0xff]   ;;  %v560_v12 = vld [vmem:[%s804_s0] ss:$8 sps:$4 sm:$0xff]   ;;  %v563_v14 = vld [vmem:[%s804_s0 + $0x14] ss:$8 sps:$4 sm:$0xff]  }
   0x4   :  { %523 = vmatprep.mubr.msk.bf16.mxu0 %vm214_vm0, %v562_v5  ;;  %v568_v6 = vld [vmem:[%s804_s0 + $0x44] ss:$8 sps:$4 sm:$0xff]   ;;  %v566_v13 = vld [vmem:[%s804_s0 + $0x40] ss:$8 sps:$4 sm:$0xff]   ;;  %v572_v15 = vld [vmem:[%s804_s0 + $0x54] ss:$8 sps:$4 sm:$0xff]  }
   0x5   :  { %527 = vmatprep.mubr.msk.bf16.mxu1 %vm214_vm0, %v568_v6  ;;  %v557_v9 = vld [vmem:[%s803_s1 + $0x8] sm:$0xff]   ;;  %v558_v10 = vld [vmem:[%s803_s1] sm:$0xff]   ;;  %v565_v16 = vld [vmem:[%s804_s0 + $0x10] ss:$8 sps:$4 sm:$0xff]  }
   0x6   :  { %242 = vmatpush1.bf16.msra.mxu0 %v552_v2  ;;  %542 = vmatpush1.bf16.msra.mxu1 %v552_v2  ;;  %v559_v11 = vld [vmem:[%s803_s1 + $0x40] sm:$0xff]   ;;  %v574_v17 = vld [vmem:[%s804_s0 + $0x50] ss:$8 sps:$4 sm:$0xff]   ;;  %v575_v22 = vld [vmem:[%s804_s0 + $0x34] ss:$8 sps:$4 sm:$0xff]  }
   0x7   :  { %243 = vmatprep.subr.bf16.mxu0 %v584_v0  ;;  %534 = vmatprep.subr.bf16.mxu1 %v584_v0  ;;  %v569_v18 = vld [vmem:[%s804_s0 + $0x24] ss:$8 sps:$4 sm:$0xff]   ;;  %v571_v20 = vld [vmem:[%s804_s0 + $0x20] ss:$8 sps:$4 sm:$0xff]   ;;  %v581_v23 = vld [vmem:[%s804_s0 + $0x74] ss:$8 sps:$4 sm:$0xff]  }
   0x8   :  { %v578_v19 = vld [vmem:[%s804_s0 + $0x64] ss:$8 sps:$4 sm:$0xff]   ;;  %v580_v21 = vld [vmem:[%s804_s0 + $0x60] ss:$8 sps:$4 sm:$0xff]   ;;  %v577_v24 = vld [vmem:[%s804_s0 + $0x30] ss:$8 sps:$4 sm:$0xff]  }
   0x9   :  { %v583_v25 = vld [vmem:[%s804_s0 + $0x70] ss:$8 sps:$4 sm:$0xff]   ;;  %v701_v26 = vld [vmem:[%s805_s2] ss:$0 sm:$0xff] }
   0xa   :  { %244 = vmatpush1.bf16.msra.mxu0 %v553_v3  ;;  %543 = vmatpush1.bf16.msra.mxu1 %v553_v3 }
   0xb   :  { %245 = vmatprep.subr.bf16.mxu0 %v584_v0  ;;  %535 = vmatprep.subr.bf16.mxu1 %v584_v0 }
   0xe   :  { %246 = vmatpush1.bf16.msra.mxu0 %v554_v4  ;;  %544 = vmatpush1.bf16.msra.mxu1 %v554_v4 }
   0xf   :  { %247 = vmatprep.subr.bf16.mxu0 %v584_v0  ;;  %536 = vmatprep.subr.bf16.mxu1 %v584_v0 }
  0x12   :  { %248 = vmatpush1.bf16.msra.mxu0 %v555_v7  ;;  %545 = vmatpush1.bf16.msra.mxu1 %v555_v7 }
  0x13   :  { %249 = vmatprep.subr.bf16.mxu0 %v584_v0  ;;  %537 = vmatprep.subr.bf16.mxu1 %v584_v0 }
  0x16   :  { %250 = vmatpush1.bf16.msra.mxu0 %v556_v8  ;;  %546 = vmatpush1.bf16.msra.mxu1 %v556_v8 }
  0x17   :  { %251 = vmatprep.subr.bf16.mxu0 %v584_v0  ;;  %538 = vmatprep.subr.bf16.mxu1 %v584_v0 }
  0x1a   :  { %252 = vmatpush1.bf16.msra.mxu0 %v557_v9  ;;  %547 = vmatpush1.bf16.msra.mxu1 %v557_v9 }
  0x1b   :  { %253 = vmatprep.subr.bf16.mxu0 %v584_v0  ;;  %539 = vmatprep.subr.bf16.mxu1 %v584_v0 }
  0x1e   :  { %254 = vmatpush1.bf16.msra.mxu0 %v558_v10  ;;  %548 = vmatpush1.bf16.msra.mxu1 %v558_v10 }
  0x1f   :  { %269 = vmatprep.subr.bf16.mxu0 %v584_v0  ;;  %540 = vmatprep.subr.bf16.mxu1 %v584_v0 }
  0x22   :  { %270 = vmatpush2.bf16.msra.mxu0 %v559_v11  ;;  %549 = vmatpush2.bf16.msra.mxu1 %v559_v11 }
  0x25   :  { %272 = vmatmul.mubr.bf16.vlgmr.msra.gmra.mxu0 %v560_v12  ;;  %304 = vmatmul.mubr.bf16.vlgmr.msra.gmra.mxu1 %v566_v13 }
  0x26   :  { %524 = vmatprep.mubr.msk.bf16.mxu0 %vm214_vm0, %v563_v14  ;;  %528 = vmatprep.mubr.msk.bf16.mxu1 %vm214_vm0, %v572_v15 }
  0x2d   :  { %280 = vmatmul.mubr.bf16.gmra.mxu0 %v565_v16  ;;  %312 = vmatmul.mubr.bf16.gmra.mxu1 %v574_v17 }
  0x2e   :  { %525 = vmatprep.mubr.msk.bf16.mxu0 %vm214_vm0, %v569_v18  ;;  %529 = vmatprep.mubr.msk.bf16.mxu1 %vm214_vm0, %v578_v19 }
  0x35   :  { %288 = vmatmul.mubr.bf16.gmra.mxu0 %v571_v20  ;;  %320 = vmatmul.mubr.bf16.gmra.mxu1 %v580_v21 }
  0x36   :  { %526 = vmatprep.mubr.msk.bf16.mxu0 %vm214_vm0, %v575_v22  ;;  %530 = vmatprep.mubr.msk.bf16.mxu1 %vm214_vm0, %v581_v23 }
  0x3d   :  { %296 = vmatmul.mubr.bf16.gmra.mxu0 %v577_v24  ;;  %328 = vmatmul.mubr.bf16.gmra.mxu1 %v583_v25 }
  0xe5   :  { %v273_v27 = vpop.f32.mrf.mxu0  ;;  %v703_v28 = vpop.f32.mrf.mxu1 }
  0xe6   :  { %v454_v29 = vadd.f32 %v701_v26, %v273_v27  ;;  %v462_v30 = vadd.f32 %v701_v26, %v703_v28  ;;  %v408_v54 = vmul.f32 %v273_v27, %v273_v27 }
  0xe7   :  { %v275_v31 = vpop.f32.mrf.mxu0  ;;  %v307_v32 = vpop.f32.mrf.mxu1 }
  0xe8   :  { %470 = vst [vmem:[%s806_s3] sm:$0xff] %v454_v29  ;;  %478 = vst [vmem:[%s806_s3 + $0x40] sm:$0xff] %v462_v30 }
  0xe9   :  { %v276_v33 = vpop.f32.mrf.mxu0  ;;  %v714_v34 = vpop.f32.mrf.mxu1 }
  0xea   :  { %v455_v35 = vadd.f32 %v701_v26, %v276_v33  ;;  %v463_v37 = vadd.f32 %v701_v26, %v714_v34  ;;  %v409_v51 = vmul.f32 %v276_v33, %v276_v33  ;;  %v387_v55 = vadd.f32 %v276_v33, %v273_v27 }
  0xeb   :  { %v278_v36 = vpop.f32.mrf.mxu0  ;;  %v310_v38 = vpop.f32.mrf.mxu1 }
  0xec   :  { %471 = vst [vmem:[%s806_s3 + $0x8] sm:$0xff] %v455_v35  ;;  %479 = vst [vmem:[%s806_s3 + $0x48] sm:$0xff] %v463_v37  ;;  %v424_v61 = vadd.f32 %v409_v51, %v408_v54  ;;  %v416_v35 = vmul.f32 %v703_v28, %v703_v28  ;;  %v417_v38 = vmul.f32 %v714_v34, %v714_v34 }
  0xed   :  { %v281_v39 = vpop.f32.mrf.mxu0  ;;  %v725_v40 = vpop.f32.mrf.mxu1 }
  0xee   :  { %v456_v41 = vadd.f32 %v701_v26, %v281_v39  ;;  %v464_v43 = vadd.f32 %v701_v26, %v725_v40  ;;  %v410_v56 = vmul.f32 %v281_v39, %v281_v39  ;;  %v388_v62 = vadd.f32 %v387_v55, %v281_v39 }
  0xef   :  { %v283_v42 = vpop.f32.mrf.mxu0  ;;  %v315_v44 = vpop.f32.mrf.mxu1 }
  0xf0   :  { %472 = vst [vmem:[%s806_s3 + $0x10] sm:$0xff] %v456_v41  ;;  %480 = vst [vmem:[%s806_s3 + $0x50] sm:$0xff] %v464_v43  ;;  %v425_v2 = vadd.f32 %v424_v61, %v410_v56  ;;  %v418_v41 = vmul.f32 %v725_v40, %v725_v40 }
  0xf1   :  { %v284_v45 = vpop.f32.mrf.mxu0  ;;  %v736_v46 = vpop.f32.mrf.mxu1 }
  0xf2   :  { %v457_v47 = vadd.f32 %v701_v26, %v284_v45  ;;  %v465_v49 = vadd.f32 %v701_v26, %v736_v46  ;;  %v411_v63 = vmul.f32 %v284_v45, %v284_v45  ;;  %v389_v3 = vadd.f32 %v388_v62, %v284_v45 }
  0xf3   :  { %v286_v48 = vpop.f32.mrf.mxu0  ;;  %v318_v50 = vpop.f32.mrf.mxu1  ;;  %v419_v43 = vmul.f32 %v736_v46, %v736_v46 }
  0xf4   :  { %473 = vst [vmem:[%s806_s3 + $0x18] sm:$0xff] %v457_v47  ;;  %481 = vst [vmem:[%s806_s3 + $0x58] sm:$0xff] %v465_v49  ;;  %v426_v9 = vadd.f32 %v425_v2, %v411_v63 }
  0xf5   :  { %v289_v52 = vpop.f32.mrf.mxu0  ;;  %v747_v53 = vpop.f32.mrf.mxu1 }
  0xf6   :  { %v458_v57 = vadd.f32 %v701_v26, %v289_v52  ;;  %v466_v59 = vadd.f32 %v701_v26, %v747_v53  ;;  %v412_v4 = vmul.f32 %v289_v52, %v289_v52  ;;  %v390_v10 = vadd.f32 %v389_v3, %v289_v52 }
  0xf7   :  { %v291_v58 = vpop.f32.mrf.mxu0  ;;  %v323_v60 = vpop.f32.mrf.mxu1  ;;  %v420_v47 = vmul.f32 %v747_v53, %v747_v53 }
  0xf8   :  { %474 = vst [vmem:[%s806_s3 + $0x20] sm:$0xff] %v458_v57  ;;  %482 = vst [vmem:[%s806_s3 + $0x60] sm:$0xff] %v466_v59  ;;  %v427_v14 = vadd.f32 %v426_v9, %v412_v4 }
  0xf9   :  { %v292_v0 = vpop.f32.mrf.mxu0  ;;  %v324_v1 = vpop.f32.mrf.mxu1 }
  0xfa   :  { %v459_v5 = vadd.f32 %v701_v26, %v292_v0  ;;  %v467_v7 = vadd.f32 %v701_v26, %v324_v1  ;;  %v413_v11 = vmul.f32 %v292_v0, %v292_v0  ;;  %v391_v15 = vadd.f32 %v390_v10, %v292_v0 }
  0xfb   :  { %v294_v6 = vpop.f32.mrf.mxu0  ;;  %v326_v8 = vpop.f32.mrf.mxu1  ;;  %v421_v50 = vmul.f32 %v324_v1, %v324_v1 }
  0xfc   :  { %475 = vst [vmem:[%s806_s3 + $0x28] sm:$0xff] %v459_v5  ;;  %483 = vst [vmem:[%s806_s3 + $0x68] sm:$0xff] %v467_v7  ;;  %v428_v21 = vadd.f32 %v427_v14, %v413_v11 }
  0xfd   :  { %v297_v12 = vpop.f32.mrf.mxu0  ;;  %v329_v13 = vpop.f32.mrf.mxu1 }
  0xfe   :  { %v414_v16 = vmul.f32 %v297_v12, %v297_v12  ;;  %v460_v17 = vadd.f32 %v701_v26, %v297_v12  ;;  %v468_v19 = vadd.f32 %v701_v26, %v329_v13  ;;  %v392_v22 = vadd.f32 %v391_v15, %v297_v12 }
  0xff   :  { %v299_v18 = vpop.f32.mrf.mxu0  ;;  %v331_v20 = vpop.f32.mrf.mxu1  ;;  %v422_v55 = vmul.f32 %v329_v13, %v329_v13 }
 0x100   :  { %476 = vst [vmem:[%s806_s3 + $0x30] sm:$0xff] %v460_v17  ;;  %484 = vst [vmem:[%s806_s3 + $0x70] sm:$0xff] %v468_v19  ;;  %v429_v25 = vadd.f32 %v428_v21, %v414_v16 }
 0x101   :  { %v300_v23 = vpop.f32.mrf.mxu0  ;;  %v332_v24 = vpop.f32.mrf.mxu1 }
 0x102   :  { %v393_v27 = vadd.f32 %v392_v22, %v300_v23  ;;  %v415_v29 = vmul.f32 %v300_v23, %v300_v23  ;;  %v461_v30 = vadd.f32 %v701_v26, %v300_v23  ;;  %v469_v32 = vadd.f32 %v701_v26, %v332_v24 }
 0x103   :  { %v302_v31 = vpop.f32.mrf.mxu0  ;;  %v334_v33 = vpop.f32.mrf.mxu1  ;;  %v423_v57 = vmul.f32 %v332_v24, %v332_v24 }
 0x104   :  { %v394_v36 = vadd.f32 %v393_v27, %v703_v28  ;;  %v430_v37 = vadd.f32 %v429_v25, %v415_v29  ;;  %477 = vst [vmem:[%s806_s3 + $0x38] sm:$0xff] %v461_v30  ;;  %485 = vst [vmem:[%s806_s3 + $0x78] sm:$0xff] %v469_v32 }
 0x106   :  { %v395_v26 = vadd.f32 %v394_v36, %v714_v34  ;;  %v431_v39 = vadd.f32 %v430_v37, %v416_v35 }
 0x108   :  { %v432_v42 = vadd.f32 %v431_v39, %v417_v38  ;;  %v396_v28 = vadd.f32 %v395_v26, %v725_v40 }
 0x10a   :  { %v397_v44 = vadd.f32 %v396_v28, %v736_v46  ;;  %v433_v45 = vadd.f32 %v432_v42, %v418_v41 }
 0x10c   :  { %v398_v48 = vadd.f32 %v397_v44, %v747_v53  ;;  %v434_v49 = vadd.f32 %v433_v45, %v419_v43 }
 0x10e   :  { %v399_v34 = vadd.f32 %v398_v48, %v324_v1  ;;  %v435_v51 = vadd.f32 %v434_v49, %v420_v47 }
 0x110   :  { %v436_v52 = vadd.f32 %v435_v51, %v421_v50  ;;  %v400_v54 = vadd.f32 %v399_v34, %v329_v13 }
 0x112   :  { %v437_v56 = vadd.f32 %v436_v52, %v422_v55  ;;  %v401_v40 = vadd.f32 %v400_v54, %v332_v24 }
 0x114   :  { %v402_v58 = vrot.slane %v401_v40, 4  ;;  %v438_v59 = vadd.f32 %v437_v56, %v423_v57 }
 0x116   :  { %v403_v60 = vadd.f32 %v402_v58, %v401_v40  ;;  %v439_v46 = vrot.slane %v438_v59, 4 }
 0x118   :  { %v404_v61 = vrot.slane %v403_v60, 2  ;;  %v440_v62 = vadd.f32 %v439_v46, %v438_v59 }
 0x11a   :  { %v405_v63 = vadd.f32 %v404_v61, %v403_v60  ;;  %v441_v0 = vrot.slane %v440_v62, 2 }
 0x11c   :  { %v406_v2 = vrot.slane %v405_v63, 1  ;;  %v442_v53 = vadd.f32 %v441_v0, %v440_v62 }
 0x11e   :  { %v407_v3 = vadd.f32 %v406_v2, %v405_v63  ;;  %v443_v4 = vrot.slane %v442_v53, 1 }
 0x120   :  { %v444_v1 = vadd.f32 %v443_v4, %v442_v53  ;;  %445 = vst [vmem:[%s807_s4] sm:$0xff] %v407_v3 }
 0x122   :  { %446 = vst [vmem:[%s808_s5] sm:$0xff] %v444_v1 }

// kernel: resnet50_forward.36
= control target key start
LH: loop header
LB: loop body
LE: loop exit
PB: predicated region body
PF: predicated region fallthrough
CT: control target
= control target key end

     0   :  { %11 = vsyncpa [#allocation4], 0  ;;  %vm54_vm0 = vcmask 130048   ;;  %s322_s0 = inlined_call_operand.vmem [shape: bf16[32,16], index: 0, kind: input, shape index: {}]   ;;  %s323_s1 = inlined_call_operand.vmem [shape: bf16[16,128], index: 1, kind: input, shape index: {}]   ;;  %s324_s2 = inlined_call_operand.vmem [shape: f32[1,128], index: 2, kind: input, shape index: {}]   ;;  %s325_s3 = inlined_call_operand.vmem [shape: f32[32,128], index: 3, kind: output, shape index: {0}]   ;;  %s326_s4 = inlined_call_operand.hbm [shape: f32[8,128], index: 4, kind: output, shape index: {1}]   ;;  %s327_s5 = inlined_call_operand.hbm [shape: f32[8,128], index: 5, kind: output, shape index: {2}]  }
   0x1   :  { %v213_v0 = vld [vmem:[%s323_s1] sm:$0xff]   ;;  %v215_v2 = vld [vmem:[%s322_s0 + $0x8] sm:$0xff]  }
   0x2   :  { %v214_v1 = vld [vmem:[%s322_s0] sm:$0xff]   ;;  %205 = vmatprep.subr.bf16.mxu0 %v213_v0 }
   0x3   :  { %206 = vmatpush3.bf16.msra.mxu0 %v213_v0  ;;  %207 = vmatprep.mubr.msk.bf16.mxu0 %vm54_vm0, %v214_v1 }
   0x4   :  { %12 = vsyncpa [#allocation6], 0  ;;  %v201_v3 = vld [vmem:[%s324_s2] ss:$0 sm:$0xff]  ;;  %s260_s6 = smov [#allocation3]   ;;  %s261_s8 = smov [#allocation5]  }
   0x5   :  { %s172_s7 = sshll.u32 %s260_s6, 4  ;;  %s182_s9 = sshll.u32 %s261_s8, 4  ;;  %s173_s7 = int_to_ptr.vmem [resolvable:$true] %s172_s7  ;;  %s183_s9 = int_to_ptr.vmem [resolvable:$true] %s182_s9 }
   0x6   :  { %208 = vmatmul.mubr.msk.bf16.vlgmr.msra.gmra.mxu0 %vm54_vm0, %v215_v2  ;;  %p221_p1 = scmp.lt.s32.totalorder %s173_s7, %s173_s7 }
  0xc6   :  { %v209_v4 = vpop.f32.mrf.mxu0 }
  0xc7   :  { %v158_v5 = vadd.f32 %v209_v4, %v201_v3  ;;  %v136_v15 = vmul.f32 %v209_v4, %v209_v4 }
  0xc8   :  { %v95_v6 = vpop.f32.mrf.mxu0 }
  0xc9   :  { %162 = vst [vmem:[%s325_s3 + $0x10] sm:$0xff] %v158_v5  ;;  %v156_v7 = vadd.f32 %v201_v3, %v95_v6  ;;  %v134_v11 = vmul.f32 %v95_v6, %v95_v6 }
  0xca   :  { %v210_v8 = vpop.f32.mrf.mxu0 }
  0xcb   :  { %160 = vst [vmem:[%s325_s3] sm:$0xff] %v156_v7  ;;  %v159_v9 = vadd.f32 %v210_v8, %v201_v3  ;;  %v137_v18 = vmul.f32 %v210_v8, %v210_v8 }
  0xcc   :  { %v98_v10 = vpop.f32.mrf.mxu0 }
  0xcd   :  { %163 = vst [vmem:[%s325_s3 + $0x18] sm:$0xff] %v159_v9  ;;  %v125_v12 = vadd.f32 %v98_v10, %v95_v6  ;;  %v135_v13 = vmul.f32 %v98_v10, %v98_v10  ;;  %v157_v14 = vadd.f32 %v201_v3, %v98_v10 }
  0xcf   :  { %v126_v16 = vadd.f32 %v209_v4, %v125_v12  ;;  %v138_v17 = vadd.f32 %v135_v13, %v134_v11  ;;  %161 = vst [vmem:[%s325_s3 + $0x8] sm:$0xff] %v157_v14  ;;  %s216_s3 = scalar_lea.vmem %s173_s7, 128 }
  0xd0   :  { %p217_p0 = scmp.ne.s32.totalorder %s173_s7, %s216_s3  ;;  %p222_p2 = scmp.lt.s32.totalorder %s216_s3, %s216_s3 }
  0xd1   :  { %v127_v19 = vadd.f32 %v210_v8, %v126_v16  ;;  %v139_v20 = vadd.f32 %v138_v17, %v136_v15 }
  0xd2   :  { %p223_p3 = por %p222_p2, %p221_p1 }
  0xd3   :  { %v140_v21 = vadd.f32 %v139_v20, %v137_v18  ;;  %v128_v22 = vrot.slane %v127_v19, 4 }
  0xd4   :  { %p224_p4 = pnand %p223_p3, %p217_p0 }
  0xd5   :  { %v129_v23 = vadd.f32 %v128_v22, %v127_v19  ;;  %v141_v24 = vrot.slane %v140_v21, 4 }
  0xd7   :  { %v130_v25 = vrot.slane %v129_v23, 2  ;;  %v142_v26 = vadd.f32 %v141_v24, %v140_v21 }
  0xd9   :  { %v131_v27 = vadd.f32 %v130_v25, %v129_v23  ;;  %v143_v28 = vrot.slane %v142_v26, 2 }
  0xdb   :  { %v132_v29 = vrot.slane %v131_v27, 1  ;;  %v144_v30 = vadd.f32 %v143_v28, %v142_v26 }
  0xdd   :  { %v133_v31 = vadd.f32 %v132_v29, %v131_v27  ;;  %v145_v32 = vrot.slane %v144_v30, 1 }
  0xdf   :  { %147 = vst [vmem:[#allocation3] sm:$0xff] %v133_v31  ;;  %v146_v33 = vadd.f32 %v145_v32, %v144_v30 }
  0xe0   :  { %227 = shalt.err (!%p224_p4)
}
  0xe1   :  { %175 = dma.vmem_to_hbm [thread:$0]  %s173_s7, 128, %s326_s4, [#allocation4]   ;;  %148 = vst [vmem:[#allocation5] sm:$0xff] %v146_v33 }
  0xe2   :  { %s236_s12 = scalar_lea.vmem %s183_s9, 128  ;;  %p241_p6 = scmp.lt.s32.totalorder %s183_s9, %s183_s9 }
  0xe3   :  { %p237_p5 = scmp.ne.s32.totalorder %s183_s9, %s236_s12  ;;  %p242_p7 = scmp.lt.s32.totalorder %s236_s12, %s236_s12 }
  0xe5   :  { %p243_p8 = por %p242_p7, %p241_p6 }
  0xe7   :  { %p244_p9 = pnand %p243_p8, %p237_p5 }
  0xe9   :  { %247 = shalt.err (!%p244_p9)
}
  0xea   :  { %185 = dma.vmem_to_hbm [thread:$0]  %s183_s9, 128, %s327_s5, [#allocation6]  }
  0xeb   :  { %256 = dma.done.wait [#allocation4], 128  }
  0xec   :  { %257 = vsyncadd [#allocation4], 4294967168 }
  0xed   :  { %258 = dma.done.wait [#allocation6], 128  }
  0xee   :  { %259 = vsyncadd [#allocation6], 4294967168 }
  0xef   :  { %194 = vsyncpa [#allocation4], 1 }
  0xf0   :  { %195 = vsyncpa [#allocation6], 1 }

// kernel: resnet50_forward.38
= control target key start
LH: loop header
LB: loop body
LE: loop exit
PB: predicated region body
PF: predicated region fallthrough
CT: control target
= control target key end

     0   :  { %s104_s0 = inlined_call_operand.vmem [shape: f32[32,128], index: 0, kind: input, shape index: {}]   ;;  %s105_s1 = inlined_call_operand.vmem [shape: f32[1,128], index: 1, kind: input, shape index: {}]   ;;  %s106_s2 = inlined_call_operand.vmem [shape: f32[1,128], index: 2, kind: input, shape index: {}]   ;;  %s107_s3 = inlined_call_operand.vmem [shape: f32[32,128], index: 3, kind: output, shape index: {}]  }
   0x1   :  { %v14_v0 = vld [vmem:[%s104_s0] sm:$0xff]  ;;  %v15_v4 = vld [vmem:[%s104_s0 + $0x8] sm:$0xff]  ;;  %v16_v5 = vld [vmem:[%s104_s0 + $0x10] sm:$0xff] }
   0x2   :  { %v52_v1 = vld [vmem:[%s105_s1] ss:$0 sm:$0xff]  ;;  %v17_v6 = vld [vmem:[%s104_s0 + $0x18] sm:$0xff] }
   0x3   :  { %v53_v2 = vld [vmem:[%s106_s2] ss:$0 sm:$0xff]  ;;  %v25_v3 = vmul.f32 %v52_v1, %v14_v0  ;;  %v26_v7 = vmul.f32 %v52_v1, %v15_v4  ;;  %v27_v8 = vmul.f32 %v52_v1, %v16_v5  ;;  %v28_v9 = vmul.f32 %v52_v1, %v17_v6 }
   0x5   :  { %v36_v10 = vadd.f32 %v53_v2, %v25_v3  ;;  %v37_v11 = vadd.f32 %v53_v2, %v26_v7  ;;  %v38_v12 = vadd.f32 %v53_v2, %v27_v8  ;;  %v39_v13 = vadd.f32 %v53_v2, %v28_v9 }
   0x7   :  { %v40_v14 = vmax.f32 %v36_v10, 0.0  ;;  %v41_v15 = vmax.f32 %v37_v11, 0.0  ;;  %v42_v16 = vmax.f32 %v38_v12, 0.0  ;;  %v43_v17 = vmax.f32 %v39_v13, 0.0 }
   0x9   :  { %44 = vst [vmem:[%s107_s3] sm:$0xff] %v40_v14  ;;  %45 = vst [vmem:[%s107_s3 + $0x8] sm:$0xff] %v41_v15 }
   0xa   :  { %46 = vst [vmem:[%s107_s3 + $0x10] sm:$0xff] %v42_v16  ;;  %47 = vst [vmem:[%s107_s3 + $0x18] sm:$0xff] %v43_v17 }

// kernel: resnet50_forward.37
= control target key start
LH: loop header
LB: loop body
LE: loop exit
PB: predicated region body
PF: predicated region fallthrough
CT: control target
= control target key end

     0   :  { %v296_v0 = vmov 0   ;;  %vm124_vm0 = vcmask 130048   ;;  %s387_s1 = inlined_call_operand.vmem [shape: bf16[144,128], index: 1, kind: input, shape index: {}]   ;;  %s388_s0 = inlined_call_operand.vmem [shape: bf16[32,144], index: 0, kind: input, shape index: {}]   ;;  %s389_s2 = inlined_call_operand.vmem [shape: f32[1,128], index: 2, kind: input, shape index: {}]   ;;  %s390_s3 = inlined_call_operand.vmem [shape: f32[32,128], index: 3, kind: output, shape index: {0}]   ;;  %s391_s4 = inlined_call_operand.vmem [shape: f32[8,128], index: 4, kind: output, shape index: {1}]   ;;  %s392_s5 = inlined_call_operand.vmem [shape: f32[8,128], index: 5, kind: output, shape index: {2}]  }
   0x1   :  { %131 = vmatprep.subr.bf16.mxu0 %v296_v0  ;;  %262 = vmatprep.subr.bf16.mxu1 %v296_v0  ;;  %v281_v1 = vld [vmem:[%s387_s1 + $0x38] sm:$0xff]   ;;  %v282_v2 = vld [vmem:[%s387_s1 + $0x30] sm:$0xff]   ;;  %v283_v3 = vld [vmem:[%s387_s1 + $0x28] sm:$0xff]  }
   0x2   :  { %132 = vmatpush1.bf16.msra.mxu0 %v281_v1  ;;  %271 = vmatpush1.bf16.msra.mxu1 %v281_v1  ;;  %v284_v4 = vld [vmem:[%s387_s1 + $0x20] sm:$0xff]   ;;  %v295_v6 = vld [vmem:[%s388_s0 + $0x14] ss:$8 sps:$4 sm:$0xff]   ;;  %v287_v9 = vld [vmem:[%s387_s1 + $0x8] sm:$0xff]  }
   0x3   :  { %133 = vmatprep.subr.bf16.mxu0 %v296_v0  ;;  %263 = vmatprep.subr.bf16.mxu1 %v296_v0  ;;  %v292_v5 = vld [vmem:[%s388_s0 + $0x4] ss:$8 sps:$4 sm:$0xff]   ;;  %v285_v7 = vld [vmem:[%s387_s1 + $0x18] sm:$0xff]   ;;  %v286_v8 = vld [vmem:[%s387_s1 + $0x10] sm:$0xff]  }
   0x4   :  { %259 = vmatprep.mubr.msk.bf16.mxu0 %vm124_vm0, %v292_v5  ;;  %260 = vmatprep.mubr.msk.bf16.mxu1 %vm124_vm0, %v295_v6  ;;  %v288_v10 = vld [vmem:[%s387_s1] sm:$0xff]   ;;  %v293_v13 = vld [vmem:[%s388_s0 + $0x10] ss:$8 sps:$4 sm:$0xff]  }
   0x5   :  { %v289_v11 = vld [vmem:[%s387_s1 + $0x40] sm:$0xff]  }
   0x6   :  { %134 = vmatpush1.bf16.msra.mxu0 %v282_v2  ;;  %272 = vmatpush1.bf16.msra.mxu1 %v282_v2  ;;  %v290_v12 = vld [vmem:[%s388_s0] ss:$8 sps:$4 sm:$0xff]  }
   0x7   :  { %135 = vmatprep.subr.bf16.mxu0 %v296_v0  ;;  %264 = vmatprep.subr.bf16.mxu1 %v296_v0  ;;  %v261_v14 = vld [vmem:[%s389_s2] ss:$0 sm:$0xff] }
   0xa   :  { %136 = vmatpush1.bf16.msra.mxu0 %v283_v3  ;;  %273 = vmatpush1.bf16.msra.mxu1 %v283_v3 }
   0xb   :  { %137 = vmatprep.subr.bf16.mxu0 %v296_v0  ;;  %265 = vmatprep.subr.bf16.mxu1 %v296_v0 }
   0xe   :  { %138 = vmatpush1.bf16.msra.mxu0 %v284_v4  ;;  %274 = vmatpush1.bf16.msra.mxu1 %v284_v4 }
   0xf   :  { %139 = vmatprep.subr.bf16.mxu0 %v296_v0  ;;  %266 = vmatprep.subr.bf16.mxu1 %v296_v0 }
  0x12   :  { %140 = vmatpush1.bf16.msra.mxu0 %v285_v7  ;;  %275 = vmatpush1.bf16.msra.mxu1 %v285_v7 }
  0x13   :  { %141 = vmatprep.subr.bf16.mxu0 %v296_v0  ;;  %267 = vmatprep.subr.bf16.mxu1 %v296_v0 }
  0x16   :  { %142 = vmatpush1.bf16.msra.mxu0 %v286_v8  ;;  %276 = vmatpush1.bf16.msra.mxu1 %v286_v8 }
  0x17   :  { %143 = vmatprep.subr.bf16.mxu0 %v296_v0  ;;  %268 = vmatprep.subr.bf16.mxu1 %v296_v0 }
  0x1a   :  { %144 = vmatpush1.bf16.msra.mxu0 %v287_v9  ;;  %277 = vmatpush1.bf16.msra.mxu1 %v287_v9 }
  0x1b   :  { %145 = vmatprep.subr.bf16.mxu0 %v296_v0  ;;  %269 = vmatprep.subr.bf16.mxu1 %v296_v0 }
  0x1e   :  { %146 = vmatpush1.bf16.msra.mxu0 %v288_v10  ;;  %278 = vmatpush1.bf16.msra.mxu1 %v288_v10 }
  0x1f   :  { %161 = vmatprep.subr.bf16.mxu0 %v296_v0  ;;  %270 = vmatprep.subr.bf16.mxu1 %v296_v0 }
  0x22   :  { %162 = vmatpush2.bf16.msra.mxu0 %v289_v11  ;;  %279 = vmatpush2.bf16.msra.mxu1 %v289_v11 }
  0x25   :  { %164 = vmatmul.mubr.bf16.vlgmr.msra.gmra.mxu0 %v290_v12  ;;  %172 = vmatmul.mubr.bf16.vlgmr.msra.gmra.mxu1 %v293_v13 }
  0xe5   :  { %v165_v15 = vpop.f32.mrf.mxu0  ;;  %v173_v16 = vpop.f32.mrf.mxu1 }
  0xe6   :  { %v226_v17 = vadd.f32 %v261_v14, %v165_v15  ;;  %v228_v18 = vadd.f32 %v261_v14, %v173_v16  ;;  %v204_v23 = vmul.f32 %v165_v15, %v165_v15  ;;  %v206_v30 = vmul.f32 %v173_v16, %v173_v16 }
  0xe7   :  { %v167_v19 = vpop.f32.mrf.mxu0  ;;  %v175_v20 = vpop.f32.mrf.mxu1 }
  0xe8   :  { %230 = vst [vmem:[%s390_s3] sm:$0xff] %v226_v17  ;;  %232 = vst [vmem:[%s390_s3 + $0x10] sm:$0xff] %v228_v18 }
  0xe9   :  { %v168_v21 = vpop.f32.mrf.mxu0  ;;  %v176_v22 = vpop.f32.mrf.mxu1 }
  0xea   :  { %v195_v24 = vadd.f32 %v168_v21, %v165_v15  ;;  %v205_v25 = vmul.f32 %v168_v21, %v168_v21  ;;  %v227_v26 = vadd.f32 %v261_v14, %v168_v21  ;;  %v229_v27 = vadd.f32 %v261_v14, %v176_v22 }
  0xeb   :  { %v170_v28 = vpop.f32.mrf.mxu0  ;;  %v178_v29 = vpop.f32.mrf.mxu1  ;;  %v207_v34 = vmul.f32 %v176_v22, %v176_v22 }
  0xec   :  { %v208_v31 = vadd.f32 %v205_v25, %v204_v23  ;;  %231 = vst [vmem:[%s390_s3 + $0x8] sm:$0xff] %v227_v26  ;;  %v196_v32 = vadd.f32 %v195_v24, %v173_v16  ;;  %233 = vst [vmem:[%s390_s3 + $0x18] sm:$0xff] %v229_v27 }
  0xee   :  { %v197_v33 = vadd.f32 %v196_v32, %v176_v22  ;;  %v209_v35 = vadd.f32 %v208_v31, %v206_v30 }
  0xf0   :  { %v198_v36 = vrot.slane %v197_v33, 4  ;;  %v210_v37 = vadd.f32 %v209_v35, %v207_v34 }
  0xf2   :  { %v199_v38 = vadd.f32 %v198_v36, %v197_v33  ;;  %v211_v39 = vrot.slane %v210_v37, 4 }
  0xf4   :  { %v200_v40 = vrot.slane %v199_v38, 2  ;;  %v212_v41 = vadd.f32 %v211_v39, %v210_v37 }
  0xf6   :  { %v201_v42 = vadd.f32 %v200_v40, %v199_v38  ;;  %v213_v43 = vrot.slane %v212_v41, 2 }
  0xf8   :  { %v202_v44 = vrot.slane %v201_v42, 1  ;;  %v214_v45 = vadd.f32 %v213_v43, %v212_v41 }
  0xfa   :  { %v203_v46 = vadd.f32 %v202_v44, %v201_v42  ;;  %v215_v47 = vrot.slane %v214_v45, 1 }
  0xfc   :  { %v216_v48 = vadd.f32 %v215_v47, %v214_v45  ;;  %217 = vst [vmem:[%s391_s4] sm:$0xff] %v203_v46 }
  0xfe   :  { %218 = vst [vmem:[%s392_s5] sm:$0xff] %v216_v48 }

// kernel: resnet50_forward.40
= control target key start
LH: loop header
LB: loop body
LE: loop exit
PB: predicated region body
PF: predicated region fallthrough
CT: control target
= control target key end

     0   :  { %s132_s0 = inlined_call_operand.vmem [shape: f32[32,128], index: 0, kind: input, shape index: {}]   ;;  %s133_s1 = inlined_call_operand.vmem [shape: f32[32,128], index: 1, kind: input, shape index: {}]   ;;  %s134_s2 = inlined_call_operand.vmem [shape: f32[1,128], index: 2, kind: input, shape index: {}]   ;;  %s135_s3 = inlined_call_operand.vmem [shape: f32[1,128], index: 3, kind: input, shape index: {}]   ;;  %s136_s4 = inlined_call_operand.vmem [shape: f32[32,128], index: 4, kind: output, shape index: {}]  }
   0x1   :  { %v17_v0 = vld [vmem:[%s132_s0] sm:$0xff]  ;;  %v18_v4 = vld [vmem:[%s132_s0 + $0x8] sm:$0xff]  ;;  %v19_v7 = vld [vmem:[%s132_s0 + $0x10] sm:$0xff] }
   0x2   :  { %v63_v1 = vld [vmem:[%s134_s2] ss:$0 sm:$0xff]  ;;  %v20_v8 = vld [vmem:[%s132_s0 + $0x18] sm:$0xff]  ;;  %v44_v10 = vld [vmem:[%s133_s1 + $0x8] sm:$0xff] }
   0x3   :  { %v64_v2 = vld [vmem:[%s135_s3] ss:$0 sm:$0xff]  ;;  %v28_v3 = vmul.f32 %v63_v1, %v17_v0  ;;  %v29_v6 = vmul.f32 %v63_v1, %v18_v4  ;;  %v30_v11 = vmul.f32 %v63_v1, %v19_v7  ;;  %v31_v12 = vmul.f32 %v63_v1, %v20_v8  ;;  %v45_v14 = vld [vmem:[%s133_s1 + $0x10] sm:$0xff]  ;;  %v46_v15 = vld [vmem:[%s133_s1 + $0x18] sm:$0xff] }
   0x4   :  { %v43_v5 = vld [vmem:[%s133_s1] sm:$0xff] }
   0x5   :  { %v39_v9 = vadd.f32 %v64_v2, %v28_v3  ;;  %v40_v13 = vadd.f32 %v64_v2, %v29_v6  ;;  %v41_v17 = vadd.f32 %v64_v2, %v30_v11  ;;  %v42_v18 = vadd.f32 %v64_v2, %v31_v12 }
   0x7   :  { %v47_v16 = vadd.f32 %v43_v5, %v39_v9  ;;  %v48_v19 = vadd.f32 %v44_v10, %v40_v13  ;;  %v49_v21 = vadd.f32 %v45_v14, %v41_v17  ;;  %v50_v22 = vadd.f32 %v46_v15, %v42_v18 }
   0x9   :  { %v51_v20 = vmax.f32 %v47_v16, 0.0  ;;  %v52_v23 = vmax.f32 %v48_v19, 0.0  ;;  %v53_v24 = vmax.f32 %v49_v21, 0.0  ;;  %v54_v25 = vmax.f32 %v50_v22, 0.0 }
   0xb   :  { %55 = vst [vmem:[%s136_s4] sm:$0xff] %v51_v20  ;;  %56 = vst [vmem:[%s136_s4 + $0x8] sm:$0xff] %v52_v23 }
   0xc   :  { %57 = vst [vmem:[%s136_s4 + $0x10] sm:$0xff] %v53_v24  ;;  %58 = vst [vmem:[%s136_s4 + $0x18] sm:$0xff] %v54_v25 }

// kernel: resnet50_forward.39
= control target key start
LH: loop header
LB: loop body
LE: loop exit
PB: predicated region body
PF: predicated region fallthrough
CT: control target
= control target key end

     0   :  { %vm212_vm0 = vcmask 261120   ;;  %s599_s1 = inlined_call_operand.vmem [shape: bf16[288,128], index: 1, kind: input, shape index: {}]   ;;  %s600_s0 = inlined_call_operand.vmem [shape: bf16[32,288], index: 0, kind: input, shape index: {}]   ;;  %s601_s2 = inlined_call_operand.vmem [shape: f32[1,128], index: 2, kind: input, shape index: {}]   ;;  %s602_s3 = inlined_call_operand.vmem [shape: f32[32,128], index: 3, kind: output, shape index: {0}]   ;;  %s603_s4 = inlined_call_operand.vmem [shape: f32[8,128], index: 4, kind: output, shape index: {1}]   ;;  %s604_s5 = inlined_call_operand.vmem [shape: f32[8,128], index: 5, kind: output, shape index: {2}]  }
   0x1   :  { %v450_v0 = vld [vmem:[%s599_s1 + $0x78] sm:$0xff]   ;;  %v452_v2 = vld [vmem:[%s599_s1 + $0x70] sm:$0xff]   ;;  %v454_v4 = vld [vmem:[%s599_s1 + $0x68] sm:$0xff]  }
   0x2   :  { %v451_v1 = vld [vmem:[%s599_s1 + $0x38] sm:$0xff]   ;;  %410 = vmatprep.subr.bf16.mxu0 %v450_v0  ;;  %v453_v3 = vld [vmem:[%s599_s1 + $0x30] sm:$0xff]   ;;  %v455_v5 = vld [vmem:[%s599_s1 + $0x28] sm:$0xff]  }
   0x3   :  { %411 = vmatpush3.bf16.msra.mxu0 %v451_v1  ;;  %v456_v6 = vld [vmem:[%s599_s1 + $0x60] sm:$0xff]   ;;  %v458_v8 = vld [vmem:[%s599_s1 + $0x58] sm:$0xff]   ;;  %v463_v9 = vld [vmem:[%s599_s1 + $0x88] sm:$0xff]  }
   0x4   :  { %412 = vmatprep.subr.bf16.mxu0 %v452_v2  ;;  %v457_v7 = vld [vmem:[%s599_s1 + $0x20] sm:$0xff]   ;;  %v459_v10 = vld [vmem:[%s599_s1 + $0x18] sm:$0xff]   ;;  %v460_v11 = vld [vmem:[%s599_s1 + $0x50] sm:$0xff]   ;;  %442 = vmatprep.subr.bf16.mxu1 %v463_v9 }
   0x5   :  { %443 = vmatpush3.bf16.msra.mxu1 %v463_v9  ;;  %v466_v12 = vld [vmem:[%s599_s1 + $0x80] sm:$0xff]   ;;  %v461_v13 = vld [vmem:[%s599_s1 + $0x10] sm:$0xff]   ;;  %v462_v14 = vld [vmem:[%s599_s1 + $0x48] sm:$0xff]  }
   0x6   :  { %444 = vmatprep.subr.bf16.mxu1 %v466_v12  ;;  %v470_v15 = vld [vmem:[%s600_s0 + $0x4] ss:$12 sps:$4 sm:$0xff]   ;;  %v471_v16 = vld [vmem:[%s600_s0 + $0x8] ss:$12 sps:$4 sm:$0xff]   ;;  %v472_v17 = vld [vmem:[%s600_s0 + $0x20] ss:$12 sps:$4 sm:$0xff]  }
   0x7   :  { %413 = vmatpush3.bf16.msra.mxu0 %v453_v3  ;;  %251 = vmatprep.mubr.bf16.mxu0 %v470_v15  ;;  %v464_v18 = vld [vmem:[%s599_s1 + $0x8] sm:$0xff]   ;;  %v465_v19 = vld [vmem:[%s599_s1 + $0x40] sm:$0xff]  }
   0x8   :  { %414 = vmatprep.subr.bf16.mxu0 %v454_v4  ;;  %446 = vmatprep.mubr.msk.bf16.mxu1 %vm212_vm0, %v471_v16  ;;  %v467_v20 = vld [vmem:[%s599_s1] sm:$0xff]   ;;  %v473_v22 = vld [vmem:[%s600_s0 + $0x1c] ss:$12 sps:$4 sm:$0xff]  }
   0x9   :  { %445 = vmatpush3.bf16.msra.mxu1 %v466_v12  ;;  %v468_v21 = vld [vmem:[%s600_s0] ss:$12 sps:$4 sm:$0xff]   ;;  %v475_v23 = vld [vmem:[%s600_s0 + $0x18] ss:$12 sps:$4 sm:$0xff]  }
   0xa   :  { %v409_v29 = vld [vmem:[%s601_s2] ss:$0 sm:$0xff] }
   0xb   :  { %415 = vmatpush3.bf16.msra.mxu0 %v455_v5 }
   0xc   :  { %416 = vmatprep.subr.bf16.mxu0 %v456_v6  ;;  %447 = vmatmul.mubr.msk.bf16.vlgmr.msra.gmra.mxu1 %vm212_vm0, %v472_v17 }
   0xf   :  { %417 = vmatpush3.bf16.msra.mxu0 %v457_v7 }
  0x10   :  { %418 = vmatprep.subr.bf16.mxu0 %v458_v8 }
  0x13   :  { %419 = vmatpush3.bf16.msra.mxu0 %v459_v10 }
  0x14   :  { %420 = vmatprep.subr.bf16.mxu0 %v460_v11 }
  0x17   :  { %421 = vmatpush3.bf16.msra.mxu0 %v461_v13 }
  0x18   :  { %422 = vmatprep.subr.bf16.mxu0 %v462_v14 }
  0x1b   :  { %423 = vmatpush3.bf16.msra.mxu0 %v464_v18 }
  0x1c   :  { %424 = vmatprep.subr.bf16.mxu0 %v465_v19 }
  0x1f   :  { %425 = vmatpush3.bf16.msra.mxu0 %v467_v20 }
  0x22   :  { %252 = vmatmul.mubr.bf16.vlgmr.msra.gmra.mxu0 %v468_v21 }
  0x23   :  { %259 = vmatprep.mubr.bf16.mxu0 %v473_v22 }
  0x2a   :  { %260 = vmatmul.mubr.bf16.gmra.mxu0 %v475_v23 }
  0xcc   :  { %v448_v24 = vpop.f32.mrf.mxu1 }
  0xce   :  { %v302_v26 = vpop.f32.mrf.mxu1 }
  0xd0   :  { %v449_v31 = vpop.f32.mrf.mxu1 }
  0xd2   :  { %v305_v36 = vpop.f32.mrf.mxu1 }
  0xe2   :  { %v426_v25 = vpop.f32.mrf.mxu0 }
  0xe4   :  { %v427_v27 = vpop.f32.mrf.mxu0 }
  0xe5   :  { %v428_v28 = vadd.f32 %v427_v27, %v426_v25 }
  0xe6   :  { %v429_v30 = vpop.f32.mrf.mxu0 }
  0xe7   :  { %v303_v32 = vadd.f32 %v428_v28, %v302_v26 }
  0xe8   :  { %v430_v33 = vpop.f32.mrf.mxu0 }
  0xe9   :  { %v363_v34 = vadd.f32 %v409_v29, %v303_v32  ;;  %v431_v35 = vadd.f32 %v430_v33, %v429_v30  ;;  %v341_v45 = vmul.f32 %v303_v32, %v303_v32 }
  0xea   :  { %v432_v37 = vpop.f32.mrf.mxu0 }
  0xeb   :  { %367 = vst [vmem:[%s602_s3] sm:$0xff] %v363_v34  ;;  %v306_v38 = vadd.f32 %v431_v35, %v305_v36 }
  0xec   :  { %v433_v39 = vpop.f32.mrf.mxu0 }
  0xed   :  { %v364_v40 = vadd.f32 %v409_v29, %v306_v38  ;;  %v434_v41 = vadd.f32 %v433_v39, %v432_v37  ;;  %v342_v43 = vmul.f32 %v306_v38, %v306_v38  ;;  %v332_v47 = vadd.f32 %v306_v38, %v303_v32 }
  0xee   :  { %v435_v42 = vpop.f32.mrf.mxu0 }
  0xef   :  { %368 = vst [vmem:[%s602_s3 + $0x8] sm:$0xff] %v364_v40  ;;  %v311_v44 = vadd.f32 %v448_v24, %v434_v41  ;;  %v345_v51 = vadd.f32 %v342_v43, %v341_v45 }
  0xf0   :  { %v436_v46 = vpop.f32.mrf.mxu0 }
  0xf1   :  { %v343_v48 = vmul.f32 %v311_v44, %v311_v44  ;;  %v365_v49 = vadd.f32 %v409_v29, %v311_v44  ;;  %v437_v50 = vadd.f32 %v436_v46, %v435_v42  ;;  %v333_v52 = vadd.f32 %v332_v47, %v311_v44 }
  0xf3   :  { %369 = vst [vmem:[%s602_s3 + $0x10] sm:$0xff] %v365_v49  ;;  %v314_v53 = vadd.f32 %v449_v31, %v437_v50  ;;  %v346_v54 = vadd.f32 %v345_v51, %v343_v48 }
  0xf5   :  { %v334_v55 = vadd.f32 %v333_v52, %v314_v53  ;;  %v344_v56 = vmul.f32 %v314_v53, %v314_v53  ;;  %v366_v57 = vadd.f32 %v409_v29, %v314_v53 }
  0xf7   :  { %v335_v58 = vrot.slane %v334_v55, 4  ;;  %v347_v59 = vadd.f32 %v346_v54, %v344_v56  ;;  %370 = vst [vmem:[%s602_s3 + $0x18] sm:$0xff] %v366_v57 }
  0xf9   :  { %v336_v60 = vadd.f32 %v335_v58, %v334_v55  ;;  %v348_v61 = vrot.slane %v347_v59, 4 }
  0xfb   :  { %v337_v62 = vrot.slane %v336_v60, 2  ;;  %v349_v63 = vadd.f32 %v348_v61, %v347_v59 }
  0xfd   :  { %v338_v0 = vadd.f32 %v337_v62, %v336_v60  ;;  %v350_v1 = vrot.slane %v349_v63, 2 }
  0xff   :  { %v339_v2 = vrot.slane %v338_v0, 1  ;;  %v351_v3 = vadd.f32 %v350_v1, %v349_v63 }
 0x101   :  { %v340_v4 = vadd.f32 %v339_v2, %v338_v0  ;;  %v352_v5 = vrot.slane %v351_v3, 1 }
 0x103   :  { %v353_v6 = vadd.f32 %v352_v5, %v351_v3  ;;  %354 = vst [vmem:[%s603_s4] sm:$0xff] %v340_v4 }
 0x105   :  { %355 = vst [vmem:[%s604_s5] sm:$0xff] %v353_v6 }

// kernel: resnet50_forward.41
= control target key start
LH: loop header
LB: loop body
LE: loop exit
PB: predicated region body
PF: predicated region fallthrough
CT: control target
= control target key end

     0   :  { %11 = vsyncpa [#allocation4], 0  ;;  %vm62_vm0 = vcmask 261120   ;;  %s338_s0 = inlined_call_operand.vmem [shape: bf16[32,32], index: 0, kind: input, shape index: {}]   ;;  %s339_s1 = inlined_call_operand.vmem [shape: bf16[32,128], index: 1, kind: input, shape index: {}]   ;;  %s340_s2 = inlined_call_operand.vmem [shape: f32[1,128], index: 2, kind: input, shape index: {}]   ;;  %s341_s3 = inlined_call_operand.vmem [shape: f32[32,128], index: 3, kind: output, shape index: {0}]   ;;  %s342_s4 = inlined_call_operand.hbm [shape: f32[8,128], index: 4, kind: output, shape index: {1}]   ;;  %s343_s5 = inlined_call_operand.hbm [shape: f32[8,128], index: 5, kind: output, shape index: {2}]  }
   0x1   :  { %v225_v0 = vld [vmem:[%s339_s1 + $0x8] sm:$0xff]   ;;  %v226_v1 = vld [vmem:[%s339_s1] sm:$0xff]  }
   0x2   :  { %215 = vmatprep.subr.bf16.mxu0 %v225_v0  ;;  %v227_v2 = vld [vmem:[%s338_s0] sm:$0xff]  }
   0x3   :  { %216 = vmatpush3.bf16.msra.mxu0 %v225_v0  ;;  %219 = vmatprep.mubr.msk.bf16.mxu0 %vm62_vm0, %v227_v2 }
   0x4   :  { %217 = vmatprep.subr.bf16.mxu0 %v226_v1 }
   0x5   :  { %12 = vsyncpa [#allocation6], 0  ;;  %v228_v3 = vld [vmem:[%s338_s0 + $0x8] sm:$0xff]   ;;  %v210_v4 = vld [vmem:[%s340_s2] ss:$0 sm:$0xff]  ;;  %s273_s8 = smov [#allocation3]  }
   0x6   :  { %s180_s9 = sshll.u32 %s273_s8, 4  ;;  %s274_s10 = smov [#allocation5]   ;;  %s181_s9 = int_to_ptr.vmem [resolvable:$true] %s180_s9 }
   0x7   :  { %218 = vmatpush3.bf16.msra.mxu0 %v226_v1  ;;  %s190_s11 = sshll.u32 %s274_s10, 4  ;;  %p234_p1 = scmp.lt.s32.totalorder %s181_s9, %s181_s9  ;;  %s191_s11 = int_to_ptr.vmem [resolvable:$true] %s190_s11 }
   0xa   :  { %220 = vmatmul.mubr.msk.bf16.vlgmr.msra.gmra.mxu0 %vm62_vm0, %v228_v3 }
  0xca   :  { %v221_v5 = vpop.f32.mrf.mxu0 }
  0xcb   :  { %v166_v6 = vadd.f32 %v221_v5, %v210_v4  ;;  %v144_v16 = vmul.f32 %v221_v5, %v221_v5 }
  0xcc   :  { %v103_v7 = vpop.f32.mrf.mxu0 }
  0xcd   :  { %170 = vst [vmem:[%s341_s3 + $0x10] sm:$0xff] %v166_v6  ;;  %v164_v8 = vadd.f32 %v210_v4, %v103_v7  ;;  %v142_v12 = vmul.f32 %v103_v7, %v103_v7 }
  0xce   :  { %v222_v9 = vpop.f32.mrf.mxu0 }
  0xcf   :  { %168 = vst [vmem:[%s341_s3] sm:$0xff] %v164_v8  ;;  %v167_v10 = vadd.f32 %v222_v9, %v210_v4  ;;  %v145_v19 = vmul.f32 %v222_v9, %v222_v9 }
  0xd0   :  { %v106_v11 = vpop.f32.mrf.mxu0 }
  0xd1   :  { %171 = vst [vmem:[%s341_s3 + $0x18] sm:$0xff] %v167_v10  ;;  %v133_v13 = vadd.f32 %v106_v11, %v103_v7  ;;  %v143_v14 = vmul.f32 %v106_v11, %v106_v11  ;;  %v165_v15 = vadd.f32 %v210_v4, %v106_v11 }
  0xd3   :  { %v134_v17 = vadd.f32 %v221_v5, %v133_v13  ;;  %v146_v18 = vadd.f32 %v143_v14, %v142_v12  ;;  %169 = vst [vmem:[%s341_s3 + $0x8] sm:$0xff] %v165_v15  ;;  %s229_s3 = scalar_lea.vmem %s181_s9, 128 }
  0xd4   :  { %p230_p0 = scmp.ne.s32.totalorder %s181_s9, %s229_s3  ;;  %p235_p2 = scmp.lt.s32.totalorder %s229_s3, %s229_s3 }
  0xd5   :  { %v135_v20 = vadd.f32 %v222_v9, %v134_v17  ;;  %v147_v21 = vadd.f32 %v146_v18, %v144_v16 }
  0xd6   :  { %p236_p3 = por %p235_p2, %p234_p1 }
  0xd7   :  { %v148_v22 = vadd.f32 %v147_v21, %v145_v19  ;;  %v136_v23 = vrot.slane %v135_v20, 4 }
  0xd8   :  { %p237_p4 = pnand %p236_p3, %p230_p0 }
  0xd9   :  { %v137_v24 = vadd.f32 %v136_v23, %v135_v20  ;;  %v149_v25 = vrot.slane %v148_v22, 4 }
  0xdb   :  { %v138_v26 = vrot.slane %v137_v24, 2  ;;  %v150_v27 = vadd.f32 %v149_v25, %v148_v22 }
  0xdd   :  { %v139_v28 = vadd.f32 %v138_v26, %v137_v24  ;;  %v151_v29 = vrot.slane %v150_v27, 2 }
  0xdf   :  { %v140_v30 = vrot.slane %v139_v28, 1  ;;  %v152_v31 = vadd.f32 %v151_v29, %v150_v27 }
  0xe1   :  { %v141_v32 = vadd.f32 %v140_v30, %v139_v28  ;;  %v153_v33 = vrot.slane %v152_v31, 1 }
  0xe3   :  { %155 = vst [vmem:[#allocation3] sm:$0xff] %v141_v32  ;;  %v154_v34 = vadd.f32 %v153_v33, %v152_v31 }
  0xe4   :  { %240 = shalt.err (!%p237_p4)
}
  0xe5   :  { %183 = dma.vmem_to_hbm [thread:$0]  %s181_s9, 128, %s342_s4, [#allocation4]   ;;  %156 = vst [vmem:[#allocation5] sm:$0xff] %v154_v34 }
  0xe6   :  { %s249_s14 = scalar_lea.vmem %s191_s11, 128  ;;  %p254_p6 = scmp.lt.s32.totalorder %s191_s11, %s191_s11 }
  0xe7   :  { %p250_p5 = scmp.ne.s32.totalorder %s191_s11, %s249_s14  ;;  %p255_p7 = scmp.lt.s32.totalorder %s249_s14, %s249_s14 }
  0xe9   :  { %p256_p8 = por %p255_p7, %p254_p6 }
  0xeb   :  { %p257_p9 = pnand %p256_p8, %p250_p5 }
  0xed   :  { %260 = shalt.err (!%p257_p9)
}
  0xee   :  { %193 = dma.vmem_to_hbm [thread:$0]  %s191_s11, 128, %s343_s5, [#allocation6]  }
  0xef   :  { %269 = dma.done.wait [#allocation4], 128  }
  0xf0   :  { %270 = vsyncadd [#allocation4], 4294967168 }
  0xf1   :  { %271 = dma.done.wait [#allocation6], 128  }
  0xf2   :  { %272 = vsyncadd [#allocation6], 4294967168 }
  0xf3   :  { %202 = vsyncpa [#allocation4], 1 }
  0xf4   :  { %203 = vsyncpa [#allocation6], 1 }

// kernel: resnet50_forward.46
= control target key start
LH: loop header
LB: loop body
LE: loop exit
PB: predicated region body
PF: predicated region fallthrough
CT: control target
= control target key end

     0   :  { %11 = vsyncpa [#allocation4], 0  ;;  %s750_s0 = inlined_call_operand.vmem [shape: bf16[8,512], index: 0, kind: input, shape index: {}]   ;;  %s751_s1 = inlined_call_operand.vmem [shape: bf16[512,128], index: 1, kind: input, shape index: {}]   ;;  %s752_s2 = inlined_call_operand.vmem [shape: f32[1,128], index: 2, kind: input, shape index: {}]   ;;  %s753_s3 = inlined_call_operand.vmem [shape: f32[8,128], index: 3, kind: output, shape index: {0}]   ;;  %s754_s4 = inlined_call_operand.hbm [shape: f32[8,128], index: 4, kind: output, shape index: {1}]   ;;  %s755_s5 = inlined_call_operand.hbm [shape: f32[8,128], index: 5, kind: output, shape index: {2}]  }
   0x1   :  { %v524_v0 = vld [vmem:[%s751_s1 + $0x78] sm:$0xff]   ;;  %v528_v4 = vld [vmem:[%s751_s1 + $0x70] sm:$0xff]   ;;  %v532_v8 = vld [vmem:[%s751_s1 + $0x68] sm:$0xff]  }
   0x2   :  { %v525_v1 = vld [vmem:[%s751_s1 + $0xf8] sm:$0xff]   ;;  %478 = vmatprep.subr.bf16.mxu0 %v524_v0  ;;  %v529_v5 = vld [vmem:[%s751_s1 + $0xf0] sm:$0xff]   ;;  %v533_v9 = vld [vmem:[%s751_s1 + $0xe8] sm:$0xff]  }
   0x3   :  { %v526_v2 = vld [vmem:[%s751_s1 + $0x38] sm:$0xff]   ;;  %500 = vmatprep.subr.bf16.mxu1 %v525_v1  ;;  %v530_v6 = vld [vmem:[%s751_s1 + $0x30] sm:$0xff]   ;;  %v534_v10 = vld [vmem:[%s751_s1 + $0x28] sm:$0xff]  }
   0x4   :  { %v527_v3 = vld [vmem:[%s751_s1 + $0xb8] sm:$0xff]   ;;  %479 = vmatpush3.bf16.msra.mxu0 %v526_v2  ;;  %v531_v7 = vld [vmem:[%s751_s1 + $0xb0] sm:$0xff]   ;;  %v535_v11 = vld [vmem:[%s751_s1 + $0xa8] sm:$0xff]  }
   0x5   :  { %501 = vmatpush3.bf16.msra.mxu1 %v527_v3  ;;  %480 = vmatprep.subr.bf16.mxu0 %v528_v4  ;;  %v536_v12 = vld [vmem:[%s751_s1 + $0x60] sm:$0xff]   ;;  %v540_v16 = vld [vmem:[%s751_s1 + $0x58] sm:$0xff]   ;;  %v544_v20 = vld [vmem:[%s751_s1 + $0x50] sm:$0xff]  }
   0x6   :  { %502 = vmatprep.subr.bf16.mxu1 %v529_v5  ;;  %v537_v13 = vld [vmem:[%s751_s1 + $0xe0] sm:$0xff]   ;;  %v541_v17 = vld [vmem:[%s751_s1 + $0xd8] sm:$0xff]   ;;  %v545_v21 = vld [vmem:[%s751_s1 + $0xd0] sm:$0xff]  }
   0x7   :  { %v538_v14 = vld [vmem:[%s751_s1 + $0x20] sm:$0xff]   ;;  %v542_v18 = vld [vmem:[%s751_s1 + $0x18] sm:$0xff]   ;;  %v546_v22 = vld [vmem:[%s751_s1 + $0x10] sm:$0xff]  }
   0x8   :  { %481 = vmatpush3.bf16.msra.mxu0 %v530_v6  ;;  %v539_v15 = vld [vmem:[%s751_s1 + $0xa0] sm:$0xff]   ;;  %v543_v19 = vld [vmem:[%s751_s1 + $0x98] sm:$0xff]   ;;  %v547_v23 = vld [vmem:[%s751_s1 + $0x90] sm:$0xff]  }
   0x9   :  { %503 = vmatpush3.bf16.msra.mxu1 %v531_v7  ;;  %482 = vmatprep.subr.bf16.mxu0 %v532_v8  ;;  %v548_v24 = vld [vmem:[%s751_s1 + $0x48] sm:$0xff]   ;;  %v552_v28 = vld [vmem:[%s751_s1 + $0x40] sm:$0xff]  }
   0xa   :  { %504 = vmatprep.subr.bf16.mxu1 %v533_v9  ;;  %v549_v25 = vld [vmem:[%s751_s1 + $0xc8] sm:$0xff]   ;;  %v553_v29 = vld [vmem:[%s751_s1 + $0xc0] sm:$0xff]  }
   0xb   :  { %v550_v26 = vld [vmem:[%s751_s1 + $0x8] sm:$0xff]   ;;  %v554_v30 = vld [vmem:[%s751_s1] sm:$0xff]  }
   0xc   :  { %483 = vmatpush3.bf16.msra.mxu0 %v534_v10  ;;  %v551_v27 = vld [vmem:[%s751_s1 + $0x88] sm:$0xff]   ;;  %v555_v31 = vld [vmem:[%s751_s1 + $0x80] sm:$0xff]  }
   0xd   :  { %505 = vmatpush3.bf16.msra.mxu1 %v535_v11  ;;  %484 = vmatprep.subr.bf16.mxu0 %v536_v12  ;;  %v26_v32 = vld [vmem:[%s750_s0] sm:$0xff]  ;;  %v27_v33 = vld [vmem:[%s750_s0 + $0x8] sm:$0xff] }
   0xe   :  { %506 = vmatprep.subr.bf16.mxu1 %v537_v13 }
  0x10   :  { %485 = vmatpush3.bf16.msra.mxu0 %v538_v14 }
  0x11   :  { %507 = vmatpush3.bf16.msra.mxu1 %v539_v15  ;;  %486 = vmatprep.subr.bf16.mxu0 %v540_v16 }
  0x12   :  { %508 = vmatprep.subr.bf16.mxu1 %v541_v17 }
  0x14   :  { %487 = vmatpush3.bf16.msra.mxu0 %v542_v18 }
  0x15   :  { %509 = vmatpush3.bf16.msra.mxu1 %v543_v19  ;;  %488 = vmatprep.subr.bf16.mxu0 %v544_v20 }
  0x16   :  { %510 = vmatprep.subr.bf16.mxu1 %v545_v21 }
  0x18   :  { %489 = vmatpush3.bf16.msra.mxu0 %v546_v22 }
  0x19   :  { %511 = vmatpush3.bf16.msra.mxu1 %v547_v23  ;;  %490 = vmatprep.subr.bf16.mxu0 %v548_v24 }
  0x1a   :  { %512 = vmatprep.subr.bf16.mxu1 %v549_v25 }
  0x1c   :  { %491 = vmatpush3.bf16.msra.mxu0 %v550_v26 }
  0x1d   :  { %513 = vmatpush3.bf16.msra.mxu1 %v551_v27  ;;  %492 = vmatprep.subr.bf16.mxu0 %v552_v28 }
  0x1e   :  { %514 = vmatprep.subr.bf16.mxu1 %v553_v29 }
  0x20   :  { %493 = vmatpush3.bf16.msra.mxu0 %v554_v30 }
  0x21   :  { %12 = vsyncpa [#allocation6], 0  ;;  %515 = vmatpush3.bf16.msra.mxu1 %v555_v31  ;;  %v441_v34 = vcombine.low %v26_v32, %v26_v32  ;;  %v442_v35 = vcombine.high %v26_v32, %v26_v32  ;;  %v443_v36 = vcombine.low %v27_v33, %v27_v33  ;;  %v444_v37 = vcombine.high %v27_v33, %v27_v33  ;;  %v477_v44 = vld [vmem:[%s752_s2] ss:$0 sm:$0xff]  ;;  %s604_s2 = smov [#allocation3]   ;;  %s605_s14 = smov [#allocation5]  }
  0x22   :  { %s417_s13 = sshll.u32 %s604_s2, 4  ;;  %s427_s15 = sshll.u32 %s605_s14, 4  ;;  %s418_s13 = int_to_ptr.vmem [resolvable:$true] %s417_s13  ;;  %s428_s15 = int_to_ptr.vmem [resolvable:$true] %s427_s15 }
  0x23   :  { %330 = vmatprep.mubr.bf16.mxu0 %v442_v35  ;;  %370 = vmatprep.mubr.bf16.mxu1 %v444_v37  ;;  %s560_s16 = scalar_lea.vmem %s418_s13, 128  ;;  %p565_p1 = scmp.lt.s32.totalorder %s418_s13, %s418_s13 }
  0x24   :  { %331 = vmatmul.mubr.bf16.vlgmr.msra.gmra.mxu0 %v441_v34  ;;  %371 = vmatmul.mubr.bf16.vlgmr.msra.gmra.mxu1 %v443_v36  ;;  %p561_p0 = scmp.ne.s32.totalorder %s418_s13, %s560_s16  ;;  %p566_p2 = scmp.lt.s32.totalorder %s560_s16, %s560_s16 }
  0x26   :  { %p567_p3 = por %p566_p2, %p565_p1 }
  0x28   :  { %p568_p4 = pnand %p567_p3, %p561_p0 }
  0xe4   :  { %v494_v38 = vpop.f32.mrf.mxu0  ;;  %v516_v39 = vpop.f32.mrf.mxu1 }
  0xe6   :  { %v495_v40 = vpop.f32.mrf.mxu0  ;;  %v517_v41 = vpop.f32.mrf.mxu1 }
  0xe7   :  { %v496_v42 = vadd.f32 %v495_v40, %v494_v38  ;;  %v518_v43 = vadd.f32 %v517_v41, %v516_v39 }
  0xe8   :  { %v497_v45 = vpop.f32.mrf.mxu0  ;;  %v519_v46 = vpop.f32.mrf.mxu1 }
  0xe9   :  { %v373_v47 = vadd.f32 %v518_v43, %v496_v42 }
  0xea   :  { %v498_v48 = vpop.f32.mrf.mxu0  ;;  %v520_v49 = vpop.f32.mrf.mxu1 }
  0xeb   :  { %v406_v50 = vadd.f32 %v477_v44, %v373_v47  ;;  %v384_v51 = vrot.slane %v373_v47, 4  ;;  %v390_v52 = vmul.f32 %v373_v47, %v373_v47 }
  0xed   :  { %v407_v53 = vmax.f32 %v406_v50, 0.0  ;;  %v385_v54 = vadd.f32 %v384_v51, %v373_v47  ;;  %v391_v55 = vrot.slane %v390_v52, 4 }
  0xef   :  { %408 = vst [vmem:[%s753_s3] sm:$0xff] %v407_v53  ;;  %v386_v56 = vrot.slane %v385_v54, 2  ;;  %v392_v57 = vadd.f32 %v391_v55, %v390_v52 }
  0xf1   :  { %v387_v58 = vadd.f32 %v386_v56, %v385_v54  ;;  %v393_v59 = vrot.slane %v392_v57, 2 }
  0xf3   :  { %v388_v60 = vrot.slane %v387_v58, 1  ;;  %v394_v61 = vadd.f32 %v393_v59, %v392_v57 }
  0xf5   :  { %v389_v62 = vadd.f32 %v388_v60, %v387_v58  ;;  %v395_v63 = vrot.slane %v394_v61, 1 }
  0xf7   :  { %397 = vst [vmem:[#allocation3] sm:$0xff] %v389_v62  ;;  %v396_v0 = vadd.f32 %v395_v63, %v394_v61 }
  0xf8   :  { %571 = shalt.err (!%p568_p4)
}
  0xf9   :  { %420 = dma.vmem_to_hbm [thread:$0]  %s418_s13, 128, %s754_s4, [#allocation4]   ;;  %398 = vst [vmem:[#allocation5] sm:$0xff] %v396_v0 }
  0xfa   :  { %s580_s18 = scalar_lea.vmem %s428_s15, 128  ;;  %p585_p6 = scmp.lt.s32.totalorder %s428_s15, %s428_s15 }
  0xfb   :  { %p581_p5 = scmp.ne.s32.totalorder %s428_s15, %s580_s18  ;;  %p586_p7 = scmp.lt.s32.totalorder %s580_s18, %s580_s18 }
  0xfd   :  { %p587_p8 = por %p586_p7, %p585_p6 }
  0xff   :  { %p588_p9 = pnand %p587_p8, %p581_p5 }
 0x101   :  { %591 = shalt.err (!%p588_p9)
}
 0x102   :  { %430 = dma.vmem_to_hbm [thread:$0]  %s428_s15, 128, %s755_s5, [#allocation6]  }
 0x103   :  { %600 = dma.done.wait [#allocation4], 128  }
 0x104   :  { %601 = vsyncadd [#allocation4], 4294967168 }
 0x105   :  { %602 = dma.done.wait [#allocation6], 128  }
 0x106   :  { %603 = vsyncadd [#allocation6], 4294967168 }
 0x107   :  { %439 = vsyncpa [#allocation4], 1 }
 0x108   :  { %440 = vsyncpa [#allocation6], 1 }

// kernel: resnet50_forward.47
= control target key start
LH: loop header
LB: loop body
LE: loop exit
PB: predicated region body
PF: predicated region fallthrough
CT: control target
= control target key end

     0   :  { %11 = vsyncpa [#allocation4], 0  ;;  %v214_v1 = vmov 0.0   ;;  %vm215_vm0 = vmmov 0   ;;  %s269_s0 = inlined_call_operand.vmem [shape: bf16[8,32], index: 0, kind: input, shape index: {}]   ;;  %s270_s1 = inlined_call_operand.vmem [shape: bf16[32,128], index: 1, kind: input, shape index: {}]   ;;  %s271_s2 = inlined_call_operand.vmem [shape: f32[1,128], index: 2, kind: input, shape index: {}]   ;;  %s272_s3 = inlined_call_operand.vmem [shape: f32[8,128], index: 3, kind: output, shape index: {0}]   ;;  %s273_s4 = inlined_call_operand.hbm [shape: f32[8,128], index: 4, kind: output, shape index: {1}]   ;;  %s274_s5 = inlined_call_operand.hbm [shape: f32[8,128], index: 5, kind: output, shape index: {2}]  }
   0x1   :  { %v168_v0 = vld [vmem:[%s270_s1 + $0x8] sm:$0xff]   ;;  %156 = vmatprep.subr.bf16.mxu0 %v214_v1  ;;  %v169_v2 = vld [vmem:[%s270_s1] sm:$0xff]   ;;  %160 = vmatprep.mubr.msk.bf16.mxu0 %vm215_vm0, %v214_v1 }
   0x2   :  { %157 = vmatpush3.bf16.msra.mxu0 %v168_v0 }
   0x3   :  { %12 = vsyncpa [#allocation6], 0  ;;  %158 = vmatprep.subr.bf16.mxu0 %v214_v1  ;;  %v26_v3 = vld [vmem:[%s269_s0] sm:$0xf]  ;;  %vm43_vm1 = vcmask 261120   ;;  %s216_s0 = smov [#allocation3]  }
   0x4   :  { %v152_v4 = vld [vmem:[%s271_s2] ss:$0 sm:$0xff]  ;;  %s125_s27 = sshll.u32 %s216_s0, 4  ;;  %s217_s2 = smov [#allocation5]   ;;  %s126_s27 = int_to_ptr.vmem [resolvable:$true] %s125_s27 }
   0x5   :  { %s135_s28 = sshll.u32 %s217_s2, 4  ;;  %p175_p1 = scmp.lt.s32.totalorder %s126_s27, %s126_s27  ;;  %s136_s28 = int_to_ptr.vmem [resolvable:$true] %s135_s28 }
   0x6   :  { %159 = vmatpush3.bf16.msra.mxu0 %v169_v2 }
   0x9   :  { %161 = vmatmul.mubr.msk.bf16.vlgmr.msra.gmra.mxu0 %vm43_vm1, %v26_v3 }
  0xc9   :  { %v81_v5 = vpop.f32.mrf.mxu0 }
  0xca   :  { %v93_v6 = vrot.slane %v81_v5, 4  ;;  %v99_v7 = vmul.f32 %v81_v5, %v81_v5  ;;  %v115_v8 = vadd.f32 %v152_v4, %v81_v5 }
  0xcb   :  { %v162_v9 = vpop.f32.mrf.mxu0 }
  0xcc   :  { %v100_v10 = vrot.slane %v99_v7, 4  ;;  %116 = vst [vmem:[%s272_s3] sm:$0xff] %v115_v8  ;;  %v94_v11 = vadd.f32 %v93_v6, %v81_v5  ;;  %s170_s3 = scalar_lea.vmem %s126_s27, 128 }
  0xcd   :  { %v84_v12 = vpop.f32.mrf.mxu0  ;;  %p171_p0 = scmp.ne.s32.totalorder %s126_s27, %s170_s3  ;;  %p176_p2 = scmp.lt.s32.totalorder %s170_s3, %s170_s3 }
  0xce   :  { %v95_v13 = vrot.slane %v94_v11, 2  ;;  %v101_v14 = vadd.f32 %v100_v10, %v99_v7 }
  0xcf   :  { %v163_v15 = vpop.f32.mrf.mxu0  ;;  %p177_p3 = por %p176_p2, %p175_p1 }
  0xd0   :  { %v96_v16 = vadd.f32 %v95_v13, %v94_v11  ;;  %v102_v17 = vrot.slane %v101_v14, 2 }
  0xd1   :  { %p178_p4 = pnand %p177_p3, %p171_p0 }
  0xd2   :  { %v97_v18 = vrot.slane %v96_v16, 1  ;;  %v103_v19 = vadd.f32 %v102_v17, %v101_v14 }
  0xd4   :  { %v98_v20 = vadd.f32 %v97_v18, %v96_v16  ;;  %v104_v21 = vrot.slane %v103_v19, 1 }
  0xd6   :  { %106 = vst [vmem:[#allocation3] sm:$0xff] %v98_v20  ;;  %v105_v22 = vadd.f32 %v104_v21, %v103_v19 }
  0xd7   :  { %181 = shalt.err (!%p178_p4)
}
  0xd8   :  { %128 = dma.vmem_to_hbm [thread:$0]  %s126_s27, 128, %s273_s4, [#allocation4]   ;;  %107 = vst [vmem:[#allocation5] sm:$0xff] %v105_v22 }
  0xd9   :  { %s190_s6 = scalar_lea.vmem %s136_s28, 128  ;;  %p195_p6 = scmp.lt.s32.totalorder %s136_s28, %s136_s28 }
  0xda   :  { %p191_p5 = scmp.ne.s32.totalorder %s136_s28, %s190_s6  ;;  %p196_p7 = scmp.lt.s32.totalorder %s190_s6, %s190_s6 }
  0xdc   :  { %p197_p8 = por %p196_p7, %p195_p6 }
  0xde   :  { %p198_p9 = pnand %p197_p8, %p191_p5 }
  0xe0   :  { %201 = shalt.err (!%p198_p9)
}
  0xe1   :  { %138 = dma.vmem_to_hbm [thread:$0]  %s136_s28, 128, %s274_s5, [#allocation6]  }
  0xe2   :  { %210 = dma.done.wait [#allocation4], 128  }
  0xe3   :  { %211 = vsyncadd [#allocation4], 4294967168 }
  0xe4   :  { %212 = dma.done.wait [#allocation6], 128  }
  0xe5   :  { %213 = vsyncadd [#allocation6], 4294967168 }
  0xe6   :  { %147 = vsyncpa [#allocation4], 1 }
  0xe7   :  { %148 = vsyncpa [#allocation6], 1 }

</bundles_post_ra>
